<compile_context>
chip_gen: v6e
topology: v6e:2x2x1
jax: 0.10.0
libtpu: 0.0.40
codegen_flags: <defaults>
</compile_context>

<pallas_src>
import functools

import jax
import jax.numpy as jnp
from jax.experimental import pallas as pl
from jax.experimental.pallas import tpu as pltpu


def _round_up(x, m):
    return ((x + m - 1) // m) * m


def _fkan_fused_kernel(*refs, K, n_layers):
    """Fused FKAN stack, batch-on-lanes layout.

    refs = (xT, W_0, bias_0, ..., W_{L-1}, bias_{L-1}, oT, feats_scratch)
      xT     : (in_0, tile_n)          activations, batch on the lane axis
      W_l    : (out_l, 2*(K-1)*in_l)   fused sin/cos weight slab (transposed)
      bias_l : (out_l, 1)              exact k=0 term  sum_i b[0,i,:]
      oT     : (out_last, tile_n)
      feats  : (F_max, tile_n) VMEM scratch reused by every layer / grid step
    """
    x_ref = refs[0]
    o_ref = refs[-2]
    feats = refs[-1]
    w_refs = refs[1:-2]

    x = x_ref[...].astype(jnp.float32)                 # (in_0, tile_n)
    for l in range(n_layers):
        w_ref = w_refs[2 * l]
        b_ref = w_refs[2 * l + 1]
        out_l, F_l = w_ref.shape
        in_l = F_l // (2 * (K - 1))
        half = (K - 1) * in_l

        # Harmonics via angle-addition recurrence: 1 sin + 1 cos hit the EUP
        # per activation element; higher harmonics are cheap VPU FMAs.  Each
        # harmonic is written straight into the VMEM feature slab (no
        # concatenate; only ~4 (in_l, tile_n) values live at any time).
        s1 = jnp.sin(x)
        c1 = jnp.cos(x)
        feats[pl.ds(0, in_l), :] = s1
        feats[pl.ds(half, in_l), :] = c1
        s, c = s1, c1
        for k in range(2, K):
            s, c = s * c1 + c * s1, c * c1 - s * s1
            feats[pl.ds((k - 1) * in_l, in_l), :] = s
            feats[pl.ds(half + (k - 1) * in_l, in_l), :] = c

        # One MXU matmul per layer over the whole fused feature slab.
        x = jnp.dot(w_ref[...], feats[pl.ds(0, F_l), :],
                    preferred_element_type=jnp.float32) + b_ref[...]

    o_ref[...] = x.astype(o_ref.dtype)


def prepare_fused_params(params):
    """(K,in,out) a/b pairs -> transposed lane-dense weight slab + k=0 bias.

    W_l has shape (out, 2*(K-1)*in) with column (k-1)*in + i  = a[k,i,:] and
    column (K-1)*in + (k-1)*in + i = b[k,i,:]  (matches the scratch layout).
    """
    fused = []
    for (a_kio, b_kio) in params:
        K, in_f, out_f = a_kio.shape
        w_sin = jnp.reshape(a_kio[1:], ((K - 1) * in_f, out_f))
        w_cos = jnp.reshape(b_kio[1:], ((K - 1) * in_f, out_f))
        w_t = jnp.concatenate([w_sin, w_cos], axis=0).T       # (out, 2*(K-1)*in)
        bias = jnp.sum(b_kio[0], axis=0)[:, None]              # (out, 1)
        fused.append((w_t.astype(jnp.float32), bias.astype(jnp.float32)))
    return fused


def fkan_forward(x, params, *, tile_n=2048):
    """Fused FKAN forward.  x: (N, 1) f32 -> (N, 1) f32."""
    N, in_f0 = x.shape
    K = params[0][0].shape[0]
    assert K >= 2, "K must be >= 2"
    fused = prepare_fused_params(params)
    n_layers = len(fused)
    out_last = fused[-1][0].shape[0]
    f_scr = _round_up(max(w.shape[1] for (w, _) in fused), 8)

    # Batch-on-lanes: carry activations as (features, batch).
    xT = x.astype(jnp.float32).T                       # (in_0, N)

    # Lane-dense batch tiling (multiples of 128) without gross over-padding.
    tile = min(_round_up(tile_n, 128), _round_up(N, 128))
    n_pad = _round_up(N, tile)
    # v7x megacore: prefer >= 2 grid steps when there is enough work so
    # dimension_semantics=("parallel",) can split the batch across both TCs.
    if n_pad // tile == 1 and tile % 256 == 0:
        tile //= 2
    if n_pad != N:
        xT = jnp.pad(xT, ((0, 0), (0, n_pad - N)))
    grid = (n_pad // tile,)

    in_specs = [pl.BlockSpec((in_f0, tile), lambda i: (0, i))]
    flat_weights = []
    for (w, bias) in fused:
        # Constant index_map -> weights DMA'd once, resident across grid steps.
        in_specs.append(pl.BlockSpec(w.shape, lambda i: (0, 0)))
        in_specs.append(pl.BlockSpec(bias.shape, lambda i: (0, 0)))
        flat_weights += [w, bias]
    out_spec = pl.BlockSpec((out_last, tile), lambda i: (0, i))

    # Advisory cost hint for XLA's scheduler.
    flops = 0
    transcendentals = 0
    weight_bytes = 0
    for (w, bias) in fused:
        out_l, f_l = w.shape
        in_l = f_l // (2 * (K - 1))
        flops += 2 * n_pad * f_l * out_l + 6 * n_pad * f_l   # matmul + recurrence
        transcendentals += 2 * n_pad * in_l
        weight_bytes += (w.size + bias.size) * 4
    cost = pl.CostEstimate(
        flops=int(flops),
        transcendentals=int(transcendentals),
        bytes_accessed=int(xT.size * 4 + weight_bytes + n_pad * out_last * 4),
    )

    kernel = functools.partial(_fkan_fused_kernel, K=K, n_layers=n_layers)
    outT = pl.pallas_call(
        kernel,
        out_shape=jax.ShapeDtypeStruct((out_last, n_pad), jnp.float32),
        grid_spec=pltpu.PrefetchScalarGridSpec(
            num_scalar_prefetch=0,
            grid=grid,
            in_specs=in_specs,
            out_specs=out_spec,
            scratch_shapes=[pltpu.VMEM((f_scr, tile), jnp.float32)]),
        compiler_params=pltpu.CompilerParams(
            dimension_semantics=("parallel",),     # megacore split on v7x
            vmem_limit_bytes=32 * 1024 * 1024),    # covers v5e's 16 MiB default
        cost_estimate=cost,
    )(xT, *flat_weights)
    return outT[:, :N].T


def init_fkan_params(key, layer_num=4, latent_dim=32, K=8):
    """Matches PyTorch shapes: per layer (out,in,K) a/b ~ U(-1,1)/(K*out),
    stored as (K, in, out) so the fused weight slab is a plain reshape."""
    dims = [(1, latent_dim)]
    dims += [(latent_dim, latent_dim)] * (layer_num - 1)
    dims += [(latent_dim, 1)]

    params = []
    for (in_f, out_f) in dims:
        key, ka, kb = jax.random.split(key, 3)
        scale = 1.0 / (K * out_f)
        a = jax.random.uniform(ka, (out_f, in_f, K), jnp.float32, -1.0, 1.0) * scale
        b = jax.random.uniform(kb, (out_f, in_f, K), jnp.float32, -1.0, 1.0) * scale
        params.append((jnp.transpose(a, (2, 1, 0)), jnp.transpose(b, (2, 1, 0))))
    return params


def fkan_forward_ref(x, params):
    """Pure-JAX reference with the ORIGINAL full-K math (incl. k=0 terms)."""
    for (a_kio, b_kio) in params:
        K = a_kio.shape[0]
        k = jnp.arange(K, dtype=jnp.float32)                   # (K,)
        kx = x[:, :, None] * k[None, None, :]                  # (N, in, K)
        s = jnp.sin(kx)
        c = jnp.cos(kx)
        x = (jnp.einsum("nik,kio->no", s, a_kio)
             + jnp.einsum("nik,kio->no", c, b_kio))
    return x


if __name__ == "__main__":
    key = jax.random.PRNGKey(0)
    kp, kx = jax.random.split(key)

    layer_num, latent_dim, K = 4, 32, 8
    batch = 8

    params = init_fkan_params(kp, layer_num=layer_num, latent_dim=latent_dim, K=K)
    # FKAN (like the MLP base) maps scalar inputs: x has shape (batch, 1).
    x = jax.random.normal(kx, (batch, 1), dtype=jnp.float32)

    out = fkan_forward(x, params)
    out = jax.block_until_ready(out)

    ref = fkan_forward_ref(x, params)
    assert out.shape == (batch, 1), out.shape
    # Recurrence-based harmonics differ from direct sin(kx) only at ~f32 eps.
    assert jnp.allclose(out, ref, atol=2e-5, rtol=1e-4), (
        "Pallas output mismatch vs reference, max abs err = "
        f"{float(jnp.max(jnp.abs(out - ref)))}")

    print("KERNEL_OK")
</pallas_src>

<mosaic_0001>
module attributes {stable_mosaic.version = 11 : i64} {
  func.func @_fkan_fused_kernel(%arg0: i32, %arg1: memref<1x128xf32, #tpu.memory_space<vmem>>, %arg2: memref<32x14xf32, #tpu.memory_space<vmem>>, %arg3: memref<32x1xf32, #tpu.memory_space<vmem>>, %arg4: memref<32x448xf32, #tpu.memory_space<vmem>>, %arg5: memref<32x1xf32, #tpu.memory_space<vmem>>, %arg6: memref<32x448xf32, #tpu.memory_space<vmem>>, %arg7: memref<32x1xf32, #tpu.memory_space<vmem>>, %arg8: memref<32x448xf32, #tpu.memory_space<vmem>>, %arg9: memref<32x1xf32, #tpu.memory_space<vmem>>, %arg10: memref<1x448xf32, #tpu.memory_space<vmem>>, %arg11: memref<1x1xf32, #tpu.memory_space<vmem>>, %arg12: memref<1x128xf32, #tpu.memory_space<vmem>>, %arg13: memref<448x128xf32, #tpu.memory_space<vmem>>) attributes {dimension_semantics = [#tpu.dimension_semantics<parallel>], iteration_bounds = array<i64: 1>, scalar_prefetch = 0 : i64, scratch_operands = 1 : i64, tpu.core_type = #tpu.core_type<tc>, window_params = [{transform_indices = @transform_0, window_bounds = array<i64: 1, 128>}, {pipeline_mode = #tpu.pipeline_mode<synchronous>, transform_indices = @transform_1, window_bounds = array<i64: 32, 14>}, {pipeline_mode = #tpu.pipeline_mode<synchronous>, transform_indices = @transform_2, window_bounds = array<i64: 32, 1>}, {pipeline_mode = #tpu.pipeline_mode<synchronous>, transform_indices = @transform_3, window_bounds = array<i64: 32, 448>}, {pipeline_mode = #tpu.pipeline_mode<synchronous>, transform_indices = @transform_4, window_bounds = array<i64: 32, 1>}, {pipeline_mode = #tpu.pipeline_mode<synchronous>, transform_indices = @transform_5, window_bounds = array<i64: 32, 448>}, {pipeline_mode = #tpu.pipeline_mode<synchronous>, transform_indices = @transform_6, window_bounds = array<i64: 32, 1>}, {pipeline_mode = #tpu.pipeline_mode<synchronous>, transform_indices = @transform_7, window_bounds = array<i64: 32, 448>}, {pipeline_mode = #tpu.pipeline_mode<synchronous>, transform_indices = @transform_8, window_bounds = array<i64: 32, 1>}, {pipeline_mode = #tpu.pipeline_mode<synchronous>, transform_indices = @transform_9, window_bounds = array<i64: 1, 448>}, {pipeline_mode = #tpu.pipeline_mode<synchronous>, transform_indices = @transform_10, window_bounds = array<i64: 1, 1>}, {transform_indices = @transform_11, window_bounds = array<i64: 1, 128>}]} {
    %c0 = arith.constant 0 : index
    %c0_0 = arith.constant 0 : index
    %0 = vector.load %arg1[%c0, %c0_0] : memref<1x128xf32, #tpu.memory_space<vmem>>, vector<1x128xf32>
    %1 = math.sin %0 : vector<1x128xf32>
    %2 = math.cos %0 : vector<1x128xf32>
    %c0_1 = arith.constant 0 : index
    %c0_2 = arith.constant 0 : index
    %3 = vector.load %arg13[%c0_1, %c0_2] : memref<448x128xf32, #tpu.memory_space<vmem>>, vector<1x128xf32>
    tpu.vector_store %arg13[%c0_1, %c0_2], %1 {strides = array<i32>} : memref<448x128xf32, #tpu.memory_space<vmem>>, vector<1x128xf32>,
    %c7 = arith.constant 7 : index
    %c0_3 = arith.constant 0 : index
    %4 = vector.load %arg13[%c7, %c0_3] : memref<448x128xf32, #tpu.memory_space<vmem>>, vector<1x128xf32>
    tpu.vector_store %arg13[%c7, %c0_3], %2 {strides = array<i32>} : memref<448x128xf32, #tpu.memory_space<vmem>>, vector<1x128xf32>,
    %5 = arith.mulf %1, %2 : vector<1x128xf32>
    %6 = arith.mulf %2, %1 : vector<1x128xf32>
    %7 = arith.addf %5, %6 : vector<1x128xf32>
    %8 = arith.mulf %2, %2 : vector<1x128xf32>
    %9 = arith.mulf %1, %1 : vector<1x128xf32>
    %10 = arith.subf %8, %9 : vector<1x128xf32>
    %c1 = arith.constant 1 : index
    %c0_4 = arith.constant 0 : index
    %11 = vector.load %arg13[%c1, %c0_4] : memref<448x128xf32, #tpu.memory_space<vmem>>, vector<1x128xf32>
    tpu.vector_store %arg13[%c1, %c0_4], %7 {strides = array<i32>} : memref<448x128xf32, #tpu.memory_space<vmem>>, vector<1x128xf32>,
    %c8 = arith.constant 8 : index
    %c0_5 = arith.constant 0 : index
    %12 = vector.load %arg13[%c8, %c0_5] : memref<448x128xf32, #tpu.memory_space<vmem>>, vector<1x128xf32>
    tpu.vector_store %arg13[%c8, %c0_5], %10 {strides = array<i32>} : memref<448x128xf32, #tpu.memory_space<vmem>>, vector<1x128xf32>,
    %13 = arith.mulf %7, %2 : vector<1x128xf32>
    %14 = arith.mulf %10, %1 : vector<1x128xf32>
    %15 = arith.addf %13, %14 : vector<1x128xf32>
    %16 = arith.mulf %10, %2 : vector<1x128xf32>
    %17 = arith.mulf %7, %1 : vector<1x128xf32>
    %18 = arith.subf %16, %17 : vector<1x128xf32>
    %c2 = arith.constant 2 : index
    %c0_6 = arith.constant 0 : index
    %19 = vector.load %arg13[%c2, %c0_6] : memref<448x128xf32, #tpu.memory_space<vmem>>, vector<1x128xf32>
    tpu.vector_store %arg13[%c2, %c0_6], %15 {strides = array<i32>} : memref<448x128xf32, #tpu.memory_space<vmem>>, vector<1x128xf32>,
    %c9 = arith.constant 9 : index
    %c0_7 = arith.constant 0 : index
    %20 = vector.load %arg13[%c9, %c0_7] : memref<448x128xf32, #tpu.memory_space<vmem>>, vector<1x128xf32>
    tpu.vector_store %arg13[%c9, %c0_7], %18 {strides = array<i32>} : memref<448x128xf32, #tpu.memory_space<vmem>>, vector<1x128xf32>,
    %21 = arith.mulf %15, %2 : vector<1x128xf32>
    %22 = arith.mulf %18, %1 : vector<1x128xf32>
    %23 = arith.addf %21, %22 : vector<1x128xf32>
    %24 = arith.mulf %18, %2 : vector<1x128xf32>
    %25 = arith.mulf %15, %1 : vector<1x128xf32>
    %26 = arith.subf %24, %25 : vector<1x128xf32>
    %c3 = arith.constant 3 : index
    %c0_8 = arith.constant 0 : index
    %27 = vector.load %arg13[%c3, %c0_8] : memref<448x128xf32, #tpu.memory_space<vmem>>, vector<1x128xf32>
    tpu.vector_store %arg13[%c3, %c0_8], %23 {strides = array<i32>} : memref<448x128xf32, #tpu.memory_space<vmem>>, vector<1x128xf32>,
    %c10 = arith.constant 10 : index
    %c0_9 = arith.constant 0 : index
    %28 = vector.load %arg13[%c10, %c0_9] : memref<448x128xf32, #tpu.memory_space<vmem>>, vector<1x128xf32>
    tpu.vector_store %arg13[%c10, %c0_9], %26 {strides = array<i32>} : memref<448x128xf32, #tpu.memory_space<vmem>>, vector<1x128xf32>,
    %29 = arith.mulf %23, %2 : vector<1x128xf32>
    %30 = arith.mulf %26, %1 : vector<1x128xf32>
    %31 = arith.addf %29, %30 : vector<1x128xf32>
    %32 = arith.mulf %26, %2 : vector<1x128xf32>
    %33 = arith.mulf %23, %1 : vector<1x128xf32>
    %34 = arith.subf %32, %33 : vector<1x128xf32>
    %c4 = arith.constant 4 : index
    %c0_10 = arith.constant 0 : index
    %35 = vector.load %arg13[%c4, %c0_10] : memref<448x128xf32, #tpu.memory_space<vmem>>, vector<1x128xf32>
    tpu.vector_store %arg13[%c4, %c0_10], %31 {strides = array<i32>} : memref<448x128xf32, #tpu.memory_space<vmem>>, vector<1x128xf32>,
    %c11 = arith.constant 11 : index
    %c0_11 = arith.constant 0 : index
    %36 = vector.load %arg13[%c11, %c0_11] : memref<448x128xf32, #tpu.memory_space<vmem>>, vector<1x128xf32>
    tpu.vector_store %arg13[%c11, %c0_11], %34 {strides = array<i32>} : memref<448x128xf32, #tpu.memory_space<vmem>>, vector<1x128xf32>,
    %37 = arith.mulf %31, %2 : vector<1x128xf32>
    %38 = arith.mulf %34, %1 : vector<1x128xf32>
    %39 = arith.addf %37, %38 : vector<1x128xf32>
    %40 = arith.mulf %34, %2 : vector<1x128xf32>
    %41 = arith.mulf %31, %1 : vector<1x128xf32>
    %42 = arith.subf %40, %41 : vector<1x128xf32>
    %c5 = arith.constant 5 : index
    %c0_12 = arith.constant 0 : index
    %43 = vector.load %arg13[%c5, %c0_12] : memref<448x128xf32, #tpu.memory_space<vmem>>, vector<1x128xf32>
    tpu.vector_store %arg13[%c5, %c0_12], %39 {strides = array<i32>} : memref<448x128xf32, #tpu.memory_space<vmem>>, vector<1x128xf32>,
    %c12 = arith.constant 12 : index
    %c0_13 = arith.constant 0 : index
    %44 = vector.load %arg13[%c12, %c0_13] : memref<448x128xf32, #tpu.memory_space<vmem>>, vector<1x128xf32>
    tpu.vector_store %arg13[%c12, %c0_13], %42 {strides = array<i32>} : memref<448x128xf32, #tpu.memory_space<vmem>>, vector<1x128xf32>,
    %45 = arith.mulf %39, %2 : vector<1x128xf32>
    %46 = arith.mulf %42, %1 : vector<1x128xf32>
    %47 = arith.addf %45, %46 : vector<1x128xf32>
    %48 = arith.mulf %42, %2 : vector<1x128xf32>
    %49 = arith.mulf %39, %1 : vector<1x128xf32>
    %50 = arith.subf %48, %49 : vector<1x128xf32>
    %c6 = arith.constant 6 : index
    %c0_14 = arith.constant 0 : index
    %51 = vector.load %arg13[%c6, %c0_14] : memref<448x128xf32, #tpu.memory_space<vmem>>, vector<1x128xf32>
    tpu.vector_store %arg13[%c6, %c0_14], %47 {strides = array<i32>} : memref<448x128xf32, #tpu.memory_space<vmem>>, vector<1x128xf32>,
    %c13 = arith.constant 13 : index
    %c0_15 = arith.constant 0 : index
    %52 = vector.load %arg13[%c13, %c0_15] : memref<448x128xf32, #tpu.memory_space<vmem>>, vector<1x128xf32>
    tpu.vector_store %arg13[%c13, %c0_15], %50 {strides = array<i32>} : memref<448x128xf32, #tpu.memory_space<vmem>>, vector<1x128xf32>,
    %c0_16 = arith.constant 0 : index
    %c0_17 = arith.constant 0 : index
    %53 = vector.load %arg2[%c0_16, %c0_17] : memref<32x14xf32, #tpu.memory_space<vmem>>, vector<32x14xf32>
    %c0_18 = arith.constant 0 : index
    %c0_19 = arith.constant 0 : index
    %54 = vector.load %arg13[%c0_18, %c0_19] : memref<448x128xf32, #tpu.memory_space<vmem>>, vector<14x128xf32>
    %cst = arith.constant dense<0.000000e+00> : vector<32x128xf32>
    %55 = tpu.matmul %53, %54, %cst {dimension_numbers = #tpu.dot_dimension_numbers<[1], [0], [0], [1], [0, 0, 1, 1], [], []>} : vector<32x14xf32>, vector<14x128xf32>, vector<32x128xf32> -> vector<32x128xf32>
    %c0_20 = arith.constant 0 : index
    %c0_21 = arith.constant 0 : index
    %56 = vector.load %arg3[%c0_20, %c0_21] : memref<32x1xf32, #tpu.memory_space<vmem>>, vector<32x1xf32>
    %57 = vector.broadcast %56 : vector<32x1xf32> to vector<32x128xf32>
    %58 = arith.addf %55, %57 : vector<32x128xf32>
    %59 = math.sin %58 : vector<32x128xf32>
    %60 = math.cos %58 : vector<32x128xf32>
    %c0_22 = arith.constant 0 : index
    %c0_23 = arith.constant 0 : index
    %61 = vector.load %arg13[%c0_22, %c0_23] : memref<448x128xf32, #tpu.memory_space<vmem>>, vector<32x128xf32>
    tpu.vector_store %arg13[%c0_22, %c0_23], %59 {strides = array<i32>} : memref<448x128xf32, #tpu.memory_space<vmem>>, vector<32x128xf32>,
    %c224 = arith.constant 224 : index
    %c0_24 = arith.constant 0 : index
    %62 = vector.load %arg13[%c224, %c0_24] : memref<448x128xf32, #tpu.memory_space<vmem>>, vector<32x128xf32>
    tpu.vector_store %arg13[%c224, %c0_24], %60 {strides = array<i32>} : memref<448x128xf32, #tpu.memory_space<vmem>>, vector<32x128xf32>,
    %63 = arith.mulf %59, %60 : vector<32x128xf32>
    %64 = arith.mulf %60, %59 : vector<32x128xf32>
    %65 = arith.addf %63, %64 : vector<32x128xf32>
    %66 = arith.mulf %60, %60 : vector<32x128xf32>
    %67 = arith.mulf %59, %59 : vector<32x128xf32>
    %68 = arith.subf %66, %67 : vector<32x128xf32>
    %c32 = arith.constant 32 : index
    %c0_25 = arith.constant 0 : index
    %69 = vector.load %arg13[%c32, %c0_25] : memref<448x128xf32, #tpu.memory_space<vmem>>, vector<32x128xf32>
    tpu.vector_store %arg13[%c32, %c0_25], %65 {strides = array<i32>} : memref<448x128xf32, #tpu.memory_space<vmem>>, vector<32x128xf32>,
    %c256 = arith.constant 256 : index
    %c0_26 = arith.constant 0 : index
    %70 = vector.load %arg13[%c256, %c0_26] : memref<448x128xf32, #tpu.memory_space<vmem>>, vector<32x128xf32>
    tpu.vector_store %arg13[%c256, %c0_26], %68 {strides = array<i32>} : memref<448x128xf32, #tpu.memory_space<vmem>>, vector<32x128xf32>,
    %71 = arith.mulf %65, %60 : vector<32x128xf32>
    %72 = arith.mulf %68, %59 : vector<32x128xf32>
    %73 = arith.addf %71, %72 : vector<32x128xf32>
    %74 = arith.mulf %68, %60 : vector<32x128xf32>
    %75 = arith.mulf %65, %59 : vector<32x128xf32>
    %76 = arith.subf %74, %75 : vector<32x128xf32>
    %c64 = arith.constant 64 : index
    %c0_27 = arith.constant 0 : index
    %77 = vector.load %arg13[%c64, %c0_27] : memref<448x128xf32, #tpu.memory_space<vmem>>, vector<32x128xf32>
    tpu.vector_store %arg13[%c64, %c0_27], %73 {strides = array<i32>} : memref<448x128xf32, #tpu.memory_space<vmem>>, vector<32x128xf32>,
    %c288 = arith.constant 288 : index
    %c0_28 = arith.constant 0 : index
    %78 = vector.load %arg13[%c288, %c0_28] : memref<448x128xf32, #tpu.memory_space<vmem>>, vector<32x128xf32>
    tpu.vector_store %arg13[%c288, %c0_28], %76 {strides = array<i32>} : memref<448x128xf32, #tpu.memory_space<vmem>>, vector<32x128xf32>,
    %79 = arith.mulf %73, %60 : vector<32x128xf32>
    %80 = arith.mulf %76, %59 : vector<32x128xf32>
    %81 = arith.addf %79, %80 : vector<32x128xf32>
    %82 = arith.mulf %76, %60 : vector<32x128xf32>
    %83 = arith.mulf %73, %59 : vector<32x128xf32>
    %84 = arith.subf %82, %83 : vector<32x128xf32>
    %c96 = arith.constant 96 : index
    %c0_29 = arith.constant 0 : index
    %85 = vector.load %arg13[%c96, %c0_29] : memref<448x128xf32, #tpu.memory_space<vmem>>, vector<32x128xf32>
    tpu.vector_store %arg13[%c96, %c0_29], %81 {strides = array<i32>} : memref<448x128xf32, #tpu.memory_space<vmem>>, vector<32x128xf32>,
    %c320 = arith.constant 320 : index
    %c0_30 = arith.constant 0 : index
    %86 = vector.load %arg13[%c320, %c0_30] : memref<448x128xf32, #tpu.memory_space<vmem>>, vector<32x128xf32>
    tpu.vector_store %arg13[%c320, %c0_30], %84 {strides = array<i32>} : memref<448x128xf32, #tpu.memory_space<vmem>>, vector<32x128xf32>,
    %87 = arith.mulf %81, %60 : vector<32x128xf32>
    %88 = arith.mulf %84, %59 : vector<32x128xf32>
    %89 = arith.addf %87, %88 : vector<32x128xf32>
    %90 = arith.mulf %84, %60 : vector<32x128xf32>
    %91 = arith.mulf %81, %59 : vector<32x128xf32>
    %92 = arith.subf %90, %91 : vector<32x128xf32>
    %c128 = arith.constant 128 : index
    %c0_31 = arith.constant 0 : index
    %93 = vector.load %arg13[%c128, %c0_31] : memref<448x128xf32, #tpu.memory_space<vmem>>, vector<32x128xf32>
    tpu.vector_store %arg13[%c128, %c0_31], %89 {strides = array<i32>} : memref<448x128xf32, #tpu.memory_space<vmem>>, vector<32x128xf32>,
    %c352 = arith.constant 352 : index
    %c0_32 = arith.constant 0 : index
    %94 = vector.load %arg13[%c352, %c0_32] : memref<448x128xf32, #tpu.memory_space<vmem>>, vector<32x128xf32>
    tpu.vector_store %arg13[%c352, %c0_32], %92 {strides = array<i32>} : memref<448x128xf32, #tpu.memory_space<vmem>>, vector<32x128xf32>,
    %95 = arith.mulf %89, %60 : vector<32x128xf32>
    %96 = arith.mulf %92, %59 : vector<32x128xf32>
    %97 = arith.addf %95, %96 : vector<32x128xf32>
    %98 = arith.mulf %92, %60 : vector<32x128xf32>
    %99 = arith.mulf %89, %59 : vector<32x128xf32>
    %100 = arith.subf %98, %99 : vector<32x128xf32>
    %c160 = arith.constant 160 : index
    %c0_33 = arith.constant 0 : index
    %101 = vector.load %arg13[%c160, %c0_33] : memref<448x128xf32, #tpu.memory_space<vmem>>, vector<32x128xf32>
    tpu.vector_store %arg13[%c160, %c0_33], %97 {strides = array<i32>} : memref<448x128xf32, #tpu.memory_space<vmem>>, vector<32x128xf32>,
    %c384 = arith.constant 384 : index
    %c0_34 = arith.constant 0 : index
    %102 = vector.load %arg13[%c384, %c0_34] : memref<448x128xf32, #tpu.memory_space<vmem>>, vector<32x128xf32>
    tpu.vector_store %arg13[%c384, %c0_34], %100 {strides = array<i32>} : memref<448x128xf32, #tpu.memory_space<vmem>>, vector<32x128xf32>,
    %103 = arith.mulf %97, %60 : vector<32x128xf32>
    %104 = arith.mulf %100, %59 : vector<32x128xf32>
    %105 = arith.addf %103, %104 : vector<32x128xf32>
    %106 = arith.mulf %100, %60 : vector<32x128xf32>
    %107 = arith.mulf %97, %59 : vector<32x128xf32>
    %108 = arith.subf %106, %107 : vector<32x128xf32>
    %c192 = arith.constant 192 : index
    %c0_35 = arith.constant 0 : index
    %109 = vector.load %arg13[%c192, %c0_35] : memref<448x128xf32, #tpu.memory_space<vmem>>, vector<32x128xf32>
    tpu.vector_store %arg13[%c192, %c0_35], %105 {strides = array<i32>} : memref<448x128xf32, #tpu.memory_space<vmem>>, vector<32x128xf32>,
    %c416 = arith.constant 416 : index
    %c0_36 = arith.constant 0 : index
    %110 = vector.load %arg13[%c416, %c0_36] : memref<448x128xf32, #tpu.memory_space<vmem>>, vector<32x128xf32>
    tpu.vector_store %arg13[%c416, %c0_36], %108 {strides = array<i32>} : memref<448x128xf32, #tpu.memory_space<vmem>>, vector<32x128xf32>,
    %c0_37 = arith.constant 0 : index
    %c0_38 = arith.constant 0 : index
    %111 = vector.load %arg4[%c0_37, %c0_38] : memref<32x448xf32, #tpu.memory_space<vmem>>, vector<32x448xf32>
    %c0_39 = arith.constant 0 : index
    %c0_40 = arith.constant 0 : index
    %112 = vector.load %arg13[%c0_39, %c0_40] : memref<448x128xf32, #tpu.memory_space<vmem>>, vector<448x128xf32>
    %cst_41 = arith.constant dense<0.000000e+00> : vector<32x128xf32>
    %113 = tpu.matmul %111, %112, %cst_41 {dimension_numbers = #tpu.dot_dimension_numbers<[1], [0], [0], [1], [0, 0, 1, 1], [], []>} : vector<32x448xf32>, vector<448x128xf32>, vector<32x128xf32> -> vector<32x128xf32>
    %c0_42 = arith.constant 0 : index
    %c0_43 = arith.constant 0 : index
    %114 = vector.load %arg5[%c0_42, %c0_43] : memref<32x1xf32, #tpu.memory_space<vmem>>, vector<32x1xf32>
    %115 = vector.broadcast %114 : vector<32x1xf32> to vector<32x128xf32>
    %116 = arith.addf %113, %115 : vector<32x128xf32>
    %117 = math.sin %116 : vector<32x128xf32>
    %118 = math.cos %116 : vector<32x128xf32>
    %c0_44 = arith.constant 0 : index
    %c0_45 = arith.constant 0 : index
    %119 = vector.load %arg13[%c0_44, %c0_45] : memref<448x128xf32, #tpu.memory_space<vmem>>, vector<32x128xf32>
    tpu.vector_store %arg13[%c0_44, %c0_45], %117 {strides = array<i32>} : memref<448x128xf32, #tpu.memory_space<vmem>>, vector<32x128xf32>,
    %c224_46 = arith.constant 224 : index
    %c0_47 = arith.constant 0 : index
    %120 = vector.load %arg13[%c224_46, %c0_47] : memref<448x128xf32, #tpu.memory_space<vmem>>, vector<32x128xf32>
    tpu.vector_store %arg13[%c224_46, %c0_47], %118 {strides = array<i32>} : memref<448x128xf32, #tpu.memory_space<vmem>>, vector<32x128xf32>,
    %121 = arith.mulf %117, %118 : vector<32x128xf32>
    %122 = arith.mulf %118, %117 : vector<32x128xf32>
    %123 = arith.addf %121, %122 : vector<32x128xf32>
    %124 = arith.mulf %118, %118 : vector<32x128xf32>
    %125 = arith.mulf %117, %117 : vector<32x128xf32>
    %126 = arith.subf %124, %125 : vector<32x128xf32>
    %c32_48 = arith.constant 32 : index
    %c0_49 = arith.constant 0 : index
    %127 = vector.load %arg13[%c32_48, %c0_49] : memref<448x128xf32, #tpu.memory_space<vmem>>, vector<32x128xf32>
    tpu.vector_store %arg13[%c32_48, %c0_49], %123 {strides = array<i32>} : memref<448x128xf32, #tpu.memory_space<vmem>>, vector<32x128xf32>,
    %c256_50 = arith.constant 256 : index
    %c0_51 = arith.constant 0 : index
    %128 = vector.load %arg13[%c256_50, %c0_51] : memref<448x128xf32, #tpu.memory_space<vmem>>, vector<32x128xf32>
    tpu.vector_store %arg13[%c256_50, %c0_51], %126 {strides = array<i32>} : memref<448x128xf32, #tpu.memory_space<vmem>>, vector<32x128xf32>,
    %129 = arith.mulf %123, %118 : vector<32x128xf32>
    %130 = arith.mulf %126, %117 : vector<32x128xf32>
    %131 = arith.addf %129, %130 : vector<32x128xf32>
    %132 = arith.mulf %126, %118 : vector<32x128xf32>
    %133 = arith.mulf %123, %117 : vector<32x128xf32>
    %134 = arith.subf %132, %133 : vector<32x128xf32>
    %c64_52 = arith.constant 64 : index
    %c0_53 = arith.constant 0 : index
    %135 = vector.load %arg13[%c64_52, %c0_53] : memref<448x128xf32, #tpu.memory_space<vmem>>, vector<32x128xf32>
    tpu.vector_store %arg13[%c64_52, %c0_53], %131 {strides = array<i32>} : memref<448x128xf32, #tpu.memory_space<vmem>>, vector<32x128xf32>,
    %c288_54 = arith.constant 288 : index
    %c0_55 = arith.constant 0 : index
    %136 = vector.load %arg13[%c288_54, %c0_55] : memref<448x128xf32, #tpu.memory_space<vmem>>, vector<32x128xf32>
    tpu.vector_store %arg13[%c288_54, %c0_55], %134 {strides = array<i32>} : memref<448x128xf32, #tpu.memory_space<vmem>>, vector<32x128xf32>,
    %137 = arith.mulf %131, %118 : vector<32x128xf32>
    %138 = arith.mulf %134, %117 : vector<32x128xf32>
    %139 = arith.addf %137, %138 : vector<32x128xf32>
    %140 = arith.mulf %134, %118 : vector<32x128xf32>
    %141 = arith.mulf %131, %117 : vector<32x128xf32>
    %142 = arith.subf %140, %141 : vector<32x128xf32>
    %c96_56 = arith.constant 96 : index
    %c0_57 = arith.constant 0 : index
    %143 = vector.load %arg13[%c96_56, %c0_57] : memref<448x128xf32, #tpu.memory_space<vmem>>, vector<32x128xf32>
    tpu.vector_store %arg13[%c96_56, %c0_57], %139 {strides = array<i32>} : memref<448x128xf32, #tpu.memory_space<vmem>>, vector<32x128xf32>,
    %c320_58 = arith.constant 320 : index
    %c0_59 = arith.constant 0 : index
    %144 = vector.load %arg13[%c320_58, %c0_59] : memref<448x128xf32, #tpu.memory_space<vmem>>, vector<32x128xf32>
    tpu.vector_store %arg13[%c320_58, %c0_59], %142 {strides = array<i32>} : memref<448x128xf32, #tpu.memory_space<vmem>>, vector<32x128xf32>,
    %145 = arith.mulf %139, %118 : vector<32x128xf32>
    %146 = arith.mulf %142, %117 : vector<32x128xf32>
    %147 = arith.addf %145, %146 : vector<32x128xf32>
    %148 = arith.mulf %142, %118 : vector<32x128xf32>
    %149 = arith.mulf %139, %117 : vector<32x128xf32>
    %150 = arith.subf %148, %149 : vector<32x128xf32>
    %c128_60 = arith.constant 128 : index
    %c0_61 = arith.constant 0 : index
    %151 = vector.load %arg13[%c128_60, %c0_61] : memref<448x128xf32, #tpu.memory_space<vmem>>, vector<32x128xf32>
    tpu.vector_store %arg13[%c128_60, %c0_61], %147 {strides = array<i32>} : memref<448x128xf32, #tpu.memory_space<vmem>>, vector<32x128xf32>,
    %c352_62 = arith.constant 352 : index
    %c0_63 = arith.constant 0 : index
    %152 = vector.load %arg13[%c352_62, %c0_63] : memref<448x128xf32, #tpu.memory_space<vmem>>, vector<32x128xf32>
    tpu.vector_store %arg13[%c352_62, %c0_63], %150 {strides = array<i32>} : memref<448x128xf32, #tpu.memory_space<vmem>>, vector<32x128xf32>,
    %153 = arith.mulf %147, %118 : vector<32x128xf32>
    %154 = arith.mulf %150, %117 : vector<32x128xf32>
    %155 = arith.addf %153, %154 : vector<32x128xf32>
    %156 = arith.mulf %150, %118 : vector<32x128xf32>
    %157 = arith.mulf %147, %117 : vector<32x128xf32>
    %158 = arith.subf %156, %157 : vector<32x128xf32>
    %c160_64 = arith.constant 160 : index
    %c0_65 = arith.constant 0 : index
    %159 = vector.load %arg13[%c160_64, %c0_65] : memref<448x128xf32, #tpu.memory_space<vmem>>, vector<32x128xf32>
    tpu.vector_store %arg13[%c160_64, %c0_65], %155 {strides = array<i32>} : memref<448x128xf32, #tpu.memory_space<vmem>>, vector<32x128xf32>,
    %c384_66 = arith.constant 384 : index
    %c0_67 = arith.constant 0 : index
    %160 = vector.load %arg13[%c384_66, %c0_67] : memref<448x128xf32, #tpu.memory_space<vmem>>, vector<32x128xf32>
    tpu.vector_store %arg13[%c384_66, %c0_67], %158 {strides = array<i32>} : memref<448x128xf32, #tpu.memory_space<vmem>>, vector<32x128xf32>,
    %161 = arith.mulf %155, %118 : vector<32x128xf32>
    %162 = arith.mulf %158, %117 : vector<32x128xf32>
    %163 = arith.addf %161, %162 : vector<32x128xf32>
    %164 = arith.mulf %158, %118 : vector<32x128xf32>
    %165 = arith.mulf %155, %117 : vector<32x128xf32>
    %166 = arith.subf %164, %165 : vector<32x128xf32>
    %c192_68 = arith.constant 192 : index
    %c0_69 = arith.constant 0 : index
    %167 = vector.load %arg13[%c192_68, %c0_69] : memref<448x128xf32, #tpu.memory_space<vmem>>, vector<32x128xf32>
    tpu.vector_store %arg13[%c192_68, %c0_69], %163 {strides = array<i32>} : memref<448x128xf32, #tpu.memory_space<vmem>>, vector<32x128xf32>,
    %c416_70 = arith.constant 416 : index
    %c0_71 = arith.constant 0 : index
    %168 = vector.load %arg13[%c416_70, %c0_71] : memref<448x128xf32, #tpu.memory_space<vmem>>, vector<32x128xf32>
    tpu.vector_store %arg13[%c416_70, %c0_71], %166 {strides = array<i32>} : memref<448x128xf32, #tpu.memory_space<vmem>>, vector<32x128xf32>,
    %c0_72 = arith.constant 0 : index
    %c0_73 = arith.constant 0 : index
    %169 = vector.load %arg6[%c0_72, %c0_73] : memref<32x448xf32, #tpu.memory_space<vmem>>, vector<32x448xf32>
    %c0_74 = arith.constant 0 : index
    %c0_75 = arith.constant 0 : index
    %170 = vector.load %arg13[%c0_74, %c0_75] : memref<448x128xf32, #tpu.memory_space<vmem>>, vector<448x128xf32>
    %cst_76 = arith.constant dense<0.000000e+00> : vector<32x128xf32>
    %171 = tpu.matmul %169, %170, %cst_76 {dimension_numbers = #tpu.dot_dimension_numbers<[1], [0], [0], [1], [0, 0, 1, 1], [], []>} : vector<32x448xf32>, vector<448x128xf32>, vector<32x128xf32> -> vector<32x128xf32>
    %c0_77 = arith.constant 0 : index
    %c0_78 = arith.constant 0 : index
    %172 = vector.load %arg7[%c0_77, %c0_78] : memref<32x1xf32, #tpu.memory_space<vmem>>, vector<32x1xf32>
    %173 = vector.broadcast %172 : vector<32x1xf32> to vector<32x128xf32>
    %174 = arith.addf %171, %173 : vector<32x128xf32>
    %175 = math.sin %174 : vector<32x128xf32>
    %176 = math.cos %174 : vector<32x128xf32>
    %c0_79 = arith.constant 0 : index
    %c0_80 = arith.constant 0 : index
    %177 = vector.load %arg13[%c0_79, %c0_80] : memref<448x128xf32, #tpu.memory_space<vmem>>, vector<32x128xf32>
    tpu.vector_store %arg13[%c0_79, %c0_80], %175 {strides = array<i32>} : memref<448x128xf32, #tpu.memory_space<vmem>>, vector<32x128xf32>,
    %c224_81 = arith.constant 224 : index
    %c0_82 = arith.constant 0 : index
    %178 = vector.load %arg13[%c224_81, %c0_82] : memref<448x128xf32, #tpu.memory_space<vmem>>, vector<32x128xf32>
    tpu.vector_store %arg13[%c224_81, %c0_82], %176 {strides = array<i32>} : memref<448x128xf32, #tpu.memory_space<vmem>>, vector<32x128xf32>,
    %179 = arith.mulf %175, %176 : vector<32x128xf32>
    %180 = arith.mulf %176, %175 : vector<32x128xf32>
    %181 = arith.addf %179, %180 : vector<32x128xf32>
    %182 = arith.mulf %176, %176 : vector<32x128xf32>
    %183 = arith.mulf %175, %175 : vector<32x128xf32>
    %184 = arith.subf %182, %183 : vector<32x128xf32>
    %c32_83 = arith.constant 32 : index
    %c0_84 = arith.constant 0 : index
    %185 = vector.load %arg13[%c32_83, %c0_84] : memref<448x128xf32, #tpu.memory_space<vmem>>, vector<32x128xf32>
    tpu.vector_store %arg13[%c32_83, %c0_84], %181 {strides = array<i32>} : memref<448x128xf32, #tpu.memory_space<vmem>>, vector<32x128xf32>,
    %c256_85 = arith.constant 256 : index
    %c0_86 = arith.constant 0 : index
    %186 = vector.load %arg13[%c256_85, %c0_86] : memref<448x128xf32, #tpu.memory_space<vmem>>, vector<32x128xf32>
    tpu.vector_store %arg13[%c256_85, %c0_86], %184 {strides = array<i32>} : memref<448x128xf32, #tpu.memory_space<vmem>>, vector<32x128xf32>,
    %187 = arith.mulf %181, %176 : vector<32x128xf32>
    %188 = arith.mulf %184, %175 : vector<32x128xf32>
    %189 = arith.addf %187, %188 : vector<32x128xf32>
    %190 = arith.mulf %184, %176 : vector<32x128xf32>
    %191 = arith.mulf %181, %175 : vector<32x128xf32>
    %192 = arith.subf %190, %191 : vector<32x128xf32>
    %c64_87 = arith.constant 64 : index
    %c0_88 = arith.constant 0 : index
    %193 = vector.load %arg13[%c64_87, %c0_88] : memref<448x128xf32, #tpu.memory_space<vmem>>, vector<32x128xf32>
    tpu.vector_store %arg13[%c64_87, %c0_88], %189 {strides = array<i32>} : memref<448x128xf32, #tpu.memory_space<vmem>>, vector<32x128xf32>,
    %c288_89 = arith.constant 288 : index
    %c0_90 = arith.constant 0 : index
    %194 = vector.load %arg13[%c288_89, %c0_90] : memref<448x128xf32, #tpu.memory_space<vmem>>, vector<32x128xf32>
    tpu.vector_store %arg13[%c288_89, %c0_90], %192 {strides = array<i32>} : memref<448x128xf32, #tpu.memory_space<vmem>>, vector<32x128xf32>,
    %195 = arith.mulf %189, %176 : vector<32x128xf32>
    %196 = arith.mulf %192, %175 : vector<32x128xf32>
    %197 = arith.addf %195, %196 : vector<32x128xf32>
    %198 = arith.mulf %192, %176 : vector<32x128xf32>
    %199 = arith.mulf %189, %175 : vector<32x128xf32>
    %200 = arith.subf %198, %199 : vector<32x128xf32>
    %c96_91 = arith.constant 96 : index
    %c0_92 = arith.constant 0 : index
    %201 = vector.load %arg13[%c96_91, %c0_92] : memref<448x128xf32, #tpu.memory_space<vmem>>, vector<32x128xf32>
    tpu.vector_store %arg13[%c96_91, %c0_92], %197 {strides = array<i32>} : memref<448x128xf32, #tpu.memory_space<vmem>>, vector<32x128xf32>,
    %c320_93 = arith.constant 320 : index
    %c0_94 = arith.constant 0 : index
    %202 = vector.load %arg13[%c320_93, %c0_94] : memref<448x128xf32, #tpu.memory_space<vmem>>, vector<32x128xf32>
    tpu.vector_store %arg13[%c320_93, %c0_94], %200 {strides = array<i32>} : memref<448x128xf32, #tpu.memory_space<vmem>>, vector<32x128xf32>,
    %203 = arith.mulf %197, %176 : vector<32x128xf32>
    %204 = arith.mulf %200, %175 : vector<32x128xf32>
    %205 = arith.addf %203, %204 : vector<32x128xf32>
    %206 = arith.mulf %200, %176 : vector<32x128xf32>
    %207 = arith.mulf %197, %175 : vector<32x128xf32>
    %208 = arith.subf %206, %207 : vector<32x128xf32>
    %c128_95 = arith.constant 128 : index
    %c0_96 = arith.constant 0 : index
    %209 = vector.load %arg13[%c128_95, %c0_96] : memref<448x128xf32, #tpu.memory_space<vmem>>, vector<32x128xf32>
    tpu.vector_store %arg13[%c128_95, %c0_96], %205 {strides = array<i32>} : memref<448x128xf32, #tpu.memory_space<vmem>>, vector<32x128xf32>,
    %c352_97 = arith.constant 352 : index
    %c0_98 = arith.constant 0 : index
    %210 = vector.load %arg13[%c352_97, %c0_98] : memref<448x128xf32, #tpu.memory_space<vmem>>, vector<32x128xf32>
    tpu.vector_store %arg13[%c352_97, %c0_98], %208 {strides = array<i32>} : memref<448x128xf32, #tpu.memory_space<vmem>>, vector<32x128xf32>,
    %211 = arith.mulf %205, %176 : vector<32x128xf32>
    %212 = arith.mulf %208, %175 : vector<32x128xf32>
    %213 = arith.addf %211, %212 : vector<32x128xf32>
    %214 = arith.mulf %208, %176 : vector<32x128xf32>
    %215 = arith.mulf %205, %175 : vector<32x128xf32>
    %216 = arith.subf %214, %215 : vector<32x128xf32>
    %c160_99 = arith.constant 160 : index
    %c0_100 = arith.constant 0 : index
    %217 = vector.load %arg13[%c160_99, %c0_100] : memref<448x128xf32, #tpu.memory_space<vmem>>, vector<32x128xf32>
    tpu.vector_store %arg13[%c160_99, %c0_100], %213 {strides = array<i32>} : memref<448x128xf32, #tpu.memory_space<vmem>>, vector<32x128xf32>,
    %c384_101 = arith.constant 384 : index
    %c0_102 = arith.constant 0 : index
    %218 = vector.load %arg13[%c384_101, %c0_102] : memref<448x128xf32, #tpu.memory_space<vmem>>, vector<32x128xf32>
    tpu.vector_store %arg13[%c384_101, %c0_102], %216 {strides = array<i32>} : memref<448x128xf32, #tpu.memory_space<vmem>>, vector<32x128xf32>,
    %219 = arith.mulf %213, %176 : vector<32x128xf32>
    %220 = arith.mulf %216, %175 : vector<32x128xf32>
    %221 = arith.addf %219, %220 : vector<32x128xf32>
    %222 = arith.mulf %216, %176 : vector<32x128xf32>
    %223 = arith.mulf %213, %175 : vector<32x128xf32>
    %224 = arith.subf %222, %223 : vector<32x128xf32>
    %c192_103 = arith.constant 192 : index
    %c0_104 = arith.constant 0 : index
    %225 = vector.load %arg13[%c192_103, %c0_104] : memref<448x128xf32, #tpu.memory_space<vmem>>, vector<32x128xf32>
    tpu.vector_store %arg13[%c192_103, %c0_104], %221 {strides = array<i32>} : memref<448x128xf32, #tpu.memory_space<vmem>>, vector<32x128xf32>,
    %c416_105 = arith.constant 416 : index
    %c0_106 = arith.constant 0 : index
    %226 = vector.load %arg13[%c416_105, %c0_106] : memref<448x128xf32, #tpu.memory_space<vmem>>, vector<32x128xf32>
    tpu.vector_store %arg13[%c416_105, %c0_106], %224 {strides = array<i32>} : memref<448x128xf32, #tpu.memory_space<vmem>>, vector<32x128xf32>,
    %c0_107 = arith.constant 0 : index
    %c0_108 = arith.constant 0 : index
    %227 = vector.load %arg8[%c0_107, %c0_108] : memref<32x448xf32, #tpu.memory_space<vmem>>, vector<32x448xf32>
    %c0_109 = arith.constant 0 : index
    %c0_110 = arith.constant 0 : index
    %228 = vector.load %arg13[%c0_109, %c0_110] : memref<448x128xf32, #tpu.memory_space<vmem>>, vector<448x128xf32>
    %cst_111 = arith.constant dense<0.000000e+00> : vector<32x128xf32>
    %229 = tpu.matmul %227, %228, %cst_111 {dimension_numbers = #tpu.dot_dimension_numbers<[1], [0], [0], [1], [0, 0, 1, 1], [], []>} : vector<32x448xf32>, vector<448x128xf32>, vector<32x128xf32> -> vector<32x128xf32>
    %c0_112 = arith.constant 0 : index
    %c0_113 = arith.constant 0 : index
    %230 = vector.load %arg9[%c0_112, %c0_113] : memref<32x1xf32, #tpu.memory_space<vmem>>, vector<32x1xf32>
    %231 = vector.broadcast %230 : vector<32x1xf32> to vector<32x128xf32>
    %232 = arith.addf %229, %231 : vector<32x128xf32>
    %233 = math.sin %232 : vector<32x128xf32>
    %234 = math.cos %232 : vector<32x128xf32>
    %c0_114 = arith.constant 0 : index
    %c0_115 = arith.constant 0 : index
    %235 = vector.load %arg13[%c0_114, %c0_115] : memref<448x128xf32, #tpu.memory_space<vmem>>, vector<32x128xf32>
    tpu.vector_store %arg13[%c0_114, %c0_115], %233 {strides = array<i32>} : memref<448x128xf32, #tpu.memory_space<vmem>>, vector<32x128xf32>,
    %c224_116 = arith.constant 224 : index
    %c0_117 = arith.constant 0 : index
    %236 = vector.load %arg13[%c224_116, %c0_117] : memref<448x128xf32, #tpu.memory_space<vmem>>, vector<32x128xf32>
    tpu.vector_store %arg13[%c224_116, %c0_117], %234 {strides = array<i32>} : memref<448x128xf32, #tpu.memory_space<vmem>>, vector<32x128xf32>,
    %237 = arith.mulf %233, %234 : vector<32x128xf32>
    %238 = arith.mulf %234, %233 : vector<32x128xf32>
    %239 = arith.addf %237, %238 : vector<32x128xf32>
    %240 = arith.mulf %234, %234 : vector<32x128xf32>
    %241 = arith.mulf %233, %233 : vector<32x128xf32>
    %242 = arith.subf %240, %241 : vector<32x128xf32>
    %c32_118 = arith.constant 32 : index
    %c0_119 = arith.constant 0 : index
    %243 = vector.load %arg13[%c32_118, %c0_119] : memref<448x128xf32, #tpu.memory_space<vmem>>, vector<32x128xf32>
    tpu.vector_store %arg13[%c32_118, %c0_119], %239 {strides = array<i32>} : memref<448x128xf32, #tpu.memory_space<vmem>>, vector<32x128xf32>,
    %c256_120 = arith.constant 256 : index
    %c0_121 = arith.constant 0 : index
    %244 = vector.load %arg13[%c256_120, %c0_121] : memref<448x128xf32, #tpu.memory_space<vmem>>, vector<32x128xf32>
    tpu.vector_store %arg13[%c256_120, %c0_121], %242 {strides = array<i32>} : memref<448x128xf32, #tpu.memory_space<vmem>>, vector<32x128xf32>,
    %245 = arith.mulf %239, %234 : vector<32x128xf32>
    %246 = arith.mulf %242, %233 : vector<32x128xf32>
    %247 = arith.addf %245, %246 : vector<32x128xf32>
    %248 = arith.mulf %242, %234 : vector<32x128xf32>
    %249 = arith.mulf %239, %233 : vector<32x128xf32>
    %250 = arith.subf %248, %249 : vector<32x128xf32>
    %c64_122 = arith.constant 64 : index
    %c0_123 = arith.constant 0 : index
    %251 = vector.load %arg13[%c64_122, %c0_123] : memref<448x128xf32, #tpu.memory_space<vmem>>, vector<32x128xf32>
    tpu.vector_store %arg13[%c64_122, %c0_123], %247 {strides = array<i32>} : memref<448x128xf32, #tpu.memory_space<vmem>>, vector<32x128xf32>,
    %c288_124 = arith.constant 288 : index
    %c0_125 = arith.constant 0 : index
    %252 = vector.load %arg13[%c288_124, %c0_125] : memref<448x128xf32, #tpu.memory_space<vmem>>, vector<32x128xf32>
    tpu.vector_store %arg13[%c288_124, %c0_125], %250 {strides = array<i32>} : memref<448x128xf32, #tpu.memory_space<vmem>>, vector<32x128xf32>,
    %253 = arith.mulf %247, %234 : vector<32x128xf32>
    %254 = arith.mulf %250, %233 : vector<32x128xf32>
    %255 = arith.addf %253, %254 : vector<32x128xf32>
    %256 = arith.mulf %250, %234 : vector<32x128xf32>
    %257 = arith.mulf %247, %233 : vector<32x128xf32>
    %258 = arith.subf %256, %257 : vector<32x128xf32>
    %c96_126 = arith.constant 96 : index
    %c0_127 = arith.constant 0 : index
    %259 = vector.load %arg13[%c96_126, %c0_127] : memref<448x128xf32, #tpu.memory_space<vmem>>, vector<32x128xf32>
    tpu.vector_store %arg13[%c96_126, %c0_127], %255 {strides = array<i32>} : memref<448x128xf32, #tpu.memory_space<vmem>>, vector<32x128xf32>,
    %c320_128 = arith.constant 320 : index
    %c0_129 = arith.constant 0 : index
    %260 = vector.load %arg13[%c320_128, %c0_129] : memref<448x128xf32, #tpu.memory_space<vmem>>, vector<32x128xf32>
    tpu.vector_store %arg13[%c320_128, %c0_129], %258 {strides = array<i32>} : memref<448x128xf32, #tpu.memory_space<vmem>>, vector<32x128xf32>,
    %261 = arith.mulf %255, %234 : vector<32x128xf32>
    %262 = arith.mulf %258, %233 : vector<32x128xf32>
    %263 = arith.addf %261, %262 : vector<32x128xf32>
    %264 = arith.mulf %258, %234 : vector<32x128xf32>
    %265 = arith.mulf %255, %233 : vector<32x128xf32>
    %266 = arith.subf %264, %265 : vector<32x128xf32>
    %c128_130 = arith.constant 128 : index
    %c0_131 = arith.constant 0 : index
    %267 = vector.load %arg13[%c128_130, %c0_131] : memref<448x128xf32, #tpu.memory_space<vmem>>, vector<32x128xf32>
    tpu.vector_store %arg13[%c128_130, %c0_131], %263 {strides = array<i32>} : memref<448x128xf32, #tpu.memory_space<vmem>>, vector<32x128xf32>,
    %c352_132 = arith.constant 352 : index
    %c0_133 = arith.constant 0 : index
    %268 = vector.load %arg13[%c352_132, %c0_133] : memref<448x128xf32, #tpu.memory_space<vmem>>, vector<32x128xf32>
    tpu.vector_store %arg13[%c352_132, %c0_133], %266 {strides = array<i32>} : memref<448x128xf32, #tpu.memory_space<vmem>>, vector<32x128xf32>,
    %269 = arith.mulf %263, %234 : vector<32x128xf32>
    %270 = arith.mulf %266, %233 : vector<32x128xf32>
    %271 = arith.addf %269, %270 : vector<32x128xf32>
    %272 = arith.mulf %266, %234 : vector<32x128xf32>
    %273 = arith.mulf %263, %233 : vector<32x128xf32>
    %274 = arith.subf %272, %273 : vector<32x128xf32>
    %c160_134 = arith.constant 160 : index
    %c0_135 = arith.constant 0 : index
    %275 = vector.load %arg13[%c160_134, %c0_135] : memref<448x128xf32, #tpu.memory_space<vmem>>, vector<32x128xf32>
    tpu.vector_store %arg13[%c160_134, %c0_135], %271 {strides = array<i32>} : memref<448x128xf32, #tpu.memory_space<vmem>>, vector<32x128xf32>,
    %c384_136 = arith.constant 384 : index
    %c0_137 = arith.constant 0 : index
    %276 = vector.load %arg13[%c384_136, %c0_137] : memref<448x128xf32, #tpu.memory_space<vmem>>, vector<32x128xf32>
    tpu.vector_store %arg13[%c384_136, %c0_137], %274 {strides = array<i32>} : memref<448x128xf32, #tpu.memory_space<vmem>>, vector<32x128xf32>,
    %277 = arith.mulf %271, %234 : vector<32x128xf32>
    %278 = arith.mulf %274, %233 : vector<32x128xf32>
    %279 = arith.addf %277, %278 : vector<32x128xf32>
    %280 = arith.mulf %274, %234 : vector<32x128xf32>
    %281 = arith.mulf %271, %233 : vector<32x128xf32>
    %282 = arith.subf %280, %281 : vector<32x128xf32>
    %c192_138 = arith.constant 192 : index
    %c0_139 = arith.constant 0 : index
    %283 = vector.load %arg13[%c192_138, %c0_139] : memref<448x128xf32, #tpu.memory_space<vmem>>, vector<32x128xf32>
    tpu.vector_store %arg13[%c192_138, %c0_139], %279 {strides = array<i32>} : memref<448x128xf32, #tpu.memory_space<vmem>>, vector<32x128xf32>,
    %c416_140 = arith.constant 416 : index
    %c0_141 = arith.constant 0 : index
    %284 = vector.load %arg13[%c416_140, %c0_141] : memref<448x128xf32, #tpu.memory_space<vmem>>, vector<32x128xf32>
    tpu.vector_store %arg13[%c416_140, %c0_141], %282 {strides = array<i32>} : memref<448x128xf32, #tpu.memory_space<vmem>>, vector<32x128xf32>,
    %c0_142 = arith.constant 0 : index
    %c0_143 = arith.constant 0 : index
    %285 = vector.load %arg10[%c0_142, %c0_143] : memref<1x448xf32, #tpu.memory_space<vmem>>, vector<1x448xf32>
    %c0_144 = arith.constant 0 : index
    %c0_145 = arith.constant 0 : index
    %286 = vector.load %arg13[%c0_144, %c0_145] : memref<448x128xf32, #tpu.memory_space<vmem>>, vector<448x128xf32>
    %cst_146 = arith.constant dense<0.000000e+00> : vector<1x128xf32>
    %287 = tpu.matmul %285, %286, %cst_146 {dimension_numbers = #tpu.dot_dimension_numbers<[1], [0], [0], [1], [0, 0, 1, 1], [], []>} : vector<1x448xf32>, vector<448x128xf32>, vector<1x128xf32> -> vector<1x128xf32>
    %c0_147 = arith.constant 0 : index
    %c0_148 = arith.constant 0 : index
    %288 = vector.load %arg11[%c0_147, %c0_148] : memref<1x1xf32, #tpu.memory_space<vmem>>, vector<1x1xf32>
    %289 = vector.broadcast %288 : vector<1x1xf32> to vector<1x128xf32>
    %290 = arith.addf %287, %289 : vector<1x128xf32>
    %c0_149 = arith.constant 0 : index
    %c0_150 = arith.constant 0 : index
    %291 = vector.load %arg12[%c0_149, %c0_150] : memref<1x128xf32, #tpu.memory_space<vmem>>, vector<1x128xf32>
    tpu.vector_store %arg12[%c0_149, %c0_150], %290 {strides = array<i32>} : memref<1x128xf32, #tpu.memory_space<vmem>>, vector<1x128xf32>,
    return
  }
  func.func @transform_0(%arg0: i32) -> (i32, i32) {
    %c0_i32 = arith.constant 0 : i32
    %c0_i32_0 = arith.constant 0 : i32
    return %c0_i32, %arg0 : i32, i32
  }
  func.func @transform_1(%arg0: i32) -> (i32, i32) {
    %c0_i32 = arith.constant 0 : i32
    %c0_i32_0 = arith.constant 0 : i32
    %c0_i32_1 = arith.constant 0 : i32
    return %c0_i32, %c0_i32_0 : i32, i32
  }
  func.func @transform_2(%arg0: i32) -> (i32, i32) {
    %c0_i32 = arith.constant 0 : i32
    %c0_i32_0 = arith.constant 0 : i32
    %c0_i32_1 = arith.constant 0 : i32
    return %c0_i32, %c0_i32_0 : i32, i32
  }
  func.func @transform_3(%arg0: i32) -> (i32, i32) {
    %c0_i32 = arith.constant 0 : i32
    %c0_i32_0 = arith.constant 0 : i32
    %c0_i32_1 = arith.constant 0 : i32
    return %c0_i32, %c0_i32_0 : i32, i32
  }
  func.func @transform_4(%arg0: i32) -> (i32, i32) {
    %c0_i32 = arith.constant 0 : i32
    %c0_i32_0 = arith.constant 0 : i32
    %c0_i32_1 = arith.constant 0 : i32
    return %c0_i32, %c0_i32_0 : i32, i32
  }
  func.func @transform_5(%arg0: i32) -> (i32, i32) {
    %c0_i32 = arith.constant 0 : i32
    %c0_i32_0 = arith.constant 0 : i32
    %c0_i32_1 = arith.constant 0 : i32
    return %c0_i32, %c0_i32_0 : i32, i32
  }
  func.func @transform_6(%arg0: i32) -> (i32, i32) {
    %c0_i32 = arith.constant 0 : i32
    %c0_i32_0 = arith.constant 0 : i32
    %c0_i32_1 = arith.constant 0 : i32
    return %c0_i32, %c0_i32_0 : i32, i32
  }
  func.func @transform_7(%arg0: i32) -> (i32, i32) {
    %c0_i32 = arith.constant 0 : i32
    %c0_i32_0 = arith.constant 0 : i32
    %c0_i32_1 = arith.constant 0 : i32
    return %c0_i32, %c0_i32_0 : i32, i32
  }
  func.func @transform_8(%arg0: i32) -> (i32, i32) {
    %c0_i32 = arith.constant 0 : i32
    %c0_i32_0 = arith.constant 0 : i32
    %c0_i32_1 = arith.constant 0 : i32
    return %c0_i32, %c0_i32_0 : i32, i32
  }
  func.func @transform_9(%arg0: i32) -> (i32, i32) {
    %c0_i32 = arith.constant 0 : i32
    %c0_i32_0 = arith.constant 0 : i32
    %c0_i32_1 = arith.constant 0 : i32
    return %c0_i32, %c0_i32_0 : i32, i32
  }
  func.func @transform_10(%arg0: i32) -> (i32, i32) {
    %c0_i32 = arith.constant 0 : i32
    %c0_i32_0 = arith.constant 0 : i32
    %c0_i32_1 = arith.constant 0 : i32
    return %c0_i32, %c0_i32_0 : i32, i32
  }
  func.func @transform_11(%arg0: i32) -> (i32, i32) {
    %c0_i32 = arith.constant 0 : i32
    %c0_i32_0 = arith.constant 0 : i32
    return %c0_i32, %arg0 : i32, i32
  }
}

</mosaic_0001>

<bundles_post_ra>
// kernel: tpu_custom_call.1
= control target key start
LH: loop header
LB: loop body
LE: loop exit
PB: predicated region body
PF: predicated region fallthrough
CT: control target
= control target key end

     0   :  { %s8998_s0 = inlined_call_operand.vmem [shape: f32[1,128], index: 0, kind: input, shape index: {}]   ;;  %s8999_s1 = inlined_call_operand.vmem [shape: f32[32,14], index: 1, kind: input, shape index: {}]   ;;  %s9000_s2 = inlined_call_operand.vmem [shape: f32[32,1], index: 2, kind: input, shape index: {}]   ;;  %s9001_s3 = inlined_call_operand.vmem [shape: f32[32,448], index: 3, kind: input, shape index: {}]   ;;  %s9002_s4 = inlined_call_operand.vmem [shape: f32[32,1], index: 4, kind: input, shape index: {}]   ;;  %s9003_s5 = inlined_call_operand.hbm [shape: f32[32,448], index: 5, kind: input, shape index: {}]   ;;  %s9004_s6 = inlined_call_operand.vmem [shape: f32[32,1], index: 6, kind: input, shape index: {}]   ;;  %s9005_s7 = inlined_call_operand.hbm [shape: f32[32,448], index: 7, kind: input, shape index: {}]   ;;  %s9006_s8 = inlined_call_operand.vmem [shape: f32[32,1], index: 8, kind: input, shape index: {}]   ;;  %s9007_s9 = inlined_call_operand.vmem [shape: f32[1,448], index: 9, kind: input, shape index: {}]   ;;  %s9008_s10 = inlined_call_operand.<no memory space> [shape: f32[1,1], index: 10, kind: input, shape index: {}]   ;;  %s9009_s11 = inlined_call_operand.hbm [shape: f32[1,128], index: 11, kind: output, shape index: {}]  }
   0x1   :  { %v16_v0 = vstv %s9008_s10 }
   0x2   :  { %17 = vst [vmem:[#allocation3] sm:$0x1] %v16_v0 }
   0x3   :  { %18 = vsyncpa [#allocation5], 0 }
   0x4   :  { %19 = vsyncpa [#allocation8], 0 }
   0x5   :  { %20 = vsyncpa [#allocation6], 0  ;;  %s6189_s19 = smov [#allocation4]  }
   0x6   :  { %s36_s20 = sshll.u32 %s6189_s19, 4  ;;  %s37_s20 = int_to_ptr.vmem [resolvable:$true] %s36_s20 }
   0x7   :  { %s6131_s21 = scalar_lea.vmem %s37_s20, 2048  ;;  %p6136_p1 = scmp.lt.s32.totalorder %s37_s20, %s37_s20 }
   0x8   :  { %p6132_p0 = scmp.ne.s32.totalorder %s37_s20, %s6131_s21  ;;  %p6137_p2 = scmp.lt.s32.totalorder %s6131_s21, %s6131_s21 }
   0xa   :  { %p6138_p3 = por %p6137_p2, %p6136_p1 }
   0xc   :  { %p6139_p4 = pnand %p6138_p3, %p6132_p0 }
   0xe   :  { %6142 = shalt.err (!%p6139_p4)
}
   0xf   :  { %s6190_s22 = smov 512   ;;  %s6191_s23 = smov 32  }
  0x10   :  { %42 = dma.hbm_to_vmem [thread:$0]  %s9003_s5, 2048, %s37_s20, [#allocation5], %s6190_s22, %s6190_s22, %s6191_s23  }
  0x11   :  { %s6192_s10 = smov [#allocation7]  }
  0x12   :  { %s50_s26 = sshll.u32 %s6192_s10, 4  ;;  %s51_s26 = int_to_ptr.vmem [resolvable:$true] %s50_s26 }
  0x13   :  { %s6151_s27 = scalar_lea.vmem %s51_s26, 2048  ;;  %p6156_p6 = scmp.lt.s32.totalorder %s51_s26, %s51_s26 }
  0x14   :  { %p6152_p5 = scmp.ne.s32.totalorder %s51_s26, %s6151_s27  ;;  %p6157_p7 = scmp.lt.s32.totalorder %s6151_s27, %s6151_s27 }
  0x16   :  { %p6158_p8 = por %p6157_p7, %p6156_p6 }
  0x18   :  { %p6159_p9 = pnand %p6158_p8, %p6152_p5 }
  0x1a   :  { %6162 = shalt.err (!%p6159_p9)
}
  0x1b   :  { %56 = dma.hbm_to_vmem [thread:$0]  %s9005_s7, 2048, %s51_s26, [#allocation8], %s6190_s22, %s6190_s22, %s6191_s23  }
  0x1c   :  { %6183 = dma.done.wait [#allocation5], 2048  }
  0x1d   :  { %6184 = vsyncadd [#allocation5], 4294965248 }
  0x1e   :  { %6185 = dma.done.wait [#allocation8], 2048  }
  0x1f   :  { %6186 = vsyncadd [#allocation8], 4294965248  ;;  %vm356_vm0 = vcmask 113664   ;;  %v6193_v1 = vmov 0   ;;  %v6274_v2 = vld [vmem:[%s8998_s0] sm:$0x1] }
  0x20   :  { %6053 = vset.pattern.permute.xlu0 %v6193_v1  ;;  %6054 = vset.pattern.permute.xlu1 %v6193_v1  ;;  %v326_v3 = vld [vmem:[%s8999_s1] sm:$0xff]  ;;  %v73_v4 = vand.u32 2139095040, %v6274_v2  ;;  %v335_v5 = vld [vmem:[%s9000_s2 + $0x18] sm:$0xff]  ;;  %v333_v7 = vld [vmem:[%s9000_s2 + $0x8] sm:$0xff]  ;;  %v70_v8 = vand.u32 2147483647, %v6274_v2 }
  0x21   :  { %5966 = vmatprep.mubr.msk.f32.mxu1 %vm356_vm0, %v326_v3  ;;  %353 = vperm.xlu0 %6053, %v335_v5   ;;  %v334_v9 = vld [vmem:[%s9000_s2 + $0x10] sm:$0xff]  ;;  %v332_v11 = vld [vmem:[%s9000_s2] sm:$0xff]  ;;  %v1557_v14 = vld [vmem:[%s9002_s4 + $0x18] sm:$0xff]  ;;  %v9020_v22 = vmov 683565275   ;;  %vm72_vm8 = vcmp.lt.s32.totalorder %v6274_v2, 0 }
  0x22   :  { %v74_v6 = vshrl.u32 %v73_v4, 23  ;;  %343 = vperm.xlu1 %6054, %v333_v7   ;;  %v77_v13 = vand.u32 8388607, %v70_v8  ;;  %v1556_v15 = vld [vmem:[%s9002_s4 + $0x10] sm:$0xff]  ;;  %v1555_v20 = vld [vmem:[%s9002_s4 + $0x8] sm:$0xff]  ;;  %v1554_v28 = vld [vmem:[%s9002_s4] sm:$0xff] }
  0x23   :  { %v9018_v24 = vmov 2475754826   ;;  %v9016_v26 = vmov 2131351028   ;;  %v9014_v29 = vmov 2102212464  }
  0x24   :  { %v5635_v10 = vadd.s32 4294967169, %v74_v6  ;;  %v78_v18 = vor.u32 8388608, %v77_v13  ;;  %v9012_v31 = vmov 920167782   ;;  %v9010_v38 = vmov 1326507024  }
  0x25   :  { %348 = vperm.xlu0 %6053, %v334_v9   ;;  %v2860_v41 = vld [vmem:[%s9004_s6 + $0x18] sm:$0xff]  ;;  %v2859_v45 = vld [vmem:[%s9004_s6 + $0x10] sm:$0xff]  ;;  %v2858_v55 = vld [vmem:[%s9004_s6 + $0x8] sm:$0xff]  ;;  %vm71_vm9 = vcmp.le.f32.partialorder %v70_v8, 0.7853982 }
  0x26   :  { %v80_v12 = vadd.s32 1, %v5635_v10  ;;  %338 = vperm.xlu1 %6054, %v332_v11   ;;  %v118_v40 = vshll.u32 %v78_v18, 8  ;;  %v2857_v58 = vld [vmem:[%s9004_s6] sm:$0xff]  ;;  %v4162_v3 = vld [vmem:[%s9006_s8 + $0x18] sm:$0xff]  ;;  %v4161_v4 = vld [vmem:[%s9006_s8 + $0x10] sm:$0xff] }
  0x27   :  { %v4160_v7 = vld [vmem:[%s9006_s8 + $0x8] sm:$0xff]  ;;  %v4159_v10 = vld [vmem:[%s9006_s8] sm:$0xff] }
  0x28   :  { %vm81_vm1 = vcmp.gt.s32.totalorder %v80_v12, 0  ;;  %v5446_v13 = vld [vmem:[#allocation3] sm:$0x1] }
  0x29   :  { %v82_v16 = vsel %vm81_vm1, %v80_v12, 0  ;;  %1575 = vperm.xlu0 %6053, %v1557_v14   ;;  %vm162_vm1 = vweird.f32 %v6274_v2 }
  0x2a   :  { %v84_v17 = vand.u32 31, %v82_v16  ;;  %v83_v19 = vshrl.u32 %v82_v16, 5  ;;  %1570 = vperm.xlu1 %6054, %v1556_v15  }
  0x2c   :  { %v85_v21 = vsub.s32 32, %v84_v17  ;;  %v87_v23 = vshll.u32 %v9020_v22, %v84_v17  ;;  %v90_v25 = vshll.u32 %v9018_v24, %v84_v17  ;;  %v93_v27 = vshll.u32 %v9016_v26, %v84_v17 }
  0x2d   :  { %v96_v30 = vshll.u32 %v9014_v29, %v84_v17  ;;  %v99_v32 = vshll.u32 %v9012_v31, %v84_v17  ;;  %1565 = vperm.xlu0 %6053, %v1555_v20   ;;  %vm102_vm2 = vcmp.lt.s32.totalorder %v83_v19, 1  ;;  %vm105_vm3 = vcmp.lt.s32.totalorder %v83_v19, 4 }
  0x2e   :  { %v86_v33 = vshrl.u32 %v9020_v22, %v85_v21  ;;  %v88_v34 = vshrl.u32 %v9018_v24, %v85_v21  ;;  %v91_v35 = vshrl.u32 %v9016_v26, %v85_v21  ;;  %v94_v36 = vshrl.u32 %v9014_v29, %v85_v21  ;;  %1560 = vperm.xlu1 %6054, %v1554_v28  }
  0x2f   :  { %v97_v37 = vshrl.u32 %v9012_v31, %v85_v21  ;;  %v100_v39 = vshrl.u32 %v9010_v38, %v85_v21  ;;  %vm103_vm4 = vcmp.lt.s32.totalorder %v83_v19, 2  ;;  %vm104_vm5 = vcmp.lt.s32.totalorder %v83_v19, 3 }
  0x30   :  { %v89_v42 = vor.u32 %v88_v34, %v87_v23  ;;  %v92_v43 = vor.u32 %v91_v35, %v90_v25  ;;  %v95_v44 = vor.u32 %v94_v36, %v93_v27 }
  0x31   :  { %v98_v46 = vor.u32 %v97_v37, %v96_v30  ;;  %v101_v47 = vor.u32 %v100_v39, %v99_v32  ;;  %2878 = vperm.xlu0 %6053, %v2860_v41  }
  0x32   :  { %v106_v48 = vsel %vm102_vm2, %v86_v33, %v89_v42  ;;  %v107_v49 = vsel %vm105_vm3, %v95_v44, 2102212464  ;;  %v110_v50 = vsel %vm102_vm2, %v89_v42, %v92_v43  ;;  %v114_v51 = vsel %vm102_vm2, %v92_v43, %v95_v44  ;;  %2873 = vperm.xlu1 %6054, %v2859_v45  }
  0x33   :  { %v108_v52 = vsel %vm104_vm5, %v92_v43, %v107_v49  ;;  %v111_v53 = vsel %vm105_vm3, %v98_v46, 920167782  ;;  %v115_v54 = vsel %vm105_vm3, %v101_v47, 1326507024  ;;  %vm369_vm2 = vcmask 1045504  }
  0x34   :  { %v112_v56 = vsel %vm104_vm5, %v95_v44, %v111_v53  ;;  %v116_v57 = vsel %vm104_vm5, %v98_v46, %v115_v54  ;;  %v109_v59 = vsel %vm103_vm4, %v106_v48, %v108_v52 }
  0x35   :  { %v113_v60 = vsel %vm103_vm4, %v110_v50, %v112_v56  ;;  %v117_v61 = vsel %vm103_vm4, %v114_v51, %v116_v57  ;;  %2868 = vperm.xlu0 %6053, %v2858_v55   ;;  %v125_v5 = vmul.u32 %v118_v40, %v109_v59 }
  0x36   :  { %v6337_v62 = vmul.u32.u64.low %v118_v40, %v117_v61  ;;  %v6338_v63 = vmul.u32.u64.high %v118_v40, %v117_v61, %v6337_v62  ;;  %v6340_v0 = vmul.u32.u64.low %v118_v40, %v113_v60  ;;  %v6341_v1 = vmul.u32.u64.high %v118_v40, %v113_v60, %v6340_v0  ;;  %2863 = vperm.xlu1 %6054, %v2857_v58  }
  0x38   :  { %vm127_vm6 = vc.u32 %v6338_v63, %v6340_v0  ;;  %v128_v6 = vadd.s32 1, %v6341_v1  ;;  %v126_v21 = vadd.s32 %v6340_v0, %v6338_v63 }
  0x39   :  { %4180 = vperm.xlu0 %6053, %v4162_v3  }
  0x3a   :  { %4175 = vperm.xlu1 %6054, %v4161_v4   ;;  %v129_v9 = vsel %vm127_vm6, %v128_v6, %v6341_v1 }
  0x3b   :  { %v130_v11 = vadd.s32 %v129_v9, %v125_v5 }
  0x3d   :  { %4170 = vperm.xlu0 %6053, %v4160_v7   ;;  %v131_v12 = vadd.s32 536870912, %v130_v11 }
  0x3e   :  { %4165 = vperm.xlu1 %6054, %v4159_v10  }
  0x3f   :  { %v132_v14 = vshrl.u32 %v131_v12, 30 }
  0x41   :  { %5449 = vperm.xlu0 %6053, %v5446_v13   ;;  %v133_v15 = vshll.u32 %v132_v14, 30  ;;  %v156_v40 = vsub.s32 4, %v132_v14 }
  0x43   :  { %v134_v16 = vsub.s32 %v130_v11, %v133_v15  ;;  %v157_v43 = vsel %vm72_vm8, %v156_v40, %v132_v14  ;;  %v327_v40 = vld [vmem:[%s8999_s1 + $0x8] sm:$0xff] }
  0x44   :  { %v159_v45 = vsel %vm71_vm9, 0, %v157_v43 }
  0x45   :  { %v136_v17 = vsub.s32 0, %v134_v16  ;;  %v163_v46 = vadd.s32 3, %v159_v45  ;;  %v267_v48 = vand.u32 3, %v159_v45 }
  0x47   :  { %v5636_v18 = vmin.u32 %v136_v17, %v134_v16  ;;  %v164_v47 = vand.u32 3, %v163_v46  ;;  %vm272_vm11 = vcmp.eq.s32.totalorder %v267_v48, 2  ;;  %vm269_vm13 = vcmp.eq.s32.totalorder %v267_v48, 0 }
  0x48   :  { %vm268_vm15 = vcmp.lt.s32.totalorder %v267_v48, 2 }
  0x49   :  { %v138_v19 = vclz %v5636_v18  ;;  %vm169_vm10 = vcmp.eq.s32.totalorder %v164_v47, 2  ;;  %vm166_vm12 = vcmp.eq.s32.totalorder %v164_v47, 0  ;;  %vm165_vm14 = vcmp.lt.s32.totalorder %v164_v47, 2 }
  0x4b   :  { %v5637_v20 = vadd.s32 4294967294, %v138_v19 }
  0x4d   :  { %vm5638_vm7 = vcmp.lt.s32.totalorder %v5637_v20, 0 }
  0x4e   :  { %v141_v23 = vsel %vm5638_vm7, 0, %v5637_v20 }
  0x4f   :  { %v142_v25 = vsub.s32 32, %v141_v23  ;;  %v143_v27 = vshll.u32 %v134_v16, %v141_v23  ;;  %v146_v28 = vsub.s32 4294967266, %v141_v23 }
  0x51   :  { %v144_v30 = vshrl.u32 %v126_v21, %v142_v25  ;;  %v147_v32 = vadd.s32 127, %v146_v28 }
  0x53   :  { %v145_v33 = vor.u32 %v144_v30, %v143_v27  ;;  %v148_v34 = vshll.u32 %v147_v32, 23 }
  0x55   :  { %v149_v35 = vor.u32 4788187, %v148_v34  ;;  %v152_v36 = vcvt.s32.f32 %v145_v33 }
  0x57   :  { %v150_v37 = vand.u32 2147483647, %v149_v35 }
  0x59   :  { %v153_v39 = vmul.f32 %v152_v36, %v150_v37 }
  0x5b   :  { %v154_v41 = vxor.u32 2147483648, %v153_v39 }
  0x5d   :  { %v155_v42 = vsel %vm72_vm8, %v154_v41, %v153_v39  ;;  %v328_v41 = vld [vmem:[%s8999_s1 + $0x10] sm:$0xff] }
  0x5e   :  { %v158_v44 = vsel %vm71_vm9, %v6274_v2, %v155_v42  ;;  %v329_v42 = vld [vmem:[%s8999_s1 + $0x18] sm:$0xff] }
  0x5f   :  { %6055 = vcosq.f32 %v158_v44 }
  0x60   :  { %6057 = vsinq.f32 %v158_v44 }
  0x6c   :  { %v6056_v49 = vpop.eup %6055 }
  0x6d   :  { %v6058_v50 = vpop.eup %6057  ;;  %v170_v51 = vxor.u32 2147483648, %v6056_v49 }
  0x6e   :  { %v167_v8 = vxor.u32 2147483648, %v6058_v50 }
  0x6f   :  { %v171_v52 = vsel %vm169_vm10, %v170_v51, %v6058_v50  ;;  %v274_v53 = vsel %vm272_vm11, %v170_v51, %v6058_v50 }
  0x70   :  { %v168_v54 = vsel %vm166_vm12, %v6056_v49, %v167_v8  ;;  %v271_v55 = vsel %vm269_vm13, %v6056_v49, %v167_v8 }
  0x71   :  { %v172_v56 = vsel %vm165_vm14, %v168_v54, %v171_v52  ;;  %v275_v57 = vsel %vm268_vm15, %v271_v55, %v274_v53 }
  0x72   :  { %v173_v58 = vsel %vm162_vm1, nan, %v172_v56  ;;  %v276_v59 = vsel %vm162_vm1, nan, %v275_v57 }
  0x73   :  { %v279_v60 = vmul.f32 %v276_v59, %v173_v58  ;;  %v281_v61 = vmul.f32 %v276_v59, %v276_v59  ;;  %v282_v62 = vmul.f32 %v173_v58, %v173_v58  ;;  %277 = vst [vmem:[#allocation2] sm:$0x1] %v173_v58  ;;  %278 = vst [vmem:[#allocation2 + $0x7] sm:$0x1] %v276_v59 }
  0x75   :  { %v280_v63 = vadd.f32 %v279_v60, %v279_v60  ;;  %v283_v0 = vsub.f32 %v281_v61, %v282_v62 }
  0x77   :  { %285 = vst [vmem:[#allocation2 + $0x8] sm:$0x1] %v283_v0  ;;  %v286_v1 = vmul.f32 %v280_v63, %v276_v59  ;;  %v287_v3 = vmul.f32 %v283_v0, %v173_v58  ;;  %v289_v4 = vmul.f32 %v283_v0, %v276_v59  ;;  %v290_v2 = vmul.f32 %v280_v63, %v173_v58 }
  0x78   :  { %284 = vst [vmem:[#allocation2 + $0x1] sm:$0x1] %v280_v63 }
  0x79   :  { %v288_v5 = vadd.f32 %v287_v3, %v286_v1  ;;  %v291_v6 = vsub.f32 %v289_v4, %v290_v2 }
  0x7b   :  { %293 = vst [vmem:[#allocation2 + $0x9] sm:$0x1] %v291_v6  ;;  %v294_v7 = vmul.f32 %v288_v5, %v276_v59  ;;  %v295_v9 = vmul.f32 %v291_v6, %v173_v58  ;;  %v297_v10 = vmul.f32 %v291_v6, %v276_v59  ;;  %v298_v11 = vmul.f32 %v288_v5, %v173_v58 }
  0x7c   :  { %292 = vst [vmem:[#allocation2 + $0x2] sm:$0x1] %v288_v5 }
  0x7d   :  { %v296_v12 = vadd.f32 %v295_v9, %v294_v7  ;;  %v299_v13 = vsub.f32 %v297_v10, %v298_v11 }
  0x7f   :  { %301 = vst [vmem:[#allocation2 + $0xa] sm:$0x1] %v299_v13  ;;  %v302_v14 = vmul.f32 %v296_v12, %v276_v59  ;;  %v303_v15 = vmul.f32 %v299_v13, %v173_v58  ;;  %v305_v16 = vmul.f32 %v299_v13, %v276_v59  ;;  %v306_v17 = vmul.f32 %v296_v12, %v173_v58 }
  0x80   :  { %300 = vst [vmem:[#allocation2 + $0x3] sm:$0x1] %v296_v12 }
  0x81   :  { %v304_v18 = vadd.f32 %v303_v15, %v302_v14  ;;  %v307_v19 = vsub.f32 %v305_v16, %v306_v17 }
  0x83   :  { %309 = vst [vmem:[#allocation2 + $0xb] sm:$0x1] %v307_v19  ;;  %v310_v20 = vmul.f32 %v304_v18, %v276_v59  ;;  %v311_v21 = vmul.f32 %v307_v19, %v173_v58  ;;  %v313_v23 = vmul.f32 %v307_v19, %v276_v59  ;;  %v314_v25 = vmul.f32 %v304_v18, %v173_v58 }
  0x84   :  { %308 = vst [vmem:[#allocation2 + $0x4] sm:$0x1] %v304_v18 }
  0x85   :  { %v312_v27 = vadd.f32 %v311_v21, %v310_v20  ;;  %v315_v28 = vsub.f32 %v313_v23, %v314_v25 }
  0x87   :  { %317 = vst [vmem:[#allocation2 + $0xc] sm:$0x1] %v315_v28  ;;  %v321_v30 = vmul.f32 %v315_v28, %v276_v59  ;;  %v322_v32 = vmul.f32 %v312_v27, %v173_v58  ;;  %316 = vst [vmem:[#allocation2 + $0x5] sm:$0x1] %v312_v27  ;;  %v318_v33 = vmul.f32 %v312_v27, %v276_v59 }
  0x88   :  { %v319_v34 = vmul.f32 %v315_v28, %v173_v58 }
  0x89   :  { %v323_v35 = vsub.f32 %v321_v30, %v322_v32 }
  0x8a   :  { %v320_v36 = vadd.f32 %v319_v34, %v318_v33 }
  0x8b   :  { %325 = vst [vmem:[#allocation2 + $0xd] sm:$0x1] %v323_v35 }
  0x8c   :  { %324 = vst [vmem:[#allocation2 + $0x6] sm:$0x1] %v320_v36 }
  0x92   :  { %v331_v37 = vld [vmem:[#allocation2 + $0x8] sm:$0x3f] }
  0x93   :  { %v330_v39 = vld [vmem:[#allocation2] sm:$0xff]  ;;  %5962 = vmatprep.subr.msk.mxu1 %vm369_vm2, %v331_v37 }
  0x94   :  { %5963 = vmatpush3.msk.msra.mxu1 %vm369_vm2, %v331_v37 }
  0x95   :  { %5964 = vmatprep.subr.mxu1 %v330_v39 }
  0x96   :  { %5965 = vmatpush3.msra.mxu1 %v330_v39 }
  0x97   :  { %5967 = vmatmul.mubr.msk.f32.vlgmr.msra.gmra.mxu1 %vm356_vm0, %v327_v40 }
  0x98   :  { %5969 = vmatprep.mubr.msk.f32.mxu1 %vm356_vm0, %v328_v41 }
  0x9b   :  { %5970 = vmatmul.mubr.msk.f32.gmra.mxu1 %vm356_vm0, %v329_v42 }
  0x9c   :  { %v354_v50 = vpop.permute.xlu0 %353 }
  0x9d   :  { %v344_v43 = vpop.permute.xlu1 %343 }
  0xa1   :  { %v339_v47 = vpop.permute.xlu1 %338 }
 0x157   :  { %v5968_v44 = vpop.f32.mrf.mxu1 }
 0x158   :  { %v6376_v45 = vadd.f32 %v5968_v44, %v344_v43 }
 0x159   :  { %v439_v46 = vpop.f32.mrf.mxu1 }
 0x15a   :  { %v562_v48 = vand.u32 2147483647, %v6376_v45  ;;  %v565_v49 = vand.u32 2139095040, %v6376_v45  ;;  %v6380_v51 = vadd.f32 %v439_v46, %v339_v47  ;;  %vm564_vm1 = vcmp.lt.s32.totalorder %v6376_v45, 0 }
 0x15b   :  { %v5971_v8 = vpop.f32.mrf.mxu1 }
 0x15c   :  { %v566_v52 = vshrl.u32 %v565_v49, 23  ;;  %v6382_v53 = vadd.f32 %v5971_v8, %v354_v50  ;;  %v569_v54 = vand.u32 8388607, %v562_v48  ;;  %v458_v55 = vand.u32 2147483647, %v6380_v51 }
 0x15d   :  { %v461_v56 = vand.u32 2139095040, %v6380_v51 }
 0x15e   :  { %v5652_v57 = vadd.s32 4294967169, %v566_v52  ;;  %v465_v59 = vand.u32 8388607, %v458_v55  ;;  %v773_v60 = vand.u32 2139095040, %v6382_v53  ;;  %v570_v62 = vor.u32 8388608, %v569_v54 }
 0x15f   :  { %v462_v58 = vshrl.u32 %v461_v56, 23 }
 0x160   :  { %v572_v61 = vadd.s32 1, %v5652_v57  ;;  %v466_v0 = vor.u32 8388608, %v465_v59  ;;  %v774_v1 = vshrl.u32 %v773_v60, 23  ;;  %v6391_v6 = vshll.u32 %v570_v62, 8 }
 0x161   :  { %v5648_v63 = vadd.s32 4294967169, %v462_v58 }
 0x162   :  { %vm573_vm0 = vcmp.gt.s32.totalorder %v572_v61, 0  ;;  %v6393_v7 = vshll.u32 %v466_v0, 8  ;;  %v5660_v9 = vadd.s32 4294967169, %v774_v1 }
 0x163   :  { %v574_v3 = vsel %vm573_vm0, %v572_v61, 0  ;;  %v468_v4 = vadd.s32 1, %v5648_v63 }
 0x164   :  { %v575_v2 = vshrl.u32 %v574_v3, 5  ;;  %v576_v5 = vand.u32 31, %v574_v3  ;;  %v780_v47 = vadd.s32 1, %v5660_v9 }
 0x165   :  { %vm469_vm3 = vcmp.gt.s32.totalorder %v468_v4, 0 }
 0x166   :  { %v577_v10 = vsub.s32 32, %v576_v5  ;;  %v579_v11 = vshll.u32 %v9020_v22, %v576_v5  ;;  %v582_v12 = vshll.u32 %v9018_v24, %v576_v5  ;;  %v585_v13 = vshll.u32 %v9016_v26, %v576_v5 }
 0x167   :  { %v588_v14 = vshll.u32 %v9014_v29, %v576_v5  ;;  %v591_v15 = vshll.u32 %v9012_v31, %v576_v5  ;;  %vm594_vm4 = vcmp.lt.s32.totalorder %v575_v2, 1  ;;  %vm595_vm5 = vcmp.lt.s32.totalorder %v575_v2, 2 }
 0x168   :  { %v580_v16 = vshrl.u32 %v9018_v24, %v577_v10  ;;  %v583_v17 = vshrl.u32 %v9016_v26, %v577_v10  ;;  %v586_v18 = vshrl.u32 %v9014_v29, %v577_v10  ;;  %v578_v19 = vshrl.u32 %v9020_v22, %v577_v10 }
 0x169   :  { %v589_v20 = vshrl.u32 %v9012_v31, %v577_v10  ;;  %v592_v21 = vshrl.u32 %v9010_v38, %v577_v10  ;;  %vm596_vm6 = vcmp.lt.s32.totalorder %v575_v2, 3  ;;  %v470_v28 = vsel %vm469_vm3, %v468_v4, 0 }
 0x16a   :  { %v581_v23 = vor.u32 %v580_v16, %v579_v11  ;;  %v584_v25 = vor.u32 %v583_v17, %v582_v12  ;;  %v587_v27 = vor.u32 %v586_v18, %v585_v13  ;;  %vm597_vm7 = vcmp.lt.s32.totalorder %v575_v2, 4 }
 0x16b   :  { %v590_v30 = vor.u32 %v589_v20, %v588_v14  ;;  %v593_v32 = vor.u32 %v592_v21, %v591_v15  ;;  %v472_v33 = vand.u32 31, %v470_v28  ;;  %v471_v8 = vshrl.u32 %v470_v28, 5 }
 0x16c   :  { %v598_v34 = vsel %vm594_vm4, %v578_v19, %v581_v23  ;;  %v599_v35 = vsel %vm597_vm7, %v587_v27, 2102212464  ;;  %v602_v36 = vsel %vm594_vm4, %v581_v23, %v584_v25  ;;  %v606_v37 = vsel %vm594_vm4, %v584_v25, %v587_v27 }
 0x16d   :  { %v600_v39 = vsel %vm596_vm6, %v584_v25, %v599_v35  ;;  %v603_v40 = vsel %vm597_vm7, %v590_v30, 920167782  ;;  %v607_v41 = vsel %vm597_vm7, %v593_v32, 1326507024  ;;  %v473_v42 = vsub.s32 32, %v472_v33 }
 0x16e   :  { %v601_v43 = vsel %vm595_vm5, %v598_v34, %v600_v39  ;;  %v604_v44 = vsel %vm596_vm6, %v587_v27, %v603_v40  ;;  %v608_v46 = vsel %vm596_vm6, %v590_v30, %v607_v41  ;;  %v475_v52 = vshll.u32 %v9020_v22, %v472_v33 }
 0x16f   :  { %v605_v49 = vsel %vm595_vm5, %v602_v36, %v604_v44  ;;  %v609_v50 = vsel %vm595_vm5, %v606_v37, %v608_v46  ;;  %v617_v59 = vmul.u32 %v6391_v6, %v601_v43  ;;  %v476_v60 = vshrl.u32 %v9018_v24, %v473_v42  ;;  %v449_v44 = vpop.f32.mrf.mxu1 }
 0x170   :  { %v6418_v54 = vmul.u32.u64.low %v6391_v6, %v609_v50  ;;  %v6419_v56 = vmul.u32.u64.high %v6391_v6, %v609_v50, %v6418_v54  ;;  %v6422_v57 = vmul.u32.u64.low %v6391_v6, %v605_v49  ;;  %v6423_v58 = vmul.u32.u64.high %v6391_v6, %v605_v49, %v6422_v57  ;;  %v349_v50 = vpop.permute.xlu0 %348 }
 0x171   :  { %v478_v61 = vshll.u32 %v9018_v24, %v472_v33  ;;  %v479_v62 = vshrl.u32 %v9016_v26, %v473_v42  ;;  %v481_v63 = vshll.u32 %v9016_v26, %v472_v33  ;;  %v482_v0 = vshrl.u32 %v9014_v29, %v473_v42 }
 0x172   :  { %v484_v1 = vshll.u32 %v9014_v29, %v472_v33  ;;  %v485_v3 = vshrl.u32 %v9012_v31, %v473_v42  ;;  %v477_v4 = vor.u32 %v476_v60, %v475_v52  ;;  %v487_v5 = vshll.u32 %v9012_v31, %v472_v33 }
 0x173   :  { %v480_v2 = vor.u32 %v479_v62, %v478_v61  ;;  %v488_v6 = vshrl.u32 %v9010_v38, %v473_v42  ;;  %vm619_vm8 = vc.u32 %v6419_v56, %v6422_v57  ;;  %v620_v9 = vadd.s32 1, %v6423_v58 }
 0x174   :  { %v474_v10 = vshrl.u32 %v9020_v22, %v473_v42  ;;  %v483_v11 = vor.u32 %v482_v0, %v481_v63  ;;  %v486_v12 = vor.u32 %v485_v3, %v484_v1  ;;  %vm490_vm9 = vcmp.lt.s32.totalorder %v471_v8, 1 }
 0x175   :  { %v489_v13 = vor.u32 %v488_v6, %v487_v5  ;;  %vm491_vm10 = vcmp.lt.s32.totalorder %v471_v8, 2  ;;  %v621_v14 = vsel %vm619_vm8, %v620_v9, %v6423_v58  ;;  %vm492_vm11 = vcmp.lt.s32.totalorder %v471_v8, 3 }
 0x176   :  { %vm493_vm12 = vcmp.lt.s32.totalorder %v471_v8, 4  ;;  %v498_v15 = vsel %vm490_vm9, %v477_v4, %v480_v2  ;;  %v622_v16 = vadd.s32 %v621_v14, %v617_v59  ;;  %v502_v19 = vsel %vm490_vm9, %v480_v2, %v483_v11 }
 0x177   :  { %v495_v17 = vsel %vm493_vm12, %v483_v11, 2102212464  ;;  %v499_v18 = vsel %vm493_vm12, %v486_v12, 920167782  ;;  %v494_v20 = vsel %vm490_vm9, %v474_v10, %v477_v4  ;;  %v503_v23 = vsel %vm493_vm12, %v489_v13, 1326507024 }
 0x178   :  { %v500_v21 = vsel %vm492_vm11, %v483_v11, %v499_v18  ;;  %vm781_vm13 = vcmp.gt.s32.totalorder %v780_v47, 0  ;;  %v623_v25 = vadd.s32 536870912, %v622_v16  ;;  %v496_v27 = vsel %vm492_vm11, %v480_v2, %v495_v17 }
 0x179   :  { %v501_v28 = vsel %vm491_vm10, %v498_v15, %v500_v21  ;;  %v504_v30 = vsel %vm492_vm11, %v486_v12, %v503_v23  ;;  %v770_v35 = vand.u32 2147483647, %v6382_v53  ;;  %v782_v40 = vsel %vm781_vm13, %v780_v47, 0 }
 0x17a   :  { %v505_v32 = vsel %vm491_vm10, %v502_v19, %v504_v30  ;;  %v6444_v33 = vmul.u32.u64.low %v6393_v7, %v501_v28  ;;  %v6445_v34 = vmul.u32.u64.high %v6393_v7, %v501_v28, %v6444_v33  ;;  %v6449_v36 = vshrl.u32 %v623_v25, 30 }
 0x17b   :  { %v6452_v37 = vmul.u32.u64.low %v6393_v7, %v505_v32  ;;  %v6453_v39 = vmul.u32.u64.high %v6393_v7, %v505_v32, %v6452_v37  ;;  %v497_v41 = vsel %vm491_vm10, %v494_v20, %v496_v27  ;;  %v784_v43 = vand.u32 31, %v782_v40 }
 0x17c   :  { %v625_v42 = vshll.u32 %v6449_v36, 30  ;;  %v516_v46 = vadd.s32 1, %v6445_v34  ;;  %v777_v49 = vand.u32 8388607, %v770_v35  ;;  %v513_v54 = vmul.u32 %v6393_v7, %v497_v41 }
 0x17d   :  { %vm515_vm14 = vc.u32 %v6453_v39, %v6444_v33  ;;  %v6464_v8 = vadd.f32 %v449_v44, %v349_v50  ;;  %v785_v60 = vsub.s32 32, %v784_v43  ;;  %v618_v7 = vadd.s32 %v6422_v57, %v6419_v56 }
 0x17e   :  { %v626_v52 = vsub.s32 %v622_v16, %v625_v42  ;;  %v517_v47 = vsel %vm515_vm14, %v516_v46, %v6445_v34  ;;  %v778_v61 = vor.u32 8388608, %v777_v49  ;;  %v787_v9 = vshll.u32 %v9020_v22, %v784_v43 }
 0x17f   :  { %v518_v59 = vadd.s32 %v517_v47, %v513_v54  ;;  %v669_v0 = vand.u32 2139095040, %v6464_v8  ;;  %v788_v3 = vshrl.u32 %v9018_v24, %v785_v60  ;;  %v794_v2 = vshrl.u32 %v9014_v29, %v785_v60 }
 0x180   :  { %v628_v58 = vsub.s32 0, %v626_v52  ;;  %v6473_v5 = vshll.u32 %v778_v61, 8  ;;  %v791_v10 = vshrl.u32 %v9016_v26, %v785_v60  ;;  %v797_v11 = vshrl.u32 %v9012_v31, %v785_v60 }
 0x181   :  { %v519_v63 = vadd.s32 536870912, %v518_v59  ;;  %v783_v13 = vshrl.u32 %v782_v40, 5  ;;  %v793_v14 = vshll.u32 %v9016_v26, %v784_v43  ;;  %v670_v15 = vshrl.u32 %v669_v0, 23 }
 0x182   :  { %v5653_v62 = vmin.u32 %v628_v58, %v626_v52  ;;  %v789_v56 = vor.u32 %v788_v3, %v787_v9  ;;  %v790_v57 = vshll.u32 %v9018_v24, %v784_v43  ;;  %v796_v16 = vshll.u32 %v9014_v29, %v784_v43 }
 0x183   :  { %v6470_v4 = vshrl.u32 %v519_v63, 30  ;;  %v795_v19 = vor.u32 %v794_v2, %v793_v14  ;;  %v800_v20 = vshrl.u32 %v9010_v38, %v785_v60  ;;  %v648_v28 = vsub.s32 4, %v6449_v36 }
 0x184   :  { %v630_v1 = vclz %v5653_v62  ;;  %v792_v25 = vor.u32 %v791_v10, %v790_v57  ;;  %v798_v27 = vor.u32 %v797_v11, %v796_v16  ;;  %v786_v32 = vshrl.u32 %v9020_v22, %v785_v60 }
 0x185   :  { %v521_v12 = vshll.u32 %v6470_v4, 30  ;;  %v799_v34 = vshll.u32 %v9012_v31, %v784_v43  ;;  %vm805_vm2 = vcmp.lt.s32.totalorder %v783_v13, 4  ;;  %vm802_vm0 = vcmp.lt.s32.totalorder %v783_v13, 1 }
 0x186   :  { %v5654_v6 = vadd.s32 4294967294, %v630_v1  ;;  %v807_v46 = vsel %vm805_vm2, %v795_v19, 2102212464  ;;  %v810_v54 = vsel %vm802_vm0, %v789_v56, %v792_v25  ;;  %v811_v47 = vsel %vm805_vm2, %v798_v27, 920167782 }
 0x187   :  { %v6482_v18 = vsub.s32 %v518_v59, %v521_v12  ;;  %v801_v44 = vor.u32 %v800_v20, %v799_v34  ;;  %vm803_vm3 = vcmp.lt.s32.totalorder %v783_v13, 2  ;;  %vm804_vm4 = vcmp.lt.s32.totalorder %v783_v13, 3 }
 0x188   :  { %vm5655_vm15 = vcmp.lt.s32.totalorder %v5654_v6, 0  ;;  %v806_v43 = vsel %vm802_vm0, %v786_v32, %v789_v56  ;;  %vm6495_vm5 = vcmp.le.f32.partialorder %v562_v48, 0.7853982  ;;  %v808_v60 = vsel %vm804_vm4, %v792_v25, %v807_v46  ;;  %v1483_v46 = vld [vmem:[%s9001_s3 + $0x8] sm:$0xff] }
 0x189   :  { %v633_v17 = vsel %vm5655_vm15, 0, %v5654_v6  ;;  %v524_v30 = vsub.s32 0, %v6482_v18  ;;  %v812_v61 = vsel %vm804_vm4, %v795_v19, %v811_v47  ;;  %v814_v62 = vsel %vm802_vm0, %v792_v25, %v795_v19  ;;  %1655 = vmatprep.mubr.f32.mxu1 %v1483_v46 }
 0x18a   :  { %v634_v21 = vsub.s32 32, %v633_v17  ;;  %v638_v23 = vsub.s32 4294967266, %v633_v17  ;;  %v635_v37 = vshll.u32 %v626_v52, %v633_v17  ;;  %v813_v1 = vsel %vm803_vm3, %v810_v54, %v812_v61 }
 0x18b   :  { %v5649_v42 = vmin.u32 %v524_v30, %v6482_v18  ;;  %v815_v3 = vsel %vm805_vm2, %v801_v44, 1326507024  ;;  %v6502_v6 = vmul.u32.u64.low %v6473_v5, %v813_v1  ;;  %v6503_v9 = vmul.u32.u64.high %v6473_v5, %v813_v1, %v6502_v6 }
 0x18c   :  { %v636_v40 = vshrl.u32 %v618_v7, %v634_v21  ;;  %v639_v41 = vadd.s32 127, %v638_v23  ;;  %v816_v2 = vsel %vm804_vm4, %v798_v27, %v815_v3  ;;  %v809_v48 = vsel %vm803_vm3, %v806_v43, %v808_v60 }
 0x18d   :  { %v526_v58 = vclz %v5649_v42  ;;  %v817_v10 = vsel %vm803_vm3, %v814_v62, %v816_v2  ;;  %v5656_v11 = vadd.s32 4294967169, %v670_v15  ;;  %v649_v16 = vsel %vm564_vm1, %v648_v28, %v6449_v36 }
 0x18e   :  { %v637_v49 = vor.u32 %v636_v40, %v635_v37  ;;  %v640_v50 = vshll.u32 %v639_v41, 23  ;;  %v6509_v56 = vmul.u32.u64.low %v6473_v5, %v817_v10  ;;  %v6510_v57 = vmul.u32.u64.high %v6473_v5, %v817_v10, %v6509_v56 }
 0x18f   :  { %v5650_v0 = vadd.s32 4294967294, %v526_v58  ;;  %v676_v20 = vadd.s32 1, %v5656_v11  ;;  %v514_v23 = vadd.s32 %v6444_v33, %v6453_v39  ;;  %v828_v13 = vadd.s32 1, %v6503_v9 }
 0x190   :  { %v641_v59 = vor.u32 4788187, %v640_v50  ;;  %v644_v63 = vcvt.s32.f32 %v637_v49  ;;  %v825_v25 = vmul.u32 %v6473_v5, %v809_v48  ;;  %v666_v27 = vand.u32 2147483647, %v6464_v8 }
 0x191   :  { %vm5651_vm6 = vcmp.lt.s32.totalorder %v5650_v0, 0  ;;  %vm677_vm7 = vcmp.gt.s32.totalorder %v676_v20, 0  ;;  %v9022_v30 = vmov 0.0   ;;  %vm827_vm8 = vc.u32 %v6510_v57, %v6502_v6 }
 0x192   :  { %v642_v7 = vand.u32 2147483647, %v641_v59  ;;  %v529_v14 = vsel %vm5651_vm6, 0, %v5650_v0  ;;  %1676 = vmatprep.subr.mxu0 %v9022_v30  ;;  %v678_v32 = vsel %vm677_vm7, %v676_v20, 0  ;;  %v651_v39 = vsel %vm6495_vm5, 0, %v649_v16 }
 0x193   :  { %v530_v17 = vsub.s32 32, %v529_v14  ;;  %v534_v19 = vsub.s32 4294967266, %v529_v14  ;;  %v829_v34 = vsel %vm827_vm8, %v828_v13, %v6503_v9  ;;  %v531_v37 = vshll.u32 %v6482_v18, %v529_v14 }
 0x194   :  { %v645_v12 = vmul.f32 %v644_v63, %v642_v7  ;;  %v830_v40 = vadd.s32 %v829_v34, %v825_v25  ;;  %v680_v41 = vand.u32 31, %v678_v32  ;;  %v673_v44 = vand.u32 8388607, %v666_v27 }
 0x195   :  { %v535_v15 = vadd.s32 127, %v534_v19  ;;  %v532_v28 = vshrl.u32 %v514_v23, %v530_v17  ;;  %v655_v49 = vadd.s32 3, %v651_v39  ;;  %v6537_v58 = vand.u32 3, %v651_v39 }
 0x196   :  { %v646_v21 = vxor.u32 2147483648, %v645_v12  ;;  %v831_v54 = vadd.s32 536870912, %v830_v40  ;;  %v681_v47 = vsub.s32 32, %v680_v41  ;;  %v674_v0 = vor.u32 8388608, %v673_v44 }
 0x197   :  { %v536_v5 = vshll.u32 %v535_v15, 23  ;;  %v533_v50 = vor.u32 %v532_v28, %v531_v37  ;;  %v656_v61 = vand.u32 3, %v655_v49  ;;  %vm1075_vm9 = vcmp.eq.s32.totalorder %v6537_v58, 2 }
 0x198   :  { %v647_v36 = vsel %vm564_vm1, %v646_v21, %v645_v12  ;;  %v6539_v18 = vshrl.u32 %v831_v54, 30  ;;  %v684_v52 = vshrl.u32 %v9018_v24, %v681_v47  ;;  %v687_v59 = vshrl.u32 %v9016_v26, %v681_v47 }
 0x199   :  { %v650_v33 = vsel %vm6495_vm5, %v6376_v45, %v647_v36  ;;  %v537_v42 = vor.u32 4788187, %v536_v5  ;;  %v693_v60 = vshrl.u32 %v9012_v31, %v681_v47  ;;  %v540_v62 = vcvt.s32.f32 %v533_v50 }
 0x19a   :  { %6059 = vcosq.f32 %v650_v33  ;;  %v833_v63 = vshll.u32 %v6539_v18, 30  ;;  %v683_v1 = vshll.u32 %v9020_v22, %v680_v41  ;;  %v686_v3 = vshll.u32 %v9018_v24, %v680_v41 }
 0x19b   :  { %6061 = vsinq.f32 %v650_v33  ;;  %v538_v43 = vand.u32 2147483647, %v537_v42  ;;  %v690_v7 = vshrl.u32 %v9014_v29, %v681_v47  ;;  %v692_v2 = vshll.u32 %v9014_v29, %v680_v41 }
 0x19c   :  { %vm1072_vm10 = vcmp.eq.s32.totalorder %v6537_v58, 0  ;;  %v6553_v48 = vsub.s32 %v830_v40, %v833_v63  ;;  %v6555_v10 = vshrl.u32 %v678_v32, 5  ;;  %v689_v11 = vshll.u32 %v9016_v26, %v680_v41 }
 0x19d   :  { %v6551_v9 = vmul.f32 %v540_v62, %v538_v43  ;;  %vm1071_vm11 = vcmp.lt.s32.totalorder %v6537_v58, 2  ;;  %v685_v12 = vor.u32 %v684_v52, %v683_v1  ;;  %v688_v14 = vor.u32 %v687_v59, %v686_v3 }
 0x19e   :  { %v694_v56 = vor.u32 %v693_v60, %v692_v2  ;;  %v696_v16 = vshrl.u32 %v9010_v38, %v681_v47  ;;  %vm654_vm12 = vweird.f32 %v6376_v45  ;;  %vm657_vm13 = vcmp.lt.s32.totalorder %v656_v61, 2 }
 0x19f   :  { %vm658_vm14 = vcmp.eq.s32.totalorder %v656_v61, 0  ;;  %vm661_vm15 = vcmp.eq.s32.totalorder %v656_v61, 2  ;;  %v836_v17 = vsub.s32 0, %v6553_v48  ;;  %v826_v19 = vadd.s32 %v6502_v6, %v6510_v57 }
 0x1a0   :  { %v691_v20 = vor.u32 %v690_v7, %v689_v11  ;;  %v695_v21 = vshll.u32 %v9012_v31, %v680_v41  ;;  %v6565_v23 = vshll.u32 %v674_v0, 8  ;;  %v682_v15 = vshrl.u32 %v9020_v22, %v681_v47 }
 0x1a1   :  { %v5661_v13 = vmin.u32 %v836_v17, %v6553_v48  ;;  %vm698_vm1 = vcmp.lt.s32.totalorder %v6555_v10, 1  ;;  %vm701_vm2 = vcmp.lt.s32.totalorder %v6555_v10, 4  ;;  %v542_v36 = vxor.u32 2147483648, %v6551_v9 }
 0x1a2   :  { %v697_v28 = vor.u32 %v696_v16, %v695_v21  ;;  %v706_v6 = vsel %vm698_vm1, %v685_v12, %v688_v14  ;;  %v707_v57 = vsel %vm701_vm2, %v694_v56, 920167782  ;;  %vm699_vm0 = vcmp.lt.s32.totalorder %v6555_v10, 2 }
 0x1a3   :  { %v838_v39 = vclz %v5661_v13  ;;  %vm700_vm3 = vcmp.lt.s32.totalorder %v6555_v10, 3  ;;  %v702_v34 = vsel %vm698_vm1, %v682_v15, %v685_v12  ;;  %v703_v37 = vsel %vm701_vm2, %v691_v20, 2102212464  ;;  %v1485_v12 = vld [vmem:[%s9001_s3 + $0x18] sm:$0xff] }
 0x1a4   :  { %v708_v40 = vsel %vm700_vm3, %v691_v20, %v707_v57  ;;  %v710_v54 = vsel %vm698_vm1, %v688_v14, %v691_v20  ;;  %v711_v47 = vsel %vm701_vm2, %v697_v28, 1326507024  ;;  %v704_v3 = vsel %vm700_vm3, %v688_v14, %v703_v37 }
 0x1a5   :  { %v5662_v44 = vadd.s32 4294967294, %v838_v39  ;;  %v709_v46 = vsel %vm699_vm0, %v706_v6, %v708_v40  ;;  %v712_v59 = vsel %vm700_vm3, %v694_v56, %v711_v47  ;;  %vm460_vm5 = vcmp.lt.s32.totalorder %v6380_v51, 0 }
 0x1a6   :  { %v713_v61 = vsel %vm699_vm0, %v710_v54, %v712_v59  ;;  %v6620_v45 = vmul.u32.u64.low %v6565_v23, %v709_v46  ;;  %v6621_v11 = vmul.u32.u64.high %v6565_v23, %v709_v46, %v6620_v45  ;;  %v705_v17 = vsel %vm699_vm0, %v702_v34, %v704_v3 }
 0x1a7   :  { %v6060_v25 = vpop.eup %6059  ;;  %vm5663_vm4 = vcmp.lt.s32.totalorder %v5662_v44, 0  ;;  %v6616_v7 = vmul.u32.u64.low %v6565_v23, %v713_v61  ;;  %v6617_v2 = vmul.u32.u64.high %v6565_v23, %v713_v61, %v6616_v7  ;;  %vm1578_vm6 = vcmask 523264  }
 0x1a8   :  { %v6062_v32 = vpop.eup %6061  ;;  %v662_v33 = vxor.u32 2147483648, %v6060_v25  ;;  %v841_v63 = vsel %vm5663_vm4, 0, %v5662_v44  ;;  %5680 = vmatprep.mubr.msk.f32.mxu0 %vm1578_vm6, %v1485_v12  ;;  %v724_v10 = vadd.s32 1, %v6621_v11  ;;  %vm6648_vm8 = vcmp.le.f32.partialorder %v458_v55, 0.7853982 }
 0x1a9   :  { %v659_v5 = vxor.u32 2147483648, %v6062_v32  ;;  %v842_v58 = vsub.s32 32, %v841_v63  ;;  %v843_v0 = vshll.u32 %v6553_v48, %v841_v63  ;;  %v846_v1 = vsub.s32 4294967266, %v841_v63 }
 0x1aa   :  { %v663_v41 = vsel %vm661_vm15, %v662_v33, %v6062_v32  ;;  %v1077_v42 = vsel %vm1075_vm9, %v662_v33, %v6062_v32  ;;  %vm723_vm7 = vc.u32 %v6617_v2, %v6620_v45  ;;  %v856_v55 = vsub.s32 4, %v6539_v18 }
 0x1ab   :  { %v660_v49 = vsel %vm658_vm14, %v6060_v25, %v659_v5  ;;  %v1074_v50 = vsel %vm1072_vm10, %v6060_v25, %v659_v5  ;;  %v844_v56 = vshrl.u32 %v826_v19, %v842_v58  ;;  %v847_v16 = vadd.s32 127, %v846_v1 }
 0x1ac   :  { %v664_v43 = vsel %vm657_vm13, %v660_v49, %v663_v41  ;;  %v1078_v52 = vsel %vm1071_vm11, %v1074_v50, %v1077_v42  ;;  %v543_v19 = vsel %vm460_vm5, %v542_v36, %v6551_v9  ;;  %v544_v25 = vsub.s32 4, %v6470_v4 }
 0x1ad   :  { %v6603_v60 = vsel %vm654_vm12, nan, %v664_v43  ;;  %v6607_v62 = vsel %vm654_vm12, nan, %v1078_v52  ;;  %v845_v21 = vor.u32 %v844_v56, %v843_v0  ;;  %v848_v13 = vshll.u32 %v847_v16, 23 }
 0x1ae   :  { %1287 = vst [vmem:[#allocation2 + $0x8] sm:$0xff] %v6603_v60  ;;  %v1295_v48 = vmul.f32 %v6607_v62, %v6603_v60  ;;  %v1303_v14 = vmul.f32 %v6607_v62, %v6607_v62  ;;  %v1307_v20 = vmul.f32 %v6603_v60, %v6603_v60  ;;  %v721_v36 = vmul.u32 %v6565_v23, %v705_v17 }
 0x1af   :  { %v849_v9 = vor.u32 4788187, %v848_v13  ;;  %v546_v57 = vsel %vm6648_vm8, %v6380_v51, %v543_v19  ;;  %v725_v32 = vsel %vm723_vm7, %v724_v10, %v6621_v11  ;;  %v852_v5 = vcvt.s32.f32 %v845_v21 }
 0x1b0   :  { %v6639_v15 = vadd.f32 %v1295_v48, %v1295_v48  ;;  %v6653_v6 = vsub.f32 %v1303_v14, %v1307_v20  ;;  %v726_v34 = vadd.s32 %v725_v32, %v721_v36  ;;  %v545_v23 = vsel %vm460_vm5, %v544_v25, %v6470_v4 }
 0x1b1   :  { %v850_v39 = vand.u32 2147483647, %v849_v9  ;;  %6063 = vcosq.f32 %v546_v57  ;;  %vm772_vm9 = vcmp.lt.s32.totalorder %v6382_v53, 0  ;;  %v547_v49 = vsel %vm6648_vm8, 0, %v545_v23 }
 0x1b2   :  { %v1323_v33 = vmul.f32 %v6639_v15, %v6607_v62  ;;  %v1327_v37 = vmul.f32 %v6653_v6, %v6603_v60  ;;  %v1335_v40 = vmul.f32 %v6653_v6, %v6607_v62  ;;  %v727_v42 = vadd.s32 536870912, %v726_v34 }
 0x1b3   :  { %v853_v41 = vmul.f32 %v852_v5, %v850_v39  ;;  %v1339_v46 = vmul.f32 %v6639_v15, %v6603_v60  ;;  %v857_v50 = vsel %vm772_vm9, %v856_v55, %v6539_v18  ;;  %6065 = vsinq.f32 %v546_v57 }
 0x1b4   :  { %v6670_v44 = vadd.f32 %v1327_v37, %v1323_v33  ;;  %v6677_v54 = vshrl.u32 %v727_v42, 30  ;;  %vm771_vm10 = vcmp.le.f32.partialorder %v770_v35, 0.7853982  ;;  %v551_v0 = vadd.s32 3, %v547_v49 }
 0x1b5   :  { %v854_v4 = vxor.u32 2147483648, %v853_v41  ;;  %v6679_v47 = vsub.f32 %v1335_v40, %v1339_v46  ;;  %v859_v18 = vsel %vm771_vm10, 0, %v857_v50  ;;  %v6701_v48 = vand.u32 3, %v547_v49 }
 0x1b6   :  { %v1355_v43 = vmul.f32 %v6670_v44, %v6607_v62  ;;  %v1371_v52 = vmul.f32 %v6670_v44, %v6603_v60  ;;  %v729_v63 = vshll.u32 %v6677_v54, 30  ;;  %v863_v7 = vadd.s32 3, %v859_v18 }
 0x1b7   :  { %v855_v59 = vsel %vm772_vm9, %v854_v4, %v853_v41  ;;  %v1359_v58 = vmul.f32 %v6679_v47, %v6603_v60  ;;  %v1367_v12 = vmul.f32 %v6679_v47, %v6607_v62  ;;  %v6699_v16 = vand.u32 3, %v551_v0 }
 0x1b8   :  { %v858_v61 = vsel %vm771_vm10, %v6382_v53, %v855_v59  ;;  %v730_v1 = vsub.s32 %v726_v34, %v729_v63  ;;  %v1276_v17 = vand.u32 3, %v859_v18  ;;  %v864_v19 = vand.u32 3, %v863_v7 }
 0x1b9   :  { %6067 = vcosq.f32 %v858_v61  ;;  %v6691_v3 = vadd.f32 %v1359_v58, %v1355_v43  ;;  %v6703_v20 = vsub.f32 %v1367_v12, %v1371_v52  ;;  %vm554_vm11 = vcmp.eq.s32.totalorder %v6699_v16, 0 }
 0x1ba   :  { %6069 = vsinq.f32 %v858_v61  ;;  %v732_v11 = vsub.s32 0, %v730_v1  ;;  %vm557_vm12 = vcmp.eq.s32.totalorder %v6699_v16, 2  ;;  %vm972_vm13 = vcmp.eq.s32.totalorder %v6701_v48, 2 }
 0x1bb   :  { %v1387_v35 = vmul.f32 %v6691_v3, %v6607_v62  ;;  %v1403_v56 = vmul.f32 %v6691_v3, %v6603_v60  ;;  %v1391_v25 = vmul.f32 %v6703_v20, %v6603_v60  ;;  %v1399_v10 = vmul.f32 %v6703_v20, %v6607_v62 }
 0x1bc   :  { %v5657_v14 = vmin.u32 %v732_v11, %v730_v1  ;;  %vm969_vm14 = vcmp.eq.s32.totalorder %v6701_v48, 0  ;;  %vm1277_vm15 = vcmp.lt.s32.totalorder %v1276_v17, 2  ;;  %vm1278_vm1 = vcmp.eq.s32.totalorder %v1276_v17, 0 }
 0x1bd   :  { %v6713_v9 = vsub.f32 %v1399_v10, %v1403_v56  ;;  %v6715_v36 = vadd.f32 %v1391_v25, %v1387_v35  ;;  %vm862_vm2 = vweird.f32 %v6382_v53  ;;  %vm865_vm0 = vcmp.lt.s32.totalorder %v864_v19, 2 }
 0x1be   :  { %v734_v21 = vclz %v5657_v14  ;;  %v6064_v13 = vpop.eup %6063  ;;  %vm1281_vm3 = vcmp.eq.s32.totalorder %v1276_v17, 2  ;;  %vm866_vm5 = vcmp.eq.s32.totalorder %v864_v19, 0  ;;  %v722_v34 = vadd.s32 %v6620_v45, %v6617_v2 }
 0x1bf   :  { %v558_v32 = vxor.u32 2147483648, %v6064_v13  ;;  %v1423_v39 = vmul.f32 %v6713_v9, %v6603_v60  ;;  %v1431_v5 = vmul.f32 %v6713_v9, %v6607_v62  ;;  %v1419_v55 = vmul.f32 %v6715_v36, %v6607_v62 }
 0x1c0   :  { %v5658_v28 = vadd.s32 4294967294, %v734_v21  ;;  %v6066_v57 = vpop.eup %6065  ;;  %vm869_vm7 = vcmp.eq.s32.totalorder %v864_v19, 2  ;;  %v1435_v46 = vmul.f32 %v6715_v36, %v6603_v60  ;;  %vm553_vm8 = vcmp.lt.s32.totalorder %v6699_v16, 2 }
 0x1c1   :  { %v555_v41 = vxor.u32 2147483648, %v6066_v57  ;;  %v6726_v42 = vadd.f32 %v1423_v39, %v1419_v55  ;;  %v559_v59 = vsel %vm557_vm12, %v558_v32, %v6066_v57  ;;  %vm968_vm9 = vcmp.lt.s32.totalorder %v6701_v48, 2 }
 0x1c2   :  { %vm5659_vm4 = vcmp.lt.s32.totalorder %v5658_v28, 0  ;;  %v6732_v2 = vsub.f32 %v1431_v5, %v1435_v46  ;;  %vm668_vm10 = vcmp.lt.s32.totalorder %v6464_v8, 0  ;;  %v752_v46 = vsub.s32 4, %v6677_v54 }
 0x1c3   :  { %v737_v33 = vsel %vm5659_vm4, 0, %v5658_v28  ;;  %v1451_v45 = vmul.f32 %v6726_v42, %v6607_v62  ;;  %v556_v7 = vsel %vm554_vm11, %v6064_v13, %v555_v41  ;;  %v971_v12 = vsel %vm969_vm14, %v6064_v13, %v555_v41 }
 0x1c4   :  { %v738_v23 = vsub.s32 32, %v737_v33  ;;  %v742_v37 = vsub.s32 4294967266, %v737_v33  ;;  %v739_v50 = vshll.u32 %v730_v1, %v737_v33  ;;  %v974_v1 = vsel %vm972_vm13, %v558_v32, %v6066_v57 }
 0x1c5   :  { %v1455_v57 = vmul.f32 %v6732_v2, %v6603_v60  ;;  %v6770_v33 = vmul.f32 %v6732_v2, %v6607_v62  ;;  %vm550_vm11 = vweird.f32 %v6380_v51  ;;  %vm6795_vm12 = vcmp.le.f32.partialorder %v666_v27, 0.7853982 }
 0x1c6   :  { %v6068_v40 = vpop.eup %6067  ;;  %v740_v43 = vshrl.u32 %v722_v34, %v738_v23  ;;  %v743_v52 = vadd.s32 127, %v742_v37  ;;  %v6778_v34 = vmul.f32 %v6726_v42, %v6603_v60  ;;  %v560_v23 = vsel %vm553_vm8, %v556_v7, %v559_v59 }
 0x1c7   :  { %v6070_v49 = vpop.eup %6069  ;;  %v870_v4 = vxor.u32 2147483648, %v6068_v40  ;;  %v6766_v53 = vadd.f32 %v1455_v57, %v1451_v45  ;;  %v975_v37 = vsel %vm968_vm9, %v971_v12, %v974_v1  ;;  %vm758_vm13 = vweird.f32 %v6464_v8 }
 0x1c8   :  { %v867_v63 = vxor.u32 2147483648, %v6070_v49  ;;  %v741_v58 = vor.u32 %v740_v43, %v739_v50  ;;  %v744_v0 = vshll.u32 %v743_v52, 23  ;;  %v6801_v52 = vsel %vm550_vm11, nan, %v560_v23 }
 0x1c9   :  { %v871_v61 = vsel %vm869_vm7, %v870_v4, %v6070_v49  ;;  %v1283_v18 = vsel %vm1281_vm3, %v870_v4, %v6070_v49  ;;  %v1471_v49 = vsub.f32 %v6770_v33, %v6778_v34  ;;  %v6803_v59 = vsel %vm550_vm11, nan, %v975_v37  ;;  %v1494_v33 = vld [vmem:[%s9001_s3 + $0x60] sm:$0xff]  ;;  %v1484_v34 = vld [vmem:[%s9001_s3 + $0x10] sm:$0xff] }
 0x1ca   :  { %v868_v11 = vsel %vm866_vm5, %v6068_v40, %v867_v63  ;;  %v1280_v35 = vsel %vm1278_vm1, %v6068_v40, %v867_v63  ;;  %v745_v21 = vor.u32 4788187, %v744_v0  ;;  %v748_v28 = vcvt.s32.f32 %v741_v58 }
 0x1cb   :  { %v872_v56 = vsel %vm865_vm0, %v868_v11, %v871_v61  ;;  %v1284_v14 = vsel %vm1277_vm15, %v1280_v35, %v1283_v18  ;;  %v753_v61 = vsel %vm668_vm10, %v752_v46, %v6677_v54  ;;  %v1294_v0 = vmul.f32 %v6803_v59, %v6801_v52 }
 0x1cc   :  { %v6749_v25 = vsel %vm862_vm2, nan, %v872_v56  ;;  %v6753_v10 = vsel %vm862_vm2, nan, %v1284_v14  ;;  %v746_v32 = vand.u32 2147483647, %v745_v21  ;;  %v1302_v7 = vmul.f32 %v6803_v59, %v6803_v59 }
 0x1cd   :  { %5795 = vmatprep.subr.mxu1 %v6753_v10  ;;  %v1297_v17 = vmul.f32 %v6753_v10, %v6749_v25  ;;  %v1305_v19 = vmul.f32 %v6753_v10, %v6753_v10  ;;  %v1309_v13 = vmul.f32 %v6749_v25, %v6749_v25  ;;  %v1306_v1 = vmul.f32 %v6801_v52, %v6801_v52 }
 0x1ce   :  { %v749_v39 = vmul.f32 %v748_v28, %v746_v32  ;;  %v755_v54 = vsel %vm6795_vm12, 0, %v753_v61  ;;  %v6832_v14 = vadd.f32 %v1294_v0, %v1294_v0 }
 0x1cf   :  { %v6772_v5 = vadd.f32 %v1297_v17, %v1297_v17  ;;  %v6774_v55 = vsub.f32 %v1305_v19, %v1309_v13  ;;  %v6834_v21 = vsub.f32 %v1302_v7, %v1306_v1  ;;  %v759_v28 = vadd.s32 3, %v755_v54 }
 0x1d0   :  { %v750_v16 = vxor.u32 2147483648, %v749_v39  ;;  %v1322_v32 = vmul.f32 %v6832_v14, %v6803_v59  ;;  %v1338_v13 = vmul.f32 %v6832_v14, %v6801_v52  ;;  %v1173_v23 = vand.u32 3, %v755_v54 }
 0x1d1   :  { %v1325_v48 = vmul.f32 %v6772_v5, %v6753_v10  ;;  %v1329_v40 = vmul.f32 %v6774_v55, %v6749_v25  ;;  %v1337_v41 = vmul.f32 %v6774_v55, %v6753_v10  ;;  %v1341_v60 = vmul.f32 %v6772_v5, %v6749_v25 }
 0x1d2   :  { %v751_v50 = vsel %vm668_vm10, %v750_v16, %v749_v39  ;;  %v1326_v17 = vmul.f32 %v6834_v21, %v6801_v52  ;;  %v1334_v19 = vmul.f32 %v6834_v21, %v6803_v59  ;;  %v760_v39 = vand.u32 3, %v759_v28 }
 0x1d3   :  { %v6799_v43 = vadd.f32 %v1329_v40, %v1325_v48  ;;  %v754_v63 = vsel %vm6795_vm12, %v6464_v8, %v751_v50  ;;  %v6808_v45 = vsub.f32 %v1337_v41, %v1341_v60  ;;  %vm1174_vm15 = vcmp.lt.s32.totalorder %v1173_v23, 2 }
 0x1d4   :  { %6071 = vcosq.f32 %v754_v63  ;;  %v6849_v46 = vadd.f32 %v1326_v17, %v1322_v32  ;;  %v6851_v60 = vsub.f32 %v1334_v19, %v1338_v13  ;;  %vm765_vm14 = vcmp.eq.s32.totalorder %v760_v39, 2 }
 0x1d5   :  { %v1357_v51 = vmul.f32 %v6799_v43, %v6753_v10  ;;  %v1373_v27 = vmul.f32 %v6799_v43, %v6749_v25  ;;  %6073 = vsinq.f32 %v754_v63  ;;  %v1361_v18 = vmul.f32 %v6808_v45, %v6749_v25 }
 0x1d6   :  { %v1369_v58 = vmul.f32 %v6808_v45, %v6753_v10  ;;  %vm1178_vm1 = vcmp.eq.s32.totalorder %v1173_v23, 2  ;;  %vm762_vm2 = vcmp.eq.s32.totalorder %v760_v39, 0  ;;  %vm1175_vm0 = vcmp.eq.s32.totalorder %v1173_v23, 0 }
 0x1d7   :  { %v1365_v11 = vadd.f32 %v1361_v18, %v1357_v51  ;;  %vm761_vm3 = vcmp.lt.s32.totalorder %v760_v39, 2  ;;  %v1354_v0 = vmul.f32 %v6849_v46, %v6803_v59  ;;  %v1358_v7 = vmul.f32 %v6851_v60, %v6801_v52 }
 0x1d8   :  { %v6825_v35 = vsub.f32 %v1369_v58, %v1373_v27  ;;  %v1366_v54 = vmul.f32 %v6851_v60, %v6803_v59 }
 0x1d9   :  { %5796 = vmatpush3.msra.mxu1 %v1365_v11  ;;  %v1405_v56 = vmul.f32 %v1365_v11, %v6749_v25  ;;  %v1389_v16 = vmul.f32 %v1365_v11, %v6753_v10 }
 0x1da   :  { %v1401_v12 = vmul.f32 %v6825_v35, %v6753_v10  ;;  %v1393_v48 = vmul.f32 %v6825_v35, %v6749_v25 }
 0x1dc   :  { %v1409_v57 = vsub.f32 %v1401_v12, %v1405_v56  ;;  %v6853_v61 = vadd.f32 %v1393_v48, %v1389_v16  ;;  %v1370_v12 = vmul.f32 %v6849_v46, %v6801_v52 }
 0x1de   :  { %1677 = vmatpush1.msra.mxu0 %v1409_v57  ;;  %v1425_v8 = vmul.f32 %v1409_v57, %v6749_v25  ;;  %v1433_v17 = vmul.f32 %v1409_v57, %v6753_v10  ;;  %v1421_v19 = vmul.f32 %v6853_v61, %v6753_v10  ;;  %v1437_v13 = vmul.f32 %v6853_v61, %v6749_v25 }
 0x1df   :  { %1678 = vmatprep.subr.mxu0 %v9022_v30  ;;  %v6888_v16 = vsub.f32 %v1366_v54, %v1370_v12 }
 0x1e1   :  { %v6072_v37 = vpop.eup %6071 }
 0x1e2   :  { %v6074_v40 = vpop.eup %6073  ;;  %v766_v41 = vxor.u32 2147483648, %v6072_v37 }
 0x1e3   :  { %v763_v4 = vxor.u32 2147483648, %v6074_v40 }
 0x1e4   :  { %v767_v50 = vsel %vm765_vm14, %v766_v41, %v6074_v40  ;;  %v1180_v63 = vsel %vm1178_vm1, %v766_v41, %v6074_v40 }
 0x1e5   :  { %v764_v51 = vsel %vm762_vm2, %v6072_v37, %v763_v4  ;;  %v1177_v27 = vsel %vm1175_vm0, %v6072_v37, %v763_v4  ;;  %v1362_v37 = vadd.f32 %v1358_v7, %v1354_v0  ;;  %v6898_v4 = vadd.f32 %v1425_v8, %v1421_v19 }
 0x1e6   :  { %v768_v18 = vsel %vm761_vm3, %v764_v51, %v767_v50  ;;  %v1181_v58 = vsel %vm1174_vm15, %v1177_v27, %v1180_v63  ;;  %v6900_v50 = vsub.f32 %v1433_v17, %v1437_v13 }
 0x1e7   :  { %v6861_v1 = vsel %vm758_vm13, nan, %v768_v18  ;;  %v6865_v11 = vsel %vm758_vm13, nan, %v1181_v58  ;;  %v1386_v27 = vmul.f32 %v1362_v37, %v6803_v59  ;;  %v1390_v18 = vmul.f32 %v6888_v16, %v6801_v52 }
 0x1e8   :  { %5797 = vmatprep.subr.mxu1 %v6865_v11  ;;  %v1296_v56 = vmul.f32 %v6865_v11, %v6861_v1  ;;  %v1304_v28 = vmul.f32 %v6865_v11, %v6865_v11  ;;  %v1308_v32 = vmul.f32 %v6861_v1, %v6861_v1  ;;  %v1398_v58 = vmul.f32 %v6888_v16, %v6803_v59 }
 0x1e9   :  { %v1402_v0 = vmul.f32 %v1362_v37, %v6801_v52  ;;  %v6920_v13 = vadd.f32 %v1390_v18, %v1386_v27 }
 0x1ea   :  { %v6884_v39 = vadd.f32 %v1296_v56, %v1296_v56  ;;  %v6886_v23 = vsub.f32 %v1304_v28, %v1308_v32  ;;  %v1453_v28 = vmul.f32 %v6898_v4, %v6753_v10  ;;  %v1457_v32 = vmul.f32 %v6900_v50, %v6749_v25 }
 0x1eb   :  { %v1406_v19 = vsub.f32 %v1398_v58, %v1402_v0  ;;  %v1418_v58 = vmul.f32 %v6920_v13, %v6803_v59  ;;  %v1434_v0 = vmul.f32 %v6920_v13, %v6801_v52 }
 0x1ec   :  { %v1324_v48 = vmul.f32 %v6884_v39, %v6865_v11  ;;  %v1328_v40 = vmul.f32 %v6886_v23, %v6861_v1  ;;  %v1336_v57 = vmul.f32 %v6886_v23, %v6865_v11  ;;  %v1340_v41 = vmul.f32 %v6884_v39, %v6861_v1 }
 0x1ed   :  { %v1461_v38 = vadd.f32 %v1457_v32, %v1453_v28  ;;  %v1422_v27 = vmul.f32 %v1406_v19, %v6801_v52  ;;  %v1430_v18 = vmul.f32 %v1406_v19, %v6803_v59 }
 0x1ee   :  { %v1332_v63 = vadd.f32 %v1328_v40, %v1324_v48  ;;  %v6902_v51 = vsub.f32 %v1336_v57, %v1340_v41 }
 0x1ef   :  { %v6949_v28 = vadd.f32 %v1422_v27, %v1418_v58 }
 0x1f0   :  { %v1356_v7 = vmul.f32 %v1332_v63, %v6865_v11  ;;  %v1360_v54 = vmul.f32 %v6902_v51, %v6861_v1  ;;  %v1368_v12 = vmul.f32 %v6902_v51, %v6865_v11  ;;  %v1372_v56 = vmul.f32 %v1332_v63, %v6861_v1 }
 0x1f2   :  { %v1364_v8 = vadd.f32 %v1360_v54, %v1356_v7  ;;  %v1376_v17 = vsub.f32 %v1368_v12, %v1372_v56 }
 0x1f4   :  { %v1388_v48 = vmul.f32 %v1364_v8, %v6865_v11  ;;  %5798 = vmatpush3.msra.mxu1 %v1364_v8  ;;  %v1392_v40 = vmul.f32 %v1376_v17, %v6861_v1  ;;  %v1400_v57 = vmul.f32 %v1376_v17, %v6865_v11  ;;  %v1404_v41 = vmul.f32 %v1364_v8, %v6861_v1 }
 0x1f5   :  { %5799 = vmatprep.subr.mxu1 %v6607_v62 }
 0x1f6   :  { %5800 = vmatpush3.msra.mxu1 %v6691_v3  ;;  %v1408_v31 = vsub.f32 %v1400_v57, %v1404_v41  ;;  %v6928_v7 = vadd.f32 %v1392_v40, %v1388_v48 }
 0x1f7   :  { %5801 = vmatprep.subr.mxu1 %v6803_v59 }
 0x1f8   :  { %5802 = vmatpush3.msra.mxu1 %v1362_v37  ;;  %v1424_v62 = vmul.f32 %v1408_v31, %v6861_v1  ;;  %v1432_v3 = vmul.f32 %v1408_v31, %v6865_v11  ;;  %1679 = vmatpush1.msra.mxu0 %v1408_v31  ;;  %v1420_v54 = vmul.f32 %v6928_v7, %v6865_v11 }
 0x1f9   :  { %1680 = vmatprep.subr.mxu0 %v9022_v30  ;;  %5803 = vmatprep.subr.mxu1 %v1461_v38  ;;  %v1436_v12 = vmul.f32 %v6928_v7, %v6861_v1  ;;  %v6951_v31 = vsub.f32 %v1430_v18, %v1434_v0 }
 0x1fa   :  { %1681 = vmatpush1.msra.mxu0 %v6713_v9  ;;  %5804 = vmatpush3.msra.mxu1 %v6799_v43  ;;  %v1428_v56 = vadd.f32 %v1424_v62, %v1420_v54  ;;  %v1450_v43 = vmul.f32 %v6949_v28, %v6803_v59 }
 0x1fb   :  { %1682 = vmatprep.subr.mxu0 %v9022_v30  ;;  %v6947_v37 = vsub.f32 %v1432_v3, %v1436_v12  ;;  %v1454_v8 = vmul.f32 %v6951_v31, %v6801_v52 }
 0x1fc   :  { %1683 = vmatpush1.msra.mxu0 %v1406_v19  ;;  %v1452_v32 = vmul.f32 %v1428_v56, %v6865_v11 }
 0x1fd   :  { %1684 = vmatprep.subr.mxu0 %v9022_v30  ;;  %v1456_v38 = vmul.f32 %v6947_v37, %v6861_v1 }
 0x1fe   :  { %1685 = vmatpush1.msra.mxu0 %v6825_v35  ;;  %v1458_v35 = vadd.f32 %v1454_v8, %v1450_v43 }
 0x1ff   :  { %1686 = vmatprep.subr.mxu0 %v9022_v30  ;;  %v1460_v9 = vadd.f32 %v1456_v38, %v1452_v32 }
 0x200   :  { %1687 = vmatpush1.msra.mxu0 %v1376_v17 }
 0x201   :  { %5805 = vmatprep.subr.mxu1 %v1460_v9  ;;  %1688 = vmatprep.subr.mxu0 %v9022_v30 }
 0x202   :  { %5806 = vmatpush3.msra.mxu1 %v1332_v63  ;;  %1689 = vmatpush1.msra.mxu0 %v6703_v20  ;;  %v1468_v20 = vmul.f32 %v1428_v56, %v6861_v1 }
 0x203   :  { %5807 = vmatprep.subr.mxu1 %v6766_v53  ;;  %1690 = vmatprep.subr.mxu0 %v9022_v30  ;;  %v1462_v53 = vmul.f32 %v6951_v31, %v6803_v59  ;;  %v1490_v59 = vld [vmem:[%s9001_s3 + $0x40] sm:$0xff] }
 0x204   :  { %5808 = vmatpush3.msra.mxu1 %v6670_v44  ;;  %1691 = vmatpush1.msra.mxu0 %v6888_v16  ;;  %v1469_v44 = vmul.f32 %v6898_v4, %v6749_v25 }
 0x205   :  { %5809 = vmatprep.subr.mxu1 %v1458_v35  ;;  %1692 = vmatprep.subr.mxu0 %v9022_v30 }
 0x206   :  { %5810 = vmatpush3.msra.mxu1 %v6849_v46  ;;  %1693 = vmatpush1.msra.mxu0 %v6808_v45  ;;  %v1491_v45 = vld [vmem:[%s9001_s3 + $0x48] sm:$0xff]  ;;  %v1492_v46 = vld [vmem:[%s9001_s3 + $0x50] sm:$0xff] }
 0x207   :  { %5811 = vmatprep.subr.mxu1 %v6898_v4  ;;  %1694 = vmatprep.subr.mxu0 %v9022_v30 }
 0x208   :  { %5812 = vmatpush3.msra.mxu1 %v6772_v5  ;;  %1695 = vmatpush1.msra.mxu0 %v6902_v51  ;;  %v1466_v5 = vmul.f32 %v6949_v28, %v6801_v52 }
 0x209   :  { %5813 = vmatprep.subr.mxu1 %v1428_v56  ;;  %1696 = vmatprep.subr.mxu0 %v9022_v30 }
 0x20a   :  { %5814 = vmatpush3.msra.mxu1 %v6884_v39  ;;  %1697 = vmatpush1.msra.mxu0 %v6679_v47  ;;  %v1464_v47 = vmul.f32 %v6947_v37, %v6865_v11 }
 0x20b   :  { %5815 = vmatprep.subr.mxu1 %v6726_v42  ;;  %1698 = vmatprep.subr.mxu0 %v9022_v30  ;;  %v1499_v42 = vld [vmem:[#allocation2 + $0x8] sm:$0xff] }
 0x20c   :  { %5816 = vmatpush3.msra.mxu1 %v6639_v15  ;;  %1699 = vmatpush1.msra.mxu0 %v6851_v60  ;;  %v1465_v15 = vmul.f32 %v6900_v50, %v6753_v10  ;;  %v1497_v60 = vld [vmem:[%s9001_s3 + $0x78] sm:$0xff] }
 0x20d   :  { %5817 = vmatprep.subr.mxu1 %v6949_v28  ;;  %1700 = vmatprep.subr.mxu0 %v9022_v30 }
 0x20e   :  { %5818 = vmatpush3.msra.mxu1 %v6832_v14  ;;  %1701 = vmatpush1.msra.mxu0 %v6774_v55  ;;  %v1473_v10 = vsub.f32 %v1465_v15, %v1469_v44  ;;  %v1486_v55 = vld [vmem:[%s9001_s3 + $0x20] sm:$0xff]  ;;  %v1495_v14 = vld [vmem:[%s9001_s3 + $0x68] sm:$0xff] }
 0x20f   :  { %5819 = vmatprep.subr.mxu1 %v6853_v61  ;;  %1702 = vmatprep.subr.mxu0 %v9022_v30  ;;  %v1496_v61 = vld [vmem:[%s9001_s3 + $0x70] sm:$0xff] }
 0x210   :  { %5820 = vmatpush3.msra.mxu1 %v6749_v25  ;;  %1703 = vmatpush1.msra.mxu0 %v6886_v23  ;;  %v1482_v25 = vld [vmem:[%s9001_s3] sm:$0xff]  ;;  %v1571_v23 = vpop.permute.xlu1 %1570 }
 0x211   :  { %5821 = vmatprep.subr.mxu1 %v6928_v7  ;;  %1704 = vmatprep.subr.mxu0 %v9022_v30 }
 0x212   :  { %5822 = vmatpush3.msra.mxu1 %v6861_v1  ;;  %1705 = vmatpush1.msra.mxu0 %v6653_v6  ;;  %v1487_v6 = vld [vmem:[%s9001_s3 + $0x28] sm:$0xff] }
 0x213   :  { %5823 = vmatprep.subr.mxu1 %v6715_v36  ;;  %1706 = vmatprep.subr.mxu0 %v9022_v30  ;;  %v1472_v36 = vsub.f32 %v1464_v47, %v1468_v20 }
 0x214   :  { %5824 = vmatpush3.msra.mxu1 %v1499_v42  ;;  %1707 = vmatpush1.msra.mxu0 %v6834_v21  ;;  %v1493_v21 = vld [vmem:[%s9001_s3 + $0x58] sm:$0xff]  ;;  %v1561_v51 = vpop.permute.xlu1 %1560 }
 0x215   :  { %5825 = vmatprep.subr.mxu1 %v6920_v13  ;;  %1724 = vmatprep.subr.mxu0 %v9022_v30 }
 0x216   :  { %5826 = vmatpush3.msra.mxu1 %v6801_v52  ;;  %1725 = vmatpush2.msra.mxu0 %v1473_v10  ;;  %v1470_v52 = vsub.f32 %v1462_v53, %v1466_v5 }
 0x217   :  { %1656 = vmatmul.mubr.f32.vlgmr.msra.gmra.mxu1 %v1482_v25  ;;  %1726 = vmatprep.subr.mxu0 %v9022_v30 }
 0x218   :  { %1727 = vmatpush2.msra.mxu0 %v1472_v36  ;;  %1660 = vmatprep.mubr.f32.mxu1 %v1487_v6 }
 0x219   :  { %1728 = vmatprep.subr.mxu0 %v9022_v30 }
 0x21a   :  { %1729 = vmatpush2.msra.mxu0 %v1471_v49  ;;  %v1489_v49 = vld [vmem:[%s9001_s3 + $0x38] sm:$0xff] }
 0x21b   :  { %1661 = vmatmul.mubr.f32.gmra.mxu1 %v1486_v55  ;;  %1730 = vmatprep.subr.mxu0 %v9022_v30 }
 0x21c   :  { %1731 = vmatpush2.msra.mxu0 %v1470_v52  ;;  %1665 = vmatprep.mubr.f32.mxu1 %v1491_v45 }
 0x21d   :  { %1732 = vmatprep.subr.mxu0 %v9022_v30 }
 0x21e   :  { %1733 = vmatpush2.msra.mxu0 %v6900_v50  ;;  %v7072_v50 = vpop.permute.xlu0 %1575 }
 0x21f   :  { %1666 = vmatmul.mubr.f32.gmra.mxu1 %v1490_v59  ;;  %1734 = vmatprep.subr.mxu0 %v9022_v30 }
 0x220   :  { %1735 = vmatpush2.msra.mxu0 %v6947_v37  ;;  %1670 = vmatprep.mubr.f32.mxu1 %v1495_v14 }
 0x221   :  { %1736 = vmatprep.subr.mxu0 %v9022_v30 }
 0x222   :  { %1737 = vmatpush2.msra.mxu0 %v6732_v2  ;;  %v1488_v2 = vld [vmem:[%s9001_s3 + $0x30] sm:$0xff]  ;;  %v1566_v57 = vpop.permute.xlu0 %1565 }
 0x223   :  { %1671 = vmatmul.mubr.f32.gmra.mxu1 %v1494_v33  ;;  %1738 = vmatprep.subr.mxu0 %v9022_v30  ;;  %v9034_v33 = vmov 920167782  }
 0x224   :  { %1739 = vmatpush2.msra.mxu0 %v6951_v31 }
 0x225   :  { %1741 = vmatmul.mubr.f32.vlgmr.msra.gmra.mxu0 %v1484_v34  ;;  %2978 = vmatprep.subr.mxu0 %v9022_v30 }
 0x226   :  { %5681 = vmatprep.mubr.msk.f32.mxu0 %vm1578_vm6, %v1489_v49 }
 0x229   :  { %1746 = vmatmul.mubr.f32.gmra.mxu0 %v1488_v2 }
 0x22a   :  { %5682 = vmatprep.mubr.msk.f32.mxu0 %vm1578_vm6, %v1493_v21 }
 0x22d   :  { %1751 = vmatmul.mubr.f32.gmra.mxu0 %v1492_v46 }
 0x22e   :  { %5683 = vmatprep.mubr.msk.f32.mxu0 %vm1578_vm6, %v1497_v60 }
 0x231   :  { %1756 = vmatmul.mubr.f32.gmra.mxu0 %v1496_v61  ;;  %v9035_v61 = vmov 1326507024  }
 0x2d7   :  { %v5827_v1 = vpop.f32.mrf.mxu1 }
 0x2d9   :  { %v5828_v11 = vpop.f32.mrf.mxu1 }
 0x2da   :  { %v5829_v4 = vadd.f32 %v5828_v11, %v5827_v1 }
 0x2db   :  { %v5830_v39 = vpop.f32.mrf.mxu1 }
 0x2dc   :  { %v1658_v19 = vadd.f32 %v5829_v4, %v1561_v51 }
 0x2dd   :  { %v5831_v16 = vpop.f32.mrf.mxu1 }
 0x2de   :  { %v5832_v17 = vadd.f32 %v5831_v16, %v5830_v39 }
 0x2df   :  { %v5833_v63 = vpop.f32.mrf.mxu1 }
 0x2e0   :  { %v1663_v18 = vadd.f32 %v5832_v17, %v1566_v57 }
 0x2e1   :  { %v5834_v48 = vpop.f32.mrf.mxu1 }
 0x2e2   :  { %v5835_v58 = vadd.f32 %v5834_v48, %v5833_v63 }
 0x2e4   :  { %v1668_v31 = vadd.f32 %v5835_v58, %v1571_v23 }
 0x2e5   :  { %v1742_v13 = vpop.f32.mrf.mxu0 }
 0x2e6   :  { %v7074_v40 = vadd.f32 %v1742_v13, %v1658_v19 }
 0x2e7   :  { %v1744_v41 = vpop.f32.mrf.mxu0 }
 0x2e8   :  { %v1761_v7 = vand.u32 2147483647, %v7074_v40  ;;  %v1764_v27 = vand.u32 2139095040, %v7074_v40 }
 0x2e9   :  { %v1747_v0 = vpop.f32.mrf.mxu0 }
 0x2ea   :  { %v1765_v62 = vshrl.u32 %v1764_v27, 23  ;;  %v7078_v3 = vadd.f32 %v1747_v0, %v1663_v18  ;;  %v1768_v54 = vand.u32 8388607, %v1761_v7 }
 0x2eb   :  { %v1749_v12 = vpop.f32.mrf.mxu0 }
 0x2ec   :  { %v5684_v56 = vadd.s32 4294967169, %v1765_v62  ;;  %v1865_v37 = vand.u32 2147483647, %v7078_v3  ;;  %v1868_v28 = vand.u32 2139095040, %v7078_v3  ;;  %v1769_v9 = vor.u32 8388608, %v1768_v54 }
 0x2ed   :  { %v1752_v32 = vpop.f32.mrf.mxu0 }
 0x2ee   :  { %v1771_v38 = vadd.s32 1, %v5684_v56  ;;  %v1869_v43 = vshrl.u32 %v1868_v28, 23  ;;  %v1872_v8 = vand.u32 8388607, %v1865_v37  ;;  %v7086_v35 = vadd.f32 %v1752_v32, %v1668_v31 }
 0x2ef   :  { %v1754_v15 = vpop.f32.mrf.mxu0  ;;  %v7090_v10 = vshll.u32 %v1769_v9, 8 }
 0x2f0   :  { %vm1772_vm4 = vcmp.gt.s32.totalorder %v1771_v38, 0  ;;  %v5688_v47 = vadd.s32 4294967169, %v1869_v43  ;;  %v1873_v6 = vor.u32 8388608, %v1872_v8  ;;  %v1972_v36 = vand.u32 2139095040, %v7086_v35 }
 0x2f1   :  { %v1773_v44 = vsel %vm1772_vm4, %v1771_v38, 0  ;;  %v7088_v20 = vpop.f32.mrf.mxu0 }
 0x2f2   :  { %v1774_v42 = vshrl.u32 %v1773_v44, 5  ;;  %v1775_v25 = vand.u32 31, %v1773_v44  ;;  %v1875_v52 = vadd.s32 1, %v5688_v47  ;;  %v1913_v43 = vshll.u32 %v1873_v6, 8 }
 0x2f3   :  { %v1759_v53 = vpop.f32.mrf.mxu0  ;;  %v1973_v8 = vshrl.u32 %v1972_v36, 23 }
 0x2f4   :  { %v1776_v5 = vsub.s32 32, %v1775_v25  ;;  %v1778_v55 = vshll.u32 %v9020_v22, %v1775_v25  ;;  %v1781_v45 = vshll.u32 %v9018_v24, %v1775_v25  ;;  %v1784_v59 = vshll.u32 %v9016_v26, %v1775_v25 }
 0x2f5   :  { %v1787_v14 = vshll.u32 %v9014_v29, %v1775_v25  ;;  %v1790_v34 = vshll.u32 %v9034_v33, %v1775_v25  ;;  %vm1793_vm5 = vcmp.lt.s32.totalorder %v1774_v42, 1  ;;  %vm1794_vm7 = vcmp.lt.s32.totalorder %v1774_v42, 2 }
 0x2f6   :  { %v1779_v49 = vshrl.u32 %v9018_v24, %v1776_v5  ;;  %v1782_v2 = vshrl.u32 %v9016_v26, %v1776_v5  ;;  %v1785_v21 = vshrl.u32 %v9014_v29, %v1776_v5  ;;  %v1777_v46 = vshrl.u32 %v9020_v22, %v1776_v5 }
 0x2f7   :  { %v1788_v60 = vshrl.u32 %v9034_v33, %v1776_v5  ;;  %v1791_v1 = vshrl.u32 %v9035_v61, %v1776_v5  ;;  %vm1795_vm8 = vcmp.lt.s32.totalorder %v1774_v42, 3  ;;  %vm1876_vm9 = vcmp.gt.s32.totalorder %v1875_v52, 0 }
 0x2f8   :  { %v1780_v11 = vor.u32 %v1779_v49, %v1778_v55  ;;  %v1783_v39 = vor.u32 %v1782_v2, %v1781_v45  ;;  %v1786_v23 = vor.u32 %v1785_v21, %v1784_v59  ;;  %vm1796_vm10 = vcmp.lt.s32.totalorder %v1774_v42, 4 }
 0x2f9   :  { %v1789_v16 = vor.u32 %v1788_v60, %v1787_v14  ;;  %v1792_v4 = vor.u32 %v1791_v1, %v1790_v34  ;;  %v1877_v63 = vsel %vm1876_vm9, %v1875_v52, 0  ;;  %vm1762_vm9 = vcmp.le.f32.partialorder %v1761_v7, 0.7853982 }
 0x2fa   :  { %v1797_v51 = vsel %vm1793_vm5, %v1777_v46, %v1780_v11  ;;  %v1798_v17 = vsel %vm1796_vm10, %v1786_v23, 2102212464  ;;  %v1801_v19 = vsel %vm1793_vm5, %v1780_v11, %v1783_v39  ;;  %v1805_v13 = vsel %vm1793_vm5, %v1783_v39, %v1786_v23 }
 0x2fb   :  { %v1799_v48 = vsel %vm1795_vm8, %v1783_v39, %v1798_v17  ;;  %v1802_v57 = vsel %vm1796_vm10, %v1789_v16, 920167782  ;;  %v1806_v41 = vsel %vm1796_vm10, %v1792_v4, 1326507024  ;;  %v1878_v27 = vshrl.u32 %v1877_v63, 5 }
 0x2fc   :  { %v1800_v18 = vsel %vm1794_vm7, %v1797_v51, %v1799_v48  ;;  %v1803_v58 = vsel %vm1795_vm8, %v1786_v23, %v1802_v57  ;;  %v1807_v0 = vsel %vm1795_vm8, %v1789_v16, %v1806_v41  ;;  %v1879_v62 = vand.u32 31, %v1877_v63 }
 0x2fd   :  { %v1804_v54 = vsel %vm1794_vm7, %v1801_v19, %v1803_v58  ;;  %v1808_v12 = vsel %vm1794_vm7, %v1805_v13, %v1807_v0  ;;  %v1816_v38 = vmul.u32 %v7090_v10, %v1800_v18  ;;  %vm1897_vm11 = vcmp.lt.s32.totalorder %v1878_v27, 1 }
 0x2fe   :  { %v7114_v56 = vmul.u32.u64.low %v7090_v10, %v1808_v12  ;;  %v7115_v28 = vmul.u32.u64.high %v7090_v10, %v1808_v12, %v7114_v56  ;;  %v7118_v31 = vmul.u32.u64.low %v7090_v10, %v1804_v54  ;;  %v7119_v32 = vmul.u32.u64.high %v7090_v10, %v1804_v54, %v7118_v31 }
 0x2ff   :  { %v1880_v9 = vsub.s32 32, %v1879_v62  ;;  %v1882_v15 = vshll.u32 %v9020_v22, %v1879_v62  ;;  %v1885_v44 = vshll.u32 %v9018_v24, %v1879_v62  ;;  %v1888_v47 = vshll.u32 %v9016_v26, %v1879_v62 }
 0x300   :  { %v1891_v5 = vshll.u32 %v9014_v29, %v1879_v62  ;;  %vm1818_vm12 = vc.u32 %v7115_v28, %v7118_v31  ;;  %v1819_v10 = vadd.s32 1, %v7119_v32  ;;  %v1894_v36 = vshll.u32 %v9034_v33, %v1879_v62 }
 0x301   :  { %v1883_v42 = vshrl.u32 %v9018_v24, %v1880_v9  ;;  %v1886_v25 = vshrl.u32 %v9016_v26, %v1880_v9  ;;  %v1889_v53 = vshrl.u32 %v9014_v29, %v1880_v9  ;;  %v1892_v6 = vshrl.u32 %v9034_v33, %v1880_v9 }
 0x302   :  { %v1895_v59 = vshrl.u32 %v9035_v61, %v1880_v9  ;;  %v1820_v14 = vsel %vm1818_vm12, %v1819_v10, %v7119_v32  ;;  %vm1899_vm13 = vcmp.lt.s32.totalorder %v1878_v27, 3  ;;  %vm1900_vm14 = vcmp.lt.s32.totalorder %v1878_v27, 4 }
 0x303   :  { %v1884_v55 = vor.u32 %v1883_v42, %v1882_v15  ;;  %v1887_v45 = vor.u32 %v1886_v25, %v1885_v44  ;;  %v1890_v52 = vor.u32 %v1889_v53, %v1888_v47  ;;  %v1893_v34 = vor.u32 %v1892_v6, %v1891_v5 }
 0x304   :  { %v1821_v49 = vadd.s32 %v1820_v14, %v1816_v38  ;;  %v1881_v2 = vshrl.u32 %v9020_v22, %v1880_v9  ;;  %v1896_v21 = vor.u32 %v1895_v59, %v1894_v36  ;;  %v5692_v39 = vadd.s32 4294967169, %v1973_v8  ;;  %v5836_v38 = vpop.f32.mrf.mxu1 }
 0x305   :  { %v1902_v46 = vsel %vm1900_vm14, %v1890_v52, 2102212464  ;;  %v1905_v60 = vsel %vm1897_vm11, %v1884_v55, %v1887_v45  ;;  %v1906_v1 = vsel %vm1900_vm14, %v1893_v34, 920167782  ;;  %v1909_v11 = vsel %vm1897_vm11, %v1887_v45, %v1890_v52 }
 0x306   :  { %v1822_v23 = vadd.s32 536870912, %v1821_v49  ;;  %vm1898_vm15 = vcmp.lt.s32.totalorder %v1878_v27, 2  ;;  %v1907_v16 = vsel %vm1899_vm13, %v1890_v52, %v1906_v1  ;;  %v1910_v4 = vsel %vm1900_vm14, %v1896_v21, 1326507024  ;;  %v5837_v53 = vpop.f32.mrf.mxu1 }
 0x307   :  { %v1901_v63 = vsel %vm1897_vm11, %v1881_v2, %v1884_v55  ;;  %v1903_v51 = vsel %vm1899_vm13, %v1887_v45, %v1902_v46  ;;  %v1908_v17 = vsel %vm1898_vm15, %v1905_v60, %v1907_v16  ;;  %v1911_v19 = vsel %vm1899_vm13, %v1893_v34, %v1910_v4 }
 0x308   :  { %v7144_v13 = vshrl.u32 %v1822_v23, 30  ;;  %v1912_v48 = vsel %vm1898_vm15, %v1909_v11, %v1911_v19  ;;  %v7146_v57 = vmul.u32.u64.low %v1913_v43, %v1908_v17  ;;  %v7147_v41 = vmul.u32.u64.high %v1913_v43, %v1908_v17, %v7146_v57 }
 0x309   :  { %v7150_v18 = vmul.u32.u64.low %v1913_v43, %v1912_v48  ;;  %v7151_v58 = vmul.u32.u64.high %v1913_v43, %v1912_v48, %v7150_v18  ;;  %v1979_v0 = vadd.s32 1, %v5692_v39  ;;  %v1904_v54 = vsel %vm1898_vm15, %v1901_v63, %v1903_v51 }
 0x30a   :  { %v1824_v62 = vshll.u32 %v7144_v13, 30  ;;  %v1923_v56 = vadd.s32 1, %v7147_v41  ;;  %v1920_v32 = vmul.u32 %v1913_v43, %v1904_v54  ;;  %v1969_v15 = vand.u32 2147483647, %v7086_v35 }
 0x30b   :  { %vm1980_vm1 = vcmp.gt.s32.totalorder %v1979_v0, 0  ;;  %vm1922_vm2 = vc.u32 %v7151_v58, %v7146_v57  ;;  %v5838_v55 = vadd.f32 %v5837_v53, %v5836_v38  ;;  %v1817_v45 = vadd.s32 %v7118_v31, %v7115_v28 }
 0x30c   :  { %v1825_v12 = vsub.s32 %v1821_v49, %v1824_v62  ;;  %v1981_v27 = vsel %vm1980_vm1, %v1979_v0, 0  ;;  %v1924_v8 = vsel %vm1922_vm2, %v1923_v56, %v7147_v41  ;;  %v1976_v10 = vand.u32 8388607, %v1969_v15 }
 0x30d   :  { %v1925_v44 = vadd.s32 %v1924_v8, %v1920_v32  ;;  %v1983_v47 = vand.u32 31, %v1981_v27  ;;  %v7166_v14 = vshrl.u32 %v1981_v27, 5  ;;  %v1673_v27 = vadd.f32 %v5838_v55, %v7072_v50 }
 0x30e   :  { %v1827_v9 = vsub.s32 0, %v1825_v12  ;;  %v1977_v59 = vor.u32 8388608, %v1976_v10  ;;  %vm1763_vm8 = vcmp.lt.s32.totalorder %v7074_v40, 0  ;;  %vm1853_vm13 = vweird.f32 %v7074_v40 }
 0x30f   :  { %v1926_v25 = vadd.s32 536870912, %v1925_v44  ;;  %v1984_v6 = vsub.s32 32, %v1983_v47  ;;  %v1986_v11 = vshll.u32 %v9020_v22, %v1983_v47  ;;  %v1989_v39 = vshll.u32 %v9018_v24, %v1983_v47 }
 0x310   :  { %v5685_v42 = vmin.u32 %v1827_v9, %v1825_v12  ;;  %v1992_v23 = vshll.u32 %v9016_v26, %v1983_v47  ;;  %v1995_v16 = vshll.u32 %v9014_v29, %v1983_v47  ;;  %v1998_v18 = vshll.u32 %v9034_v33, %v1983_v47 }
 0x311   :  { %v7161_v43 = vshrl.u32 %v1926_v25, 30  ;;  %v1987_v34 = vshrl.u32 %v9018_v24, %v1984_v6  ;;  %v1990_v21 = vshrl.u32 %v9016_v26, %v1984_v6  ;;  %v1996_v46 = vshrl.u32 %v9034_v33, %v1984_v6 }
 0x312   :  { %v1829_v5 = vclz %v5685_v42  ;;  %v1993_v28 = vshrl.u32 %v9014_v29, %v1984_v6  ;;  %v1999_v17 = vshrl.u32 %v9035_v61, %v1984_v6  ;;  %v2017_v56 = vshll.u32 %v1977_v59, 8 }
 0x313   :  { %v1928_v52 = vshll.u32 %v7161_v43, 30  ;;  %v1988_v19 = vor.u32 %v1987_v34, %v1986_v11  ;;  %v1991_v48 = vor.u32 %v1990_v21, %v1989_v39  ;;  %v1997_v41 = vor.u32 %v1996_v46, %v1995_v16 }
 0x314   :  { %v5686_v36 = vadd.s32 4294967294, %v1829_v5  ;;  %v1994_v54 = vor.u32 %v1993_v28, %v1992_v23  ;;  %vm2001_vm3 = vcmp.lt.s32.totalorder %v7166_v14, 1  ;;  %vm2004_vm4 = vcmp.lt.s32.totalorder %v7166_v14, 4 }
 0x315   :  { %v7169_v2 = vsub.s32 %v1925_v44, %v1928_v52  ;;  %vm2003_vm5 = vcmp.lt.s32.totalorder %v7166_v14, 3  ;;  %v2009_v9 = vsel %vm2001_vm3, %v1988_v19, %v1991_v48  ;;  %v2010_v8 = vsel %vm2004_vm4, %v1997_v41, 920167782 }
 0x316   :  { %vm5687_vm0 = vcmp.lt.s32.totalorder %v5686_v36, 0  ;;  %v7189_v44 = vadd.f32 %v7088_v20, %v1673_v27  ;;  %v2011_v50 = vsel %vm2003_vm5, %v1994_v54, %v2010_v8  ;;  %v2013_v25 = vsel %vm2001_vm3, %v1991_v48, %v1994_v54 }
 0x317   :  { %v1832_v49 = vsel %vm5687_vm0, 0, %v5686_v36  ;;  %v1931_v51 = vsub.s32 0, %v7169_v2  ;;  %v1985_v53 = vshrl.u32 %v9020_v22, %v1984_v6  ;;  %vm2002_vm7 = vcmp.lt.s32.totalorder %v7166_v14, 2 }
 0x318   :  { %v1833_v60 = vsub.s32 32, %v1832_v49  ;;  %v1837_v1 = vsub.s32 4294967266, %v1832_v49  ;;  %v1834_v31 = vshll.u32 %v1825_v12, %v1832_v49  ;;  %v2000_v12 = vor.u32 %v1999_v17, %v1998_v18 }
 0x319   :  { %v5689_v38 = vmin.u32 %v1931_v51, %v7169_v2  ;;  %v2006_v5 = vsel %vm2004_vm4, %v1994_v54, 2102212464  ;;  %v2012_v20 = vsel %vm2002_vm7, %v2009_v9, %v2011_v50  ;;  %v1847_v52 = vsub.s32 4, %v7144_v13 }
 0x31a   :  { %v1835_v4 = vshrl.u32 %v1817_v45, %v1833_v60  ;;  %v1838_v63 = vadd.s32 127, %v1837_v1  ;;  %v2014_v10 = vsel %vm2004_vm4, %v2000_v12, 1326507024  ;;  %v2005_v59 = vsel %vm2001_vm3, %v1985_v53, %v1988_v19 }
 0x31b   :  { %v1933_v55 = vclz %v5689_v38  ;;  %v2015_v45 = vsel %vm2003_vm5, %v1997_v41, %v2014_v10  ;;  %v2007_v49 = vsel %vm2003_vm5, %v1991_v48, %v2006_v5  ;;  %v1848_v39 = vsel %vm1763_vm8, %v1847_v52, %v7144_v13 }
 0x31c   :  { %v1836_v0 = vor.u32 %v1835_v4, %v1834_v31  ;;  %v1839_v62 = vshll.u32 %v1838_v63, 23  ;;  %v2016_v6 = vsel %vm2002_vm7, %v2013_v25, %v2015_v45  ;;  %v2076_v31 = vand.u32 2139095040, %v7189_v44 }
 0x31d   :  { %v7208_v21 = vmul.u32.u64.low %v2017_v56, %v2016_v6  ;;  %v7209_v46 = vmul.u32.u64.high %v2017_v56, %v2016_v6, %v7208_v21  ;;  %v7212_v60 = vmul.u32.u64.low %v2017_v56, %v2012_v20  ;;  %v7213_v1 = vmul.u32.u64.high %v2017_v56, %v2012_v20, %v7212_v60 }
 0x31e   :  { %v1840_v32 = vor.u32 4788187, %v1839_v62  ;;  %v1843_v42 = vcvt.s32.f32 %v1836_v0  ;;  %v5690_v28 = vadd.s32 4294967294, %v1933_v55  ;;  %v2008_v16 = vsel %vm2002_vm7, %v2005_v59, %v2007_v49  ;;  %v2786_v59 = vld [vmem:[#allocation4 + $0x8] sm:$0xff] }
 0x31f   :  { %vm2026_vm10 = vc.u32 %v7209_v46, %v7212_v60  ;;  %v2077_v4 = vshrl.u32 %v2076_v31, 23  ;;  %v2027_v63 = vadd.s32 1, %v7213_v1  ;;  %v1850_v7 = vsel %vm1762_vm9, 0, %v1848_v39  ;;  %2957 = vmatprep.mubr.f32.mxu1 %v2786_v59 }
 0x320   :  { %v1841_v47 = vand.u32 2147483647, %v1840_v32  ;;  %vm5691_vm11 = vcmp.lt.s32.totalorder %v5690_v28, 0  ;;  %v2024_v51 = vmul.u32 %v2017_v56, %v2008_v16  ;;  %v1854_v41 = vadd.s32 3, %v1850_v7 }
 0x321   :  { %v5696_v17 = vadd.s32 4294967169, %v2077_v4  ;;  %v2028_v19 = vsel %vm2026_vm10, %v2027_v63, %v7213_v1  ;;  %v1936_v18 = vsel %vm5691_vm11, 0, %v5690_v28  ;;  %v2270_v27 = vand.u32 3, %v1850_v7 }
 0x322   :  { %v1844_v36 = vmul.f32 %v1843_v42, %v1841_v47  ;;  %v2029_v13 = vadd.s32 %v2028_v19, %v2024_v51  ;;  %v1941_v0 = vsub.s32 4294967266, %v1936_v18  ;;  %v1855_v12 = vand.u32 3, %v1854_v41 }
 0x323   :  { %v2083_v48 = vadd.s32 1, %v5696_v17  ;;  %v1937_v32 = vsub.s32 32, %v1936_v18  ;;  %v1921_v56 = vadd.s32 %v7146_v57, %v7151_v58  ;;  %vm2272_vm15 = vcmp.eq.s32.totalorder %v2270_v27, 0 }
 0x324   :  { %v1845_v34 = vxor.u32 2147483648, %v1844_v36  ;;  %v2030_v14 = vadd.s32 536870912, %v2029_v13  ;;  %v1942_v8 = vadd.s32 127, %v1941_v0  ;;  %vm1857_vm14 = vcmp.eq.s32.totalorder %v1855_v12, 0 }
 0x325   :  { %vm2084_vm12 = vcmp.gt.s32.totalorder %v2083_v48, 0  ;;  %vm2275_vm1 = vcmp.eq.s32.totalorder %v2270_v27, 2  ;;  %vm1860_vm2 = vcmp.eq.s32.totalorder %v1855_v12, 2  ;;  %v1939_v53 = vshrl.u32 %v1921_v56, %v1937_v32 }
 0x326   :  { %v1846_v11 = vsel %vm1763_vm8, %v1845_v34, %v1844_v36  ;;  %v7227_v62 = vshrl.u32 %v2030_v14, 30  ;;  %v2085_v54 = vsel %vm2084_vm12, %v2083_v48, 0  ;;  %v1938_v36 = vshll.u32 %v7169_v2, %v1936_v18 }
 0x327   :  { %v1849_v23 = vsel %vm1762_vm9, %v7074_v40, %v1846_v11  ;;  %v2087_v9 = vand.u32 31, %v2085_v54  ;;  %v2073_v57 = vand.u32 2147483647, %v7189_v44  ;;  %v1943_v45 = vshll.u32 %v1942_v8, 23 }
 0x328   :  { %6075 = vcosq.f32 %v1849_v23  ;;  %v2032_v38 = vshll.u32 %v7227_v62, 30  ;;  %vm1856_vm0 = vcmp.lt.s32.totalorder %v1855_v12, 2  ;;  %vm2271_vm3 = vcmp.lt.s32.totalorder %v2270_v27, 2 }
 0x329   :  { %6077 = vsinq.f32 %v1849_v23  ;;  %v7238_v58 = vsub.s32 32, %v2087_v9  ;;  %v1940_v2 = vor.u32 %v1939_v53, %v1938_v36  ;;  %v2080_v31 = vand.u32 8388607, %v2073_v57 }
 0x32a   :  { %v7232_v47 = vsub.s32 %v2029_v13, %v2032_v38  ;;  %v1944_v16 = vor.u32 4788187, %v1943_v45  ;;  %v2090_v40 = vshll.u32 %v9020_v22, %v2087_v9  ;;  %v2099_v51 = vshll.u32 %v9014_v29, %v2087_v9 }
 0x32b   :  { %v2091_v39 = vshrl.u32 %v9018_v24, %v7238_v58  ;;  %v2094_v63 = vshrl.u32 %v9016_v26, %v7238_v58  ;;  %v2097_v7 = vshrl.u32 %v9014_v29, %v7238_v58  ;;  %v2100_v17 = vshrl.u32 %v9034_v33, %v7238_v58 }
 0x32c   :  { %v2035_v5 = vsub.s32 0, %v7232_v47  ;;  %v2025_v19 = vadd.s32 %v7212_v60, %v7209_v46  ;;  %v2086_v13 = vshrl.u32 %v2085_v54, 5  ;;  %v2093_v48 = vshll.u32 %v9018_v24, %v2087_v9 }
 0x32d   :  { %v2092_v18 = vor.u32 %v2091_v39, %v2090_v40  ;;  %v2096_v14 = vshll.u32 %v9016_v26, %v2087_v9  ;;  %v2101_v0 = vor.u32 %v2100_v17, %v2099_v51  ;;  %v2103_v38 = vshrl.u32 %v9035_v61, %v7238_v58 }
 0x32e   :  { %v5693_v52 = vmin.u32 %v2035_v5, %v7232_v47  ;;  %v2095_v32 = vor.u32 %v2094_v63, %v2093_v48  ;;  %v1945_v56 = vand.u32 2147483647, %v1944_v16  ;;  %v2081_v8 = vor.u32 8388608, %v2080_v31 }
 0x32f   :  { %v2102_v46 = vshll.u32 %v9034_v33, %v2087_v9  ;;  %vm2108_vm5 = vcmp.lt.s32.totalorder %v2086_v13, 4  ;;  %vm2105_vm7 = vcmp.lt.s32.totalorder %v2086_v13, 1  ;;  %vm2107_vm8 = vcmp.lt.s32.totalorder %v2086_v13, 3 }
 0x330   :  { %v2037_v1 = vclz %v5693_v52  ;;  %v2114_v53 = vsel %vm2108_vm5, %v2101_v0, 920167782  ;;  %vm2106_vm9 = vcmp.lt.s32.totalorder %v2086_v13, 2  ;;  %vm1867_vm10 = vcmp.lt.s32.totalorder %v7078_v3, 0 }
 0x331   :  { %v2104_v36 = vor.u32 %v2103_v38, %v2102_v46  ;;  %vm1971_vm11 = vcmp.lt.s32.totalorder %v7086_v35, 0 }
 0x332   :  { %v5694_v4 = vadd.s32 4294967294, %v2037_v1  ;;  %v2788_v1 = vld [vmem:[#allocation4 + $0x18] sm:$0xff] }
 0x333   :  { %v2118_v39 = vsel %vm2108_vm5, %v2104_v36, 1326507024  ;;  %5716 = vmatprep.mubr.msk.f32.mxu0 %vm1578_vm6, %v2788_v1 }
 0x334   :  { %vm5695_vm4 = vcmp.lt.s32.totalorder %v5694_v4, 0 }
 0x335   :  { %v6076_v42 = vpop.eup %6075  ;;  %v2040_v41 = vsel %vm5695_vm4, 0, %v5694_v4 }
 0x336   :  { %v6078_v50 = vpop.eup %6077  ;;  %v1861_v25 = vxor.u32 2147483648, %v6076_v42  ;;  %v2041_v12 = vsub.s32 32, %v2040_v41  ;;  %v2045_v27 = vsub.s32 4294967266, %v2040_v41  ;;  %v2042_v60 = vshll.u32 %v7232_v47, %v2040_v41 }
 0x337   :  { %v1858_v10 = vxor.u32 2147483648, %v6078_v50  ;;  %v2121_v47 = vshll.u32 %v2081_v8, 8 }
 0x338   :  { %v1862_v55 = vsel %vm1860_vm2, %v1861_v25, %v6078_v50  ;;  %v2277_v20 = vsel %vm2275_vm1, %v1861_v25, %v6078_v50  ;;  %v2043_v54 = vshrl.u32 %v2025_v19, %v2041_v12  ;;  %v2046_v50 = vadd.s32 127, %v2045_v27 }
 0x339   :  { %v1859_v6 = vsel %vm1857_vm14, %v6076_v42, %v1858_v10  ;;  %v2274_v34 = vsel %vm2272_vm15, %v6076_v42, %v1858_v10  ;;  %v2098_v42 = vor.u32 %v2097_v7, %v2096_v14  ;;  %v1947_v25 = vcvt.s32.f32 %v1940_v2 }
 0x33a   :  { %v1863_v49 = vsel %vm1856_vm0, %v1859_v6, %v1862_v55  ;;  %v2278_v21 = vsel %vm2271_vm3, %v2274_v34, %v2277_v20  ;;  %v2044_v5 = vor.u32 %v2043_v54, %v2042_v60  ;;  %v2047_v10 = vshll.u32 %v2046_v50, 23 }
 0x33b   :  { %v7245_v11 = vsel %vm1853_vm13, nan, %v1863_v49  ;;  %v7249_v28 = vsel %vm1853_vm13, nan, %v2278_v21  ;;  %v2113_v55 = vsel %vm2105_vm7, %v2092_v18, %v2095_v32  ;;  %v1948_v45 = vmul.f32 %v1947_v25, %v1945_v56 }
 0x33c   :  { %v2597_v23 = vmul.f32 %v7249_v28, %v7245_v11  ;;  %2589 = vst [vmem:[#allocation2] sm:$0xff] %v7245_v11  ;;  %v2605_v20 = vmul.f32 %v7249_v28, %v7249_v28  ;;  %v2115_v9 = vsel %vm2107_vm8, %v2098_v42, %v2114_v53  ;;  %v2609_v52 = vmul.f32 %v7245_v11, %v7245_v11 }
 0x33d   :  { %v2048_v59 = vor.u32 4788187, %v2047_v10  ;;  %v2110_v6 = vsel %vm2108_vm5, %v2098_v42, 2102212464  ;;  %v2051_v34 = vcvt.s32.f32 %v2044_v5  ;;  %v2089_v49 = vshrl.u32 %v9020_v22, %v7238_v58 }
 0x33e   :  { %v2116_v21 = vsel %vm2106_vm9, %v2113_v55, %v2115_v9  ;;  %v2117_v2 = vsel %vm2105_vm7, %v2095_v32, %v2098_v42  ;;  %v1949_v63 = vxor.u32 2147483648, %v1948_v45  ;;  %v2111_v7 = vsel %vm2107_vm8, %v2095_v32, %v2110_v6 }
 0x33f   :  { %v2049_v31 = vand.u32 2147483647, %v2048_v59  ;;  %v7287_v16 = vmul.u32.u64.low %v2121_v47, %v2116_v21  ;;  %v7288_v4 = vmul.u32.u64.high %v2121_v47, %v2116_v21, %v7287_v16  ;;  %v2109_v40 = vsel %vm2105_vm7, %v2089_v49, %v2092_v18 }
 0x340   :  { %v2119_v58 = vsel %vm2107_vm8, %v2101_v0, %v2118_v39  ;;  %v7296_v19 = vadd.f32 %v2597_v23, %v2597_v23  ;;  %v7298_v48 = vsub.f32 %v2605_v20, %v2609_v52  ;;  %v2112_v27 = vsel %vm2106_vm9, %v2109_v40, %v2111_v7 }
 0x341   :  { %v2052_v51 = vmul.f32 %v2051_v34, %v2049_v31  ;;  %v2120_v17 = vsel %vm2106_vm9, %v2117_v2, %v2119_v58  ;;  %v2131_v38 = vadd.s32 1, %v7288_v4  ;;  %v1950_v32 = vsel %vm1867_vm10, %v1949_v63, %v1948_v45 }
 0x342   :  { %v7300_v41 = vmul.u32.u64.low %v2121_v47, %v2120_v17  ;;  %v7301_v14 = vmul.u32.u64.high %v2121_v47, %v2120_v17, %v7300_v41  ;;  %v2625_v18 = vmul.f32 %v7296_v19, %v7249_v28  ;;  %v2629_v0 = vmul.f32 %v7298_v48, %v7245_v11 }
 0x343   :  { %v2053_v12 = vxor.u32 2147483648, %v2052_v51  ;;  %v2637_v23 = vmul.f32 %v7298_v48, %v7249_v28  ;;  %v2641_v13 = vmul.f32 %v7296_v19, %v7245_v11  ;;  %v2128_v56 = vmul.u32 %v2121_v47, %v2112_v27 }
 0x344   :  { %vm2130_vm12 = vc.u32 %v7301_v14, %v7287_v16  ;;  %vm7321_vm13 = vcmp.le.f32.partialorder %v1865_v37, 0.7853982  ;;  %v7331_v50 = vadd.f32 %v2629_v0, %v2625_v18  ;;  %v1951_v25 = vsub.s32 4, %v7161_v43 }
 0x345   :  { %v2054_v42 = vsel %vm1971_vm11, %v2053_v12, %v2052_v51  ;;  %v2132_v46 = vsel %vm2130_vm12, %v2131_v38, %v7288_v4  ;;  %v1953_v60 = vsel %vm7321_vm13, %v7078_v3, %v1950_v32  ;;  %vm7336_vm14 = vcmp.le.f32.partialorder %v1969_v15, 0.7853982 }
 0x346   :  { %v2133_v54 = vadd.s32 %v2132_v46, %v2128_v56  ;;  %v7340_v53 = vsub.f32 %v2637_v23, %v2641_v13  ;;  %v2057_v5 = vsel %vm7336_vm14, %v7086_v35, %v2054_v42  ;;  %v2657_v36 = vmul.f32 %v7331_v50, %v7249_v28 }
 0x347   :  { %v2673_v55 = vmul.f32 %v7331_v50, %v7245_v11  ;;  %6079 = vcosq.f32 %v1953_v60  ;;  %v2055_v9 = vsub.s32 4, %v7227_v62  ;;  %v1952_v59 = vsel %vm1867_vm10, %v1951_v25, %v7161_v43 }
 0x348   :  { %v2134_v10 = vadd.s32 536870912, %v2133_v54  ;;  %v2661_v15 = vmul.f32 %v7340_v53, %v7245_v11  ;;  %v2669_v20 = vmul.f32 %v7340_v53, %v7249_v28  ;;  %6081 = vsinq.f32 %v1953_v60 }
 0x349   :  { %6083 = vcosq.f32 %v2057_v5  ;;  %v2056_v43 = vsel %vm1971_vm11, %v2055_v9, %v7227_v62  ;;  %v1954_v4 = vsel %vm7321_vm13, 0, %v1952_v59  ;;  %v2129_v25 = vadd.s32 %v7287_v16, %v7301_v14 }
 0x34a   :  { %v7353_v45 = vshrl.u32 %v2134_v10, 30  ;;  %v7356_v47 = vadd.f32 %v2661_v15, %v2657_v36  ;;  %v7358_v52 = vsub.f32 %v2669_v20, %v2673_v55  ;;  %6085 = vsinq.f32 %v2057_v5 }
 0x34b   :  { %v2058_v62 = vsel %vm7336_vm14, 0, %v2056_v43  ;;  %v1958_v17 = vadd.s32 3, %v1954_v4  ;;  %v2373_v41 = vand.u32 3, %v1954_v4  ;;  %vm1957_vm13 = vweird.f32 %v7078_v3 }
 0x34c   :  { %v2136_v6 = vshll.u32 %v7353_v45, 30  ;;  %v2689_v34 = vmul.f32 %v7356_v47, %v7249_v28  ;;  %v2693_v49 = vmul.f32 %v7358_v52, %v7245_v11  ;;  %v2701_v21 = vmul.f32 %v7358_v52, %v7249_v28 }
 0x34d   :  { %v2705_v2 = vmul.f32 %v7356_v47, %v7245_v11  ;;  %v2062_v27 = vadd.s32 3, %v2058_v62  ;;  %v1959_v32 = vand.u32 3, %v1958_v17  ;;  %vm2375_vm15 = vcmp.eq.s32.totalorder %v2373_v41, 0 }
 0x34e   :  { %v2137_v1 = vsub.s32 %v2133_v54, %v2136_v6  ;;  %v7375_v31 = vadd.f32 %v2693_v49, %v2689_v34  ;;  %vm2378_vm2 = vcmp.eq.s32.totalorder %v2373_v41, 2  ;;  %v2476_v60 = vand.u32 3, %v2058_v62 }
 0x34f   :  { %v7377_v39 = vsub.f32 %v2701_v21, %v2705_v2  ;;  %v2063_v46 = vand.u32 3, %v2062_v27  ;;  %vm2374_vm0 = vcmp.lt.s32.totalorder %v2373_v41, 2  ;;  %vm1961_vm3 = vcmp.eq.s32.totalorder %v1959_v32, 0 }
 0x350   :  { %v2139_v63 = vsub.s32 0, %v2137_v1  ;;  %v2721_v58 = vmul.f32 %v7375_v31, %v7249_v28  ;;  %v2737_v13 = vmul.f32 %v7375_v31, %v7245_v11  ;;  %vm1964_vm4 = vcmp.eq.s32.totalorder %v1959_v32, 2 }
 0x351   :  { %v2725_v40 = vmul.f32 %v7377_v39, %v7245_v11  ;;  %v2733_v7 = vmul.f32 %v7377_v39, %v7249_v28  ;;  %vm2478_vm5 = vcmp.eq.s32.totalorder %v2476_v60, 0  ;;  %vm2065_vm7 = vcmp.eq.s32.totalorder %v2063_v46, 0 }
 0x352   :  { %v5697_v51 = vmin.u32 %v2139_v63, %v2137_v1  ;;  %vm2068_vm8 = vcmp.eq.s32.totalorder %v2063_v46, 2  ;;  %vm2481_vm9 = vcmp.eq.s32.totalorder %v2476_v60, 2  ;;  %vm1960_vm10 = vcmp.lt.s32.totalorder %v1959_v32, 2 }
 0x353   :  { %v7389_v0 = vadd.f32 %v2725_v40, %v2721_v58  ;;  %v7397_v10 = vsub.f32 %v2733_v7, %v2737_v13  ;;  %vm2064_vm11 = vcmp.lt.s32.totalorder %v2063_v46, 2  ;;  %vm2477_vm12 = vcmp.lt.s32.totalorder %v2476_v60, 2 }
 0x354   :  { %v2141_v12 = vclz %v5697_v51  ;;  %v6080_v38 = vpop.eup %6079  ;;  %vm2061_vm14 = vweird.f32 %v7086_v35  ;;  %v2159_v41 = vsub.s32 4, %v7353_v45 }
 0x355   :  { %v6082_v23 = vpop.eup %6081  ;;  %v2753_v8 = vmul.f32 %v7389_v0, %v7249_v28  ;;  %v1965_v55 = vxor.u32 2147483648, %v6080_v38  ;;  %v2757_v59 = vmul.f32 %v7397_v10, %v7245_v11  ;;  %v7403_v6 = vmul.f32 %v7397_v10, %v7249_v28 }
 0x356   :  { %v5698_v18 = vadd.s32 4294967294, %v2141_v12  ;;  %v6084_v56 = vpop.eup %6083  ;;  %v1962_v36 = vxor.u32 2147483648, %v6082_v23 }
 0x357   :  { %v6086_v42 = vpop.eup %6085  ;;  %v2069_v16 = vxor.u32 2147483648, %v6084_v56  ;;  %v7405_v21 = vadd.f32 %v2757_v59, %v2753_v8  ;;  %v1966_v2 = vsel %vm1964_vm4, %v1965_v55, %v6082_v23  ;;  %v2380_v63 = vsel %vm2378_vm2, %v1965_v55, %v6082_v23 }
 0x358   :  { %vm5699_vm1 = vcmp.lt.s32.totalorder %v5698_v18, 0  ;;  %v2066_v34 = vxor.u32 2147483648, %v6086_v42  ;;  %v1963_v43 = vsel %vm1961_vm3, %v6080_v38, %v1962_v36  ;;  %v2377_v4 = vsel %vm2375_vm15, %v6080_v38, %v1962_v36 }
 0x359   :  { %v2144_v54 = vsel %vm5699_vm1, 0, %v5698_v18  ;;  %v2070_v58 = vsel %vm2068_vm8, %v2069_v16, %v6086_v42  ;;  %v2483_v51 = vsel %vm2481_vm9, %v2069_v16, %v6086_v42  ;;  %v1967_v18 = vsel %vm1960_vm10, %v1963_v43, %v1966_v2 }
 0x35a   :  { %v2145_v37 = vsub.s32 32, %v2144_v54  ;;  %v2149_v5 = vsub.s32 4294967266, %v2144_v54  ;;  %v2146_v15 = vshll.u32 %v2137_v1, %v2144_v54  ;;  %v7409_v1 = vmul.f32 %v7389_v0, %v7245_v11 }
 0x35b   :  { %v2067_v7 = vsel %vm2065_vm7, %v6084_v56, %v2066_v34  ;;  %v2480_v62 = vsel %vm2478_vm5, %v6084_v56, %v2066_v34  ;;  %v2381_v11 = vsel %vm2374_vm0, %v2377_v4, %v2380_v63  ;;  %v7418_v23 = vsel %vm1957_vm13, nan, %v1967_v18 }
 0x35c   :  { %v2147_v20 = vshrl.u32 %v2129_v25, %v2145_v37  ;;  %v2150_v9 = vadd.s32 127, %v2149_v5  ;;  %v2773_v27 = vsub.f32 %v7403_v6, %v7409_v1  ;;  %v2071_v13 = vsel %vm2064_vm11, %v2067_v7, %v2070_v58  ;;  %v2787_v6 = vld [vmem:[#allocation4 + $0x10] sm:$0xff]  ;;  %v2792_v1 = vld [vmem:[#allocation4 + $0x38] sm:$0xff] }
 0x35d   :  { %v2484_v38 = vsel %vm2477_vm12, %v2480_v62, %v2483_v51  ;;  %v7420_v56 = vsel %vm1957_vm13, nan, %v2381_v11  ;;  %v7423_v42 = vsel %vm2061_vm14, nan, %v2071_v13  ;;  %vm2075_vm15 = vcmp.lt.s32.totalorder %v7189_v44, 0 }
 0x35e   :  { %v2148_v14 = vor.u32 %v2147_v20, %v2146_v15  ;;  %v2151_v49 = vshll.u32 %v2150_v9, 23  ;;  %v7425_v54 = vsel %vm2061_vm14, nan, %v2484_v38  ;;  %vm2074_vm1 = vcmp.le.f32.partialorder %v2073_v57, 0.7853982 }
 0x35f   :  { %v2598_v3 = vmul.f32 %v7420_v56, %v7418_v23  ;;  %v2599_v35 = vmul.f32 %v7425_v54, %v7423_v42  ;;  %v2607_v25 = vmul.f32 %v7425_v54, %v7425_v54  ;;  %v2611_v37 = vmul.f32 %v7423_v42, %v7423_v42 }
 0x360   :  { %v2152_v40 = vor.u32 4788187, %v2151_v49  ;;  %v2155_v12 = vcvt.s32.f32 %v2148_v14  ;;  %v2606_v5 = vmul.f32 %v7420_v56, %v7420_v56  ;;  %v2610_v57 = vmul.f32 %v7418_v23, %v7418_v23 }
 0x361   :  { %v2160_v36 = vsel %vm2075_vm15, %v2159_v41, %v7353_v45  ;;  %v7445_v15 = vadd.f32 %v2599_v35, %v2599_v35  ;;  %v7447_v20 = vsub.f32 %v2607_v25, %v2611_v37  ;;  %v7449_v9 = vadd.f32 %v2598_v3, %v2598_v3 }
 0x362   :  { %v2153_v17 = vand.u32 2147483647, %v2152_v40  ;;  %v2162_v55 = vsel %vm2074_vm1, 0, %v2160_v36  ;;  %v7451_v59 = vsub.f32 %v2606_v5, %v2610_v57  ;;  %vm2165_vm2 = vweird.f32 %v7189_v44 }
 0x363   :  { %v2166_v34 = vadd.s32 3, %v2162_v55  ;;  %v2627_v16 = vmul.f32 %v7445_v15, %v7425_v54  ;;  %v2631_v14 = vmul.f32 %v7447_v20, %v7423_v42  ;;  %v2639_v45 = vmul.f32 %v7447_v20, %v7425_v54 }
 0x364   :  { %v2156_v8 = vmul.f32 %v2155_v12, %v2153_v17  ;;  %v2643_v49 = vmul.f32 %v7445_v15, %v7423_v42  ;;  %v2626_v2 = vmul.f32 %v7449_v9, %v7420_v56  ;;  %v2630_v43 = vmul.f32 %v7451_v59, %v7418_v23 }
 0x365   :  { %v2638_v4 = vmul.f32 %v7451_v59, %v7420_v56  ;;  %v2642_v63 = vmul.f32 %v7449_v9, %v7418_v23  ;;  %v2579_v40 = vand.u32 3, %v2162_v55  ;;  %v2167_v7 = vand.u32 3, %v2166_v34 }
 0x366   :  { %v2157_v32 = vxor.u32 2147483648, %v2156_v8  ;;  %v7469_v58 = vadd.f32 %v2631_v14, %v2627_v16  ;;  %v7471_v62 = vsub.f32 %v2639_v45, %v2643_v49  ;;  %v7474_v17 = vadd.f32 %v2630_v43, %v2626_v2 }
 0x367   :  { %v7476_v12 = vsub.f32 %v2638_v4, %v2642_v63  ;;  %vm2580_vm0 = vcmp.lt.s32.totalorder %v2579_v40, 2  ;;  %vm2581_vm3 = vcmp.eq.s32.totalorder %v2579_v40, 0  ;;  %vm2584_vm4 = vcmp.eq.s32.totalorder %v2579_v40, 2 }
 0x368   :  { %v2158_v46 = vsel %vm2075_vm15, %v2157_v32, %v2156_v8  ;;  %vm2168_vm5 = vcmp.lt.s32.totalorder %v2167_v7, 2  ;;  %vm2169_vm7 = vcmp.eq.s32.totalorder %v2167_v7, 0  ;;  %vm2172_vm8 = vcmp.eq.s32.totalorder %v2167_v7, 2 }
 0x369   :  { %v2161_v60 = vsel %vm2074_vm1, %v7189_v44, %v2158_v46  ;;  %v2659_v32 = vmul.f32 %v7469_v58, %v7425_v54  ;;  %v2663_v41 = vmul.f32 %v7471_v62, %v7423_v42  ;;  %v2675_v35 = vmul.f32 %v7469_v58, %v7423_v42 }
 0x36a   :  { %6087 = vcosq.f32 %v2161_v60  ;;  %v2658_v5 = vmul.f32 %v7474_v17, %v7420_v56  ;;  %v2662_v57 = vmul.f32 %v7476_v12, %v7418_v23  ;;  %v2670_v34 = vmul.f32 %v7476_v12, %v7420_v56 }
 0x36b   :  { %6089 = vsinq.f32 %v2161_v60  ;;  %v2671_v60 = vmul.f32 %v7471_v62, %v7425_v54  ;;  %v2674_v16 = vmul.f32 %v7474_v17, %v7418_v23  ;;  %v2667_v44 = vadd.f32 %v2663_v41, %v2659_v32 }
 0x36c   :  { %v2666_v63 = vadd.f32 %v2662_v57, %v2658_v5 }
 0x36d   :  { %v7510_v2 = vsub.f32 %v2671_v60, %v2675_v35  ;;  %v7516_v40 = vsub.f32 %v2670_v34, %v2674_v16  ;;  %v2707_v32 = vmul.f32 %v2667_v44, %v7423_v42 }
 0x36f   :  { %v2694_v60 = vmul.f32 %v7516_v40, %v7418_v23  ;;  %v2702_v35 = vmul.f32 %v7516_v40, %v7420_v56 }
 0x377   :  { %v6088_v51 = vpop.eup %6087 }
 0x378   :  { %v6090_v18 = vpop.eup %6089  ;;  %v2173_v11 = vxor.u32 2147483648, %v6088_v51 }
 0x379   :  { %v2170_v13 = vxor.u32 2147483648, %v6090_v18 }
 0x37a   :  { %v2174_v38 = vsel %vm2172_vm8, %v2173_v11, %v6090_v18  ;;  %v2586_v8 = vsel %vm2584_vm4, %v2173_v11, %v6090_v18 }
 0x37b   :  { %v2171_v46 = vsel %vm2169_vm7, %v6088_v51, %v2170_v13  ;;  %v2583_v3 = vsel %vm2581_vm3, %v6088_v51, %v2170_v13  ;;  %v2691_v13 = vmul.f32 %v2667_v44, %v7425_v54 }
 0x37c   :  { %v2175_v25 = vsel %vm2168_vm5, %v2171_v46, %v2174_v38  ;;  %v2587_v37 = vsel %vm2580_vm0, %v2583_v3, %v2586_v8  ;;  %v2695_v38 = vmul.f32 %v7510_v2, %v7423_v42  ;;  %v2703_v8 = vmul.f32 %v7510_v2, %v7425_v54 }
 0x37d   :  { %v7493_v36 = vsel %vm2165_vm2, nan, %v2175_v25  ;;  %v7497_v55 = vsel %vm2165_vm2, nan, %v2587_v37  ;;  %v2690_v3 = vmul.f32 %v2666_v63, %v7420_v56  ;;  %v2706_v25 = vmul.f32 %v2666_v63, %v7418_v23 }
 0x37e   :  { %v2600_v14 = vmul.f32 %v7497_v55, %v7493_v36  ;;  %v2608_v45 = vmul.f32 %v7497_v55, %v7497_v55  ;;  %v2612_v49 = vmul.f32 %v7493_v36, %v7493_v36  ;;  %5839 = vmatprep.subr.mxu1 %v7497_v55  ;;  %v7550_v16 = vadd.f32 %v2695_v38, %v2691_v13 }
 0x380   :  { %v7512_v43 = vadd.f32 %v2600_v14, %v2600_v14  ;;  %v7514_v4 = vsub.f32 %v2608_v45, %v2612_v49  ;;  %v2711_v14 = vsub.f32 %v2703_v8, %v2707_v32  ;;  %v2723_v8 = vmul.f32 %v7550_v16, %v7425_v54 }
 0x381   :  { %v2739_v32 = vmul.f32 %v7550_v16, %v7423_v42 }
 0x382   :  { %v2628_v7 = vmul.f32 %v7512_v43, %v7497_v55  ;;  %v2632_v51 = vmul.f32 %v7514_v4, %v7493_v36  ;;  %v2640_v18 = vmul.f32 %v7514_v4, %v7497_v55  ;;  %v2644_v11 = vmul.f32 %v7512_v43, %v7493_v36 }
 0x383   :  { %v2727_v13 = vmul.f32 %v2711_v14, %v7423_v42  ;;  %v2735_v38 = vmul.f32 %v2711_v14, %v7425_v54 }
 0x384   :  { %v7532_v41 = vadd.f32 %v2632_v51, %v2628_v7  ;;  %v7534_v46 = vsub.f32 %v2640_v18, %v2644_v11  ;;  %v7552_v7 = vadd.f32 %v2694_v60, %v2690_v3  ;;  %v2710_v51 = vsub.f32 %v2702_v35, %v2706_v25 }
 0x386   :  { %v2660_v37 = vmul.f32 %v7532_v41, %v7497_v55  ;;  %v2664_v5 = vmul.f32 %v7534_v46, %v7493_v36  ;;  %v2672_v57 = vmul.f32 %v7534_v46, %v7497_v55  ;;  %v2676_v34 = vmul.f32 %v7532_v41, %v7493_v36 }
 0x387   :  { %v2726_v35 = vmul.f32 %v2710_v51, %v7418_v23  ;;  %v2734_v25 = vmul.f32 %v2710_v51, %v7420_v56 }
 0x388   :  { %v2668_v45 = vadd.f32 %v2664_v5, %v2660_v37  ;;  %v2680_v49 = vsub.f32 %v2672_v57, %v2676_v34  ;;  %v2722_v37 = vmul.f32 %v7552_v7, %v7420_v56  ;;  %v2738_v5 = vmul.f32 %v7552_v7, %v7418_v23 }
 0x38a   :  { %v2692_v18 = vmul.f32 %v2668_v45, %v7497_v55  ;;  %v2696_v11 = vmul.f32 %v2680_v49, %v7493_v36  ;;  %5840 = vmatpush3.msra.mxu1 %v2668_v45  ;;  %v2704_v29 = vmul.f32 %v2680_v49, %v7497_v55  ;;  %v2708_v26 = vmul.f32 %v2668_v45, %v7493_v36 }
 0x38b   :  { %5841 = vmatprep.subr.mxu1 %v7425_v54  ;;  %v7584_v45 = vsub.f32 %v2735_v38, %v2739_v32 }
 0x38c   :  { %v7565_v3 = vadd.f32 %v2696_v11, %v2692_v18  ;;  %5842 = vmatpush3.msra.mxu1 %v2667_v44  ;;  %v2712_v60 = vsub.f32 %v2704_v29, %v2708_v26  ;;  %v7582_v44 = vadd.f32 %v2727_v13, %v2723_v8  ;;  %v7590_v11 = vadd.f32 %v2726_v35, %v2722_v37 }
 0x38d   :  { %5843 = vmatprep.subr.mxu1 %v7420_v56 }
 0x38e   :  { %5844 = vmatpush3.msra.mxu1 %v2666_v63  ;;  %v2728_v57 = vmul.f32 %v2712_v60, %v7493_v36  ;;  %v2736_v34 = vmul.f32 %v2712_v60, %v7497_v55  ;;  %2979 = vmatpush1.msra.mxu0 %v2712_v60  ;;  %v2724_v26 = vmul.f32 %v7565_v3, %v7497_v55 }
 0x38f   :  { %5845 = vmatprep.subr.mxu1 %v7249_v28  ;;  %2980 = vmatprep.subr.mxu0 %v9022_v30  ;;  %v2740_v29 = vmul.f32 %v7565_v3, %v7493_v36  ;;  %v7592_v28 = vsub.f32 %v2734_v25, %v2738_v5 }
 0x390   :  { %5846 = vmatpush3.msra.mxu1 %v7356_v47  ;;  %2981 = vmatpush1.msra.mxu0 %v2711_v14  ;;  %v2732_v63 = vadd.f32 %v2728_v57, %v2724_v26  ;;  %v2755_v47 = vmul.f32 %v7582_v44, %v7425_v54  ;;  %v2759_v14 = vmul.f32 %v7584_v45, %v7423_v42 }
 0x391   :  { %2982 = vmatprep.subr.mxu0 %v9022_v30  ;;  %v7588_v18 = vsub.f32 %v2736_v34, %v2740_v29  ;;  %v2758_v8 = vmul.f32 %v7592_v28, %v7418_v23 }
 0x392   :  { %2983 = vmatpush1.msra.mxu0 %v2710_v51  ;;  %v2756_v60 = vmul.f32 %v2732_v63, %v7497_v55  ;;  %v2754_v51 = vmul.f32 %v7590_v11, %v7420_v56  ;;  %v2763_v32 = vadd.f32 %v2759_v14, %v2755_v47 }
 0x393   :  { %2984 = vmatprep.subr.mxu0 %v9022_v30  ;;  %v2760_v13 = vmul.f32 %v7588_v18, %v7493_v36 }
 0x394   :  { %2985 = vmatpush1.msra.mxu0 %v7377_v39  ;;  %v2762_v39 = vadd.f32 %v2758_v8, %v2754_v51 }
 0x395   :  { %2986 = vmatprep.subr.mxu0 %v9022_v30  ;;  %v2764_v38 = vadd.f32 %v2760_v13, %v2756_v60 }
 0x396   :  { %2987 = vmatpush1.msra.mxu0 %v2680_v49 }
 0x397   :  { %5847 = vmatprep.subr.mxu1 %v2764_v38  ;;  %2988 = vmatprep.subr.mxu0 %v9022_v30 }
 0x398   :  { %5848 = vmatpush3.msra.mxu1 %v7532_v41  ;;  %2989 = vmatpush1.msra.mxu0 %v7510_v2  ;;  %v7678_v41 = vpop.permute.xlu0 %2878 }
 0x399   :  { %5849 = vmatprep.subr.mxu1 %v2763_v32  ;;  %2990 = vmatprep.subr.mxu0 %v9022_v30 }
 0x39a   :  { %5850 = vmatpush3.msra.mxu1 %v7469_v58  ;;  %2991 = vmatpush1.msra.mxu0 %v7516_v40  ;;  %v2797_v58 = vld [vmem:[#allocation4 + $0x60] sm:$0xff] }
 0x39b   :  { %5851 = vmatprep.subr.mxu1 %v2762_v39  ;;  %2992 = vmatprep.subr.mxu0 %v9022_v30 }
 0x39c   :  { %5852 = vmatpush3.msra.mxu1 %v7474_v17  ;;  %2993 = vmatpush1.msra.mxu0 %v7358_v52  ;;  %v2771_v52 = vmul.f32 %v7582_v44, %v7423_v42  ;;  %v2795_v17 = vld [vmem:[#allocation4 + $0x50] sm:$0xff]  ;;  %v2869_v37 = vpop.permute.xlu0 %2868 }
 0x39d   :  { %5853 = vmatprep.subr.mxu1 %v7405_v21  ;;  %2994 = vmatprep.subr.mxu0 %v9022_v30 }
 0x39e   :  { %5854 = vmatpush3.msra.mxu1 %v7331_v50  ;;  %2995 = vmatpush1.msra.mxu0 %v7534_v46  ;;  %v2768_v50 = vmul.f32 %v7588_v18, %v7497_v55 }
 0x39f   :  { %5855 = vmatprep.subr.mxu1 %v2732_v63  ;;  %2996 = vmatprep.subr.mxu0 %v9022_v30 }
 0x3a0   :  { %5856 = vmatpush3.msra.mxu1 %v7512_v43  ;;  %2997 = vmatpush1.msra.mxu0 %v7471_v62  ;;  %v2796_v62 = vld [vmem:[#allocation4 + $0x58] sm:$0xff] }
 0x3a1   :  { %5857 = vmatprep.subr.mxu1 %v7582_v44  ;;  %2998 = vmatprep.subr.mxu0 %v9022_v30 }
 0x3a2   :  { %5858 = vmatpush3.msra.mxu1 %v7445_v15  ;;  %2999 = vmatpush1.msra.mxu0 %v7476_v12  ;;  %v2766_v15 = vmul.f32 %v7592_v28, %v7420_v56  ;;  %v2794_v56 = vld [vmem:[#allocation4 + $0x48] sm:$0xff]  ;;  %v2800_v12 = vld [vmem:[#allocation4 + $0x78] sm:$0xff] }
 0x3a3   :  { %5859 = vmatprep.subr.mxu1 %v7590_v11  ;;  %3000 = vmatprep.subr.mxu0 %v9022_v30 }
 0x3a4   :  { %5860 = vmatpush3.msra.mxu1 %v7449_v9  ;;  %3001 = vmatpush1.msra.mxu0 %v7340_v53  ;;  %v2772_v53 = vmul.f32 %v2732_v63, %v7493_v36 }
 0x3a5   :  { %5861 = vmatprep.subr.mxu1 %v7389_v0  ;;  %3002 = vmatprep.subr.mxu0 %v9022_v30  ;;  %v2785_v0 = vld [vmem:[#allocation4] sm:$0xff] }
 0x3a6   :  { %5862 = vmatpush3.msra.mxu1 %v7296_v19  ;;  %3003 = vmatpush1.msra.mxu0 %v7514_v4  ;;  %v2767_v19 = vmul.f32 %v7584_v45, %v7425_v54  ;;  %v2776_v21 = vsub.f32 %v2768_v50, %v2772_v53  ;;  %v2801_v54 = vld [vmem:[#allocation2] sm:$0xff]  ;;  %v2874_v4 = vpop.permute.xlu1 %2873 }
 0x3a7   :  { %5863 = vmatprep.subr.mxu1 %v7565_v3  ;;  %3004 = vmatprep.subr.mxu0 %v9022_v30 }
 0x3a8   :  { %5864 = vmatpush3.msra.mxu1 %v7493_v36  ;;  %3005 = vmatpush1.msra.mxu0 %v7447_v20  ;;  %v2770_v20 = vmul.f32 %v7590_v11, %v7418_v23  ;;  %v2775_v9 = vsub.f32 %v2767_v19, %v2771_v52  ;;  %v2799_v36 = vld [vmem:[#allocation4 + $0x70] sm:$0xff] }
 0x3a9   :  { %5865 = vmatprep.subr.mxu1 %v7550_v16  ;;  %3006 = vmatprep.subr.mxu0 %v9022_v30 }
 0x3aa   :  { %5866 = vmatpush3.msra.mxu1 %v7423_v42  ;;  %3007 = vmatpush1.msra.mxu0 %v7451_v59  ;;  %v2790_v42 = vld [vmem:[#allocation4 + $0x28] sm:$0xff]  ;;  %v2774_v59 = vsub.f32 %v2766_v15, %v2770_v20  ;;  %v2864_v16 = vpop.permute.xlu1 %2863 }
 0x3ab   :  { %5867 = vmatprep.subr.mxu1 %v7552_v7  ;;  %3008 = vmatprep.subr.mxu0 %v9022_v30 }
 0x3ac   :  { %5868 = vmatpush3.msra.mxu1 %v7418_v23  ;;  %3009 = vmatpush1.msra.mxu0 %v7298_v48  ;;  %v2789_v48 = vld [vmem:[#allocation4 + $0x20] sm:$0xff]  ;;  %v2798_v23 = vld [vmem:[#allocation4 + $0x68] sm:$0xff] }
 0x3ad   :  { %5869 = vmatprep.subr.mxu1 %v7375_v31  ;;  %3026 = vmatprep.subr.mxu0 %v9022_v30  ;;  %v2793_v31 = vld [vmem:[#allocation4 + $0x40] sm:$0xff] }
 0x3ae   :  { %5870 = vmatpush3.msra.mxu1 %v2801_v54  ;;  %3027 = vmatpush2.msra.mxu0 %v2776_v21 }
 0x3af   :  { %2958 = vmatmul.mubr.f32.vlgmr.msra.gmra.mxu1 %v2785_v0  ;;  %3028 = vmatprep.subr.mxu0 %v9022_v30 }
 0x3b0   :  { %3029 = vmatpush2.msra.mxu0 %v2775_v9  ;;  %2962 = vmatprep.mubr.f32.mxu1 %v2790_v42 }
 0x3b1   :  { %3030 = vmatprep.subr.mxu0 %v9022_v30 }
 0x3b2   :  { %3031 = vmatpush2.msra.mxu0 %v2774_v59 }
 0x3b3   :  { %2963 = vmatmul.mubr.f32.gmra.mxu1 %v2789_v48  ;;  %3032 = vmatprep.subr.mxu0 %v9022_v30 }
 0x3b4   :  { %3033 = vmatpush2.msra.mxu0 %v2773_v27  ;;  %2967 = vmatprep.mubr.f32.mxu1 %v2794_v56  ;;  %v2791_v27 = vld [vmem:[#allocation4 + $0x30] sm:$0xff] }
 0x3b5   :  { %3034 = vmatprep.subr.mxu0 %v9022_v30 }
 0x3b6   :  { %3035 = vmatpush2.msra.mxu0 %v7588_v18 }
 0x3b7   :  { %2968 = vmatmul.mubr.f32.gmra.mxu1 %v2793_v31  ;;  %3036 = vmatprep.subr.mxu0 %v9022_v30  ;;  %v9040_v31 = vmov 2131351028  }
 0x3b8   :  { %3037 = vmatpush2.msra.mxu0 %v7584_v45  ;;  %2972 = vmatprep.mubr.f32.mxu1 %v2798_v23 }
 0x3b9   :  { %3038 = vmatprep.subr.mxu0 %v9022_v30 }
 0x3ba   :  { %3039 = vmatpush2.msra.mxu0 %v7592_v28 }
 0x3bb   :  { %2973 = vmatmul.mubr.f32.gmra.mxu1 %v2797_v58  ;;  %3040 = vmatprep.subr.mxu0 %v9022_v30  ;;  %v9041_v58 = vmov 2102212464  }
 0x3bc   :  { %3041 = vmatpush2.msra.mxu0 %v7397_v10 }
 0x3bd   :  { %3043 = vmatmul.mubr.f32.vlgmr.msra.gmra.mxu0 %v2787_v6 }
 0x3be   :  { %5717 = vmatprep.mubr.msk.f32.mxu0 %vm1578_vm6, %v2792_v1 }
 0x3c1   :  { %3048 = vmatmul.mubr.f32.gmra.mxu0 %v2791_v27 }
 0x3c2   :  { %5718 = vmatprep.mubr.msk.f32.mxu0 %vm1578_vm6, %v2796_v62 }
 0x3c5   :  { %3053 = vmatmul.mubr.f32.gmra.mxu0 %v2795_v17 }
 0x3c6   :  { %5719 = vmatprep.mubr.msk.f32.mxu0 %vm1578_vm6, %v2800_v12 }
 0x3c9   :  { %3058 = vmatmul.mubr.f32.gmra.mxu0 %v2799_v36 }
 0x46f   :  { %v5871_v55 = vpop.f32.mrf.mxu1 }
 0x471   :  { %v5872_v2 = vpop.f32.mrf.mxu1 }
 0x472   :  { %v5873_v40 = vadd.f32 %v5872_v2, %v5871_v55 }
 0x473   :  { %v5874_v43 = vpop.f32.mrf.mxu1 }
 0x474   :  { %v2960_v7 = vadd.f32 %v5873_v40, %v2864_v16 }
 0x475   :  { %v5875_v10 = vpop.f32.mrf.mxu1 }
 0x476   :  { %v5876_v49 = vadd.f32 %v5875_v10, %v5874_v43 }
 0x477   :  { %v5877_v46 = vpop.f32.mrf.mxu1 }
 0x478   :  { %v2965_v26 = vadd.f32 %v5876_v49, %v2869_v37 }
 0x479   :  { %v5878_v35 = vpop.f32.mrf.mxu1 }
 0x47a   :  { %v5879_v29 = vadd.f32 %v5878_v35, %v5877_v46 }
 0x47c   :  { %v2970_v47 = vadd.f32 %v5879_v29, %v2874_v4 }
 0x47d   :  { %v3044_v3 = vpop.f32.mrf.mxu0 }
 0x47e   :  { %v7680_v25 = vadd.f32 %v3044_v3, %v2960_v7 }
 0x47f   :  { %v3046_v5 = vpop.f32.mrf.mxu0 }
 0x480   :  { %v3063_v57 = vand.u32 2147483647, %v7680_v25  ;;  %v3066_v34 = vand.u32 2139095040, %v7680_v25 }
 0x481   :  { %v3049_v44 = vpop.f32.mrf.mxu0 }
 0x482   :  { %v3067_v45 = vshrl.u32 %v3066_v34, 23  ;;  %v7684_v63 = vadd.f32 %v3049_v44, %v2965_v26  ;;  %v3070_v18 = vand.u32 8388607, %v3063_v57 }
 0x483   :  { %v3051_v11 = vpop.f32.mrf.mxu0 }
 0x484   :  { %v5720_v28 = vadd.s32 4294967169, %v3067_v45  ;;  %v3167_v60 = vand.u32 2147483647, %v7684_v63  ;;  %v3170_v13 = vand.u32 2139095040, %v7684_v63  ;;  %v3071_v51 = vor.u32 8388608, %v3070_v18 }
 0x485   :  { %v3054_v14 = vpop.f32.mrf.mxu0 }
 0x486   :  { %v3073_v38 = vadd.s32 1, %v5720_v28  ;;  %v3171_v8 = vshrl.u32 %v3170_v13, 23  ;;  %v3174_v32 = vand.u32 8388607, %v3167_v60  ;;  %v7692_v39 = vadd.f32 %v3054_v14, %v2970_v47 }
 0x487   :  { %v3056_v50 = vpop.f32.mrf.mxu0  ;;  %v7696_v15 = vshll.u32 %v3071_v51, 8 }
 0x488   :  { %vm3074_vm9 = vcmp.gt.s32.totalorder %v3073_v38, 0  ;;  %v5724_v19 = vadd.s32 4294967169, %v3171_v8  ;;  %v3175_v20 = vor.u32 8388608, %v3174_v32  ;;  %v3274_v54 = vand.u32 2139095040, %v7692_v39 }
 0x489   :  { %v3075_v53 = vsel %vm3074_vm9, %v3073_v38, 0  ;;  %v7694_v52 = vpop.f32.mrf.mxu0 }
 0x48a   :  { %v3076_v0 = vshrl.u32 %v3075_v53, 5  ;;  %v3077_v21 = vand.u32 31, %v3075_v53  ;;  %v3177_v56 = vadd.s32 1, %v5724_v19  ;;  %v3215_v8 = vshll.u32 %v3175_v20, 8 }
 0x48b   :  { %v3061_v42 = vpop.f32.mrf.mxu0  ;;  %v3275_v32 = vshrl.u32 %v3274_v54, 23 }
 0x48c   :  { %v3078_v9 = vsub.s32 32, %v3077_v21  ;;  %v3080_v48 = vshll.u32 %v9020_v22, %v3077_v21  ;;  %v3083_v59 = vshll.u32 %v9018_v24, %v3077_v21  ;;  %v3086_v23 = vshll.u32 %v9040_v31, %v3077_v21 }
 0x48d   :  { %v3089_v6 = vshll.u32 %v9041_v58, %v3077_v21  ;;  %v3092_v1 = vshll.u32 %v9034_v33, %v3077_v21  ;;  %vm3095_vm10 = vcmp.lt.s32.totalorder %v3076_v0, 1  ;;  %vm3096_vm11 = vcmp.lt.s32.totalorder %v3076_v0, 2 }
 0x48e   :  { %v3081_v27 = vshrl.u32 %v9018_v24, %v3078_v9  ;;  %v3084_v62 = vshrl.u32 %v9040_v31, %v3078_v9  ;;  %v3087_v17 = vshrl.u32 %v9041_v58, %v3078_v9  ;;  %v3079_v12 = vshrl.u32 %v9020_v22, %v3078_v9 }
 0x48f   :  { %v3090_v36 = vshrl.u32 %v9034_v33, %v3078_v9  ;;  %v3093_v55 = vshrl.u32 %v9035_v61, %v3078_v9  ;;  %vm3097_vm12 = vcmp.lt.s32.totalorder %v3076_v0, 3  ;;  %vm3178_vm13 = vcmp.gt.s32.totalorder %v3177_v56, 0 }
 0x490   :  { %v3082_v2 = vor.u32 %v3081_v27, %v3080_v48  ;;  %v3085_v43 = vor.u32 %v3084_v62, %v3083_v59  ;;  %v3088_v4 = vor.u32 %v3087_v17, %v3086_v23  ;;  %vm3098_vm14 = vcmp.lt.s32.totalorder %v3076_v0, 4 }
 0x491   :  { %v3091_v10 = vor.u32 %v3090_v36, %v3089_v6  ;;  %v3094_v40 = vor.u32 %v3093_v55, %v3092_v1  ;;  %v3179_v46 = vsel %vm3178_vm13, %v3177_v56, 0  ;;  %vm3064_vm13 = vcmp.le.f32.partialorder %v3063_v57, 0.7853982 }
 0x492   :  { %v3099_v16 = vsel %vm3095_vm10, %v3079_v12, %v3082_v2  ;;  %v3100_v49 = vsel %vm3098_vm14, %v3088_v4, 2102212464  ;;  %v3103_v7 = vsel %vm3095_vm10, %v3082_v2, %v3085_v43  ;;  %v3107_v3 = vsel %vm3095_vm10, %v3085_v43, %v3088_v4 }
 0x493   :  { %v3101_v35 = vsel %vm3097_vm12, %v3085_v43, %v3100_v49  ;;  %v3104_v37 = vsel %vm3098_vm14, %v3091_v10, 920167782  ;;  %v3108_v5 = vsel %vm3098_vm14, %v3094_v40, 1326507024  ;;  %v3180_v34 = vshrl.u32 %v3179_v46, 5 }
 0x494   :  { %v3102_v26 = vsel %vm3096_vm11, %v3099_v16, %v3101_v35  ;;  %v3105_v29 = vsel %vm3097_vm12, %v3088_v4, %v3104_v37  ;;  %v3109_v44 = vsel %vm3097_vm12, %v3091_v10, %v3108_v5  ;;  %v3181_v45 = vand.u32 31, %v3179_v46 }
 0x495   :  { %v3106_v18 = vsel %vm3096_vm11, %v3103_v7, %v3105_v29  ;;  %v3110_v11 = vsel %vm3096_vm11, %v3107_v3, %v3109_v44  ;;  %v3118_v38 = vmul.u32 %v7696_v15, %v3102_v26  ;;  %vm3199_vm15 = vcmp.lt.s32.totalorder %v3180_v34, 1 }
 0x496   :  { %v7720_v28 = vmul.u32.u64.low %v7696_v15, %v3110_v11  ;;  %v7721_v13 = vmul.u32.u64.high %v7696_v15, %v3110_v11, %v7720_v28  ;;  %v7724_v47 = vmul.u32.u64.low %v7696_v15, %v3106_v18  ;;  %v7725_v14 = vmul.u32.u64.high %v7696_v15, %v3106_v18, %v7724_v47 }
 0x497   :  { %v3182_v51 = vsub.s32 32, %v3181_v45  ;;  %v3184_v50 = vshll.u32 %v9020_v22, %v3181_v45  ;;  %v3187_v53 = vshll.u32 %v9018_v24, %v3181_v45  ;;  %v3190_v19 = vshll.u32 %v9040_v31, %v3181_v45 }
 0x498   :  { %v3193_v9 = vshll.u32 %v9041_v58, %v3181_v45  ;;  %vm3120_vm1 = vc.u32 %v7721_v13, %v7724_v47  ;;  %v3121_v15 = vadd.s32 1, %v7725_v14  ;;  %v3196_v54 = vshll.u32 %v9034_v33, %v3181_v45 }
 0x499   :  { %v3185_v0 = vshrl.u32 %v9018_v24, %v3182_v51  ;;  %v3188_v21 = vshrl.u32 %v9040_v31, %v3182_v51  ;;  %v3191_v42 = vshrl.u32 %v9041_v58, %v3182_v51  ;;  %v3194_v20 = vshrl.u32 %v9034_v33, %v3182_v51 }
 0x49a   :  { %v3197_v23 = vshrl.u32 %v9035_v61, %v3182_v51  ;;  %v3122_v6 = vsel %vm3120_vm1, %v3121_v15, %v7725_v14  ;;  %vm3201_vm2 = vcmp.lt.s32.totalorder %v3180_v34, 3  ;;  %vm3202_vm0 = vcmp.lt.s32.totalorder %v3180_v34, 4 }
 0x49b   :  { %v3186_v48 = vor.u32 %v3185_v0, %v3184_v50  ;;  %v3189_v59 = vor.u32 %v3188_v21, %v3187_v53  ;;  %v3192_v56 = vor.u32 %v3191_v42, %v3190_v19  ;;  %v3195_v1 = vor.u32 %v3194_v20, %v3193_v9 }
 0x49c   :  { %v3123_v27 = vadd.s32 %v3122_v6, %v3118_v38  ;;  %v3183_v62 = vshrl.u32 %v9020_v22, %v3182_v51  ;;  %v3198_v17 = vor.u32 %v3197_v23, %v3196_v54  ;;  %v5728_v43 = vadd.s32 4294967169, %v3275_v32  ;;  %v5880_v38 = vpop.f32.mrf.mxu1 }
 0x49d   :  { %v3204_v12 = vsel %vm3202_vm0, %v3192_v56, 2102212464  ;;  %v3207_v36 = vsel %vm3199_vm15, %v3186_v48, %v3189_v59  ;;  %v3208_v55 = vsel %vm3202_vm0, %v3195_v1, 920167782  ;;  %v3211_v2 = vsel %vm3199_vm15, %v3189_v59, %v3192_v56 }
 0x49e   :  { %v3124_v4 = vadd.s32 536870912, %v3123_v27  ;;  %vm3200_vm3 = vcmp.lt.s32.totalorder %v3180_v34, 2  ;;  %v3209_v10 = vsel %vm3201_vm2, %v3192_v56, %v3208_v55  ;;  %v3212_v40 = vsel %vm3202_vm0, %v3198_v17, 1326507024  ;;  %v5881_v9 = vpop.f32.mrf.mxu1 }
 0x49f   :  { %v3203_v46 = vsel %vm3199_vm15, %v3183_v62, %v3186_v48  ;;  %v3205_v16 = vsel %vm3201_vm2, %v3189_v59, %v3204_v12  ;;  %v3210_v49 = vsel %vm3200_vm3, %v3207_v36, %v3209_v10  ;;  %v3213_v7 = vsel %vm3201_vm2, %v3195_v1, %v3212_v40 }
 0x4a0   :  { %v7750_v3 = vshrl.u32 %v3124_v4, 30  ;;  %v3214_v35 = vsel %vm3200_vm3, %v3211_v2, %v3213_v7  ;;  %v7752_v37 = vmul.u32.u64.low %v3215_v8, %v3210_v49  ;;  %v7753_v5 = vmul.u32.u64.high %v3215_v8, %v3210_v49, %v7752_v37 }
 0x4a1   :  { %v7756_v26 = vmul.u32.u64.low %v3215_v8, %v3214_v35  ;;  %v7757_v29 = vmul.u32.u64.high %v3215_v8, %v3214_v35, %v7756_v26  ;;  %v3281_v44 = vadd.s32 1, %v5728_v43  ;;  %v3206_v18 = vsel %vm3200_vm3, %v3203_v46, %v3205_v16 }
 0x4a2   :  { %v3126_v45 = vshll.u32 %v7750_v3, 30  ;;  %v3225_v28 = vadd.s32 1, %v7753_v5  ;;  %v3222_v14 = vmul.u32 %v3215_v8, %v3206_v18  ;;  %v3271_v50 = vand.u32 2147483647, %v7692_v39 }
 0x4a3   :  { %vm3282_vm4 = vcmp.gt.s32.totalorder %v3281_v44, 0  ;;  %vm3224_vm5 = vc.u32 %v7757_v29, %v7752_v37  ;;  %v5882_v48 = vadd.f32 %v5881_v9, %v5880_v38  ;;  %v3119_v59 = vadd.s32 %v7724_v47, %v7721_v13 }
 0x4a4   :  { %v3127_v11 = vsub.s32 %v3123_v27, %v3126_v45  ;;  %v3283_v34 = vsel %vm3282_vm4, %v3281_v44, 0  ;;  %v3226_v32 = vsel %vm3224_vm5, %v3225_v28, %v7753_v5  ;;  %v3278_v20 = vand.u32 8388607, %v3271_v50 }
 0x4a5   :  { %v3227_v53 = vadd.s32 %v3226_v32, %v3222_v14  ;;  %v3285_v19 = vand.u32 31, %v3283_v34  ;;  %v7773_v1 = vshrl.u32 %v3283_v34, 5  ;;  %v2975_v38 = vadd.f32 %v5882_v48, %v7678_v41 }
 0x4a6   :  { %v3129_v51 = vsub.s32 0, %v3127_v11  ;;  %v3279_v6 = vor.u32 8388608, %v3278_v20  ;;  %vm3065_vm12 = vcmp.lt.s32.totalorder %v7680_v25, 0  ;;  %vm3155_vm2 = vweird.f32 %v7680_v25 }
 0x4a7   :  { %v3228_v21 = vadd.s32 536870912, %v3227_v53  ;;  %v3286_v42 = vsub.s32 32, %v3285_v19  ;;  %v3288_v27 = vshll.u32 %v9020_v22, %v3285_v19  ;;  %v3291_v13 = vshll.u32 %v9018_v24, %v3285_v19 }
 0x4a8   :  { %v5721_v0 = vmin.u32 %v3129_v51, %v3127_v11  ;;  %v3294_v10 = vshll.u32 %v9040_v31, %v3285_v19  ;;  %v3297_v40 = vshll.u32 %v9041_v58, %v3285_v19  ;;  %v3300_v44 = vshll.u32 %v9034_v33, %v3285_v19 }
 0x4a9   :  { %v7767_v8 = vshrl.u32 %v3228_v21, 30  ;;  %v3289_v23 = vshrl.u32 %v9018_v24, %v3286_v42  ;;  %v3292_v12 = vshrl.u32 %v9040_v31, %v3286_v42  ;;  %v3298_v36 = vshrl.u32 %v9034_v33, %v3286_v42 }
 0x4aa   :  { %v3131_v15 = vclz %v5721_v0  ;;  %v3295_v47 = vshrl.u32 %v9041_v58, %v3286_v42  ;;  %v3301_v7 = vshrl.u32 %v9035_v61, %v3286_v42  ;;  %v3319_v14 = vshll.u32 %v3279_v6, 8 }
 0x4ab   :  { %v3230_v56 = vshll.u32 %v7767_v8, 30  ;;  %v3290_v4 = vor.u32 %v3289_v23, %v3288_v27  ;;  %v3293_v5 = vor.u32 %v3292_v12, %v3291_v13  ;;  %v3299_v26 = vor.u32 %v3298_v36, %v3297_v40 }
 0x4ac   :  { %v5722_v54 = vadd.s32 4294967294, %v3131_v15  ;;  %v3296_v28 = vor.u32 %v3295_v47, %v3294_v10  ;;  %v3302_v34 = vor.u32 %v3301_v7, %v3300_v44  ;;  %vm3303_vm8 = vcmp.lt.s32.totalorder %v7773_v1, 1 }
 0x4ad   :  { %v7776_v17 = vsub.s32 %v3227_v53, %v3230_v56  ;;  %vm3306_vm9 = vcmp.lt.s32.totalorder %v7773_v1, 4  ;;  %vm3305_vm10 = vcmp.lt.s32.totalorder %v7773_v1, 3  ;;  %v7795_v19 = vadd.f32 %v7694_v52, %v2975_v38 }
 0x4ae   :  { %vm5723_vm7 = vcmp.lt.s32.totalorder %v5722_v54, 0  ;;  %v3312_v53 = vsel %vm3306_vm9, %v3299_v26, 920167782  ;;  %v3315_v9 = vsel %vm3303_vm8, %v3293_v5, %v3296_v28  ;;  %v3287_v15 = vshrl.u32 %v9020_v22, %v3286_v42 }
 0x4af   :  { %v3134_v62 = vsel %vm5723_vm7, 0, %v5722_v54  ;;  %v3233_v43 = vsub.s32 0, %v7776_v17  ;;  %v3313_v41 = vsel %vm3305_vm10, %v3296_v28, %v3312_v53  ;;  %vm3304_vm11 = vcmp.lt.s32.totalorder %v7773_v1, 2 }
 0x4b0   :  { %v3135_v55 = vsub.s32 32, %v3134_v62  ;;  %v3139_v2 = vsub.s32 4294967266, %v3134_v62  ;;  %v3136_v46 = vshll.u32 %v3127_v11, %v3134_v62  ;;  %v3311_v11 = vsel %vm3303_vm8, %v3290_v4, %v3293_v5 }
 0x4b1   :  { %v5725_v35 = vmin.u32 %v3233_v43, %v7776_v17  ;;  %v3308_v20 = vsel %vm3306_vm9, %v3296_v28, 2102212464  ;;  %v3316_v54 = vsel %vm3306_vm9, %v3302_v34, 1326507024  ;;  %v3314_v52 = vsel %vm3304_vm11, %v3311_v11, %v3313_v41 }
 0x4b2   :  { %v3137_v16 = vshrl.u32 %v3119_v59, %v3135_v55  ;;  %v3140_v49 = vadd.s32 127, %v3139_v2  ;;  %v3317_v56 = vsel %vm3305_vm10, %v3299_v26, %v3316_v54  ;;  %v3149_v23 = vsub.s32 4, %v7750_v3 }
 0x4b3   :  { %v3235_v32 = vclz %v5725_v35  ;;  %v3307_v6 = vsel %vm3303_vm8, %v3287_v15, %v3290_v4  ;;  %v3318_v42 = vsel %vm3304_vm11, %v3315_v9, %v3317_v56  ;;  %v3309_v62 = vsel %vm3305_vm10, %v3293_v5, %v3308_v20 }
 0x4b4   :  { %v3138_v45 = vor.u32 %v3137_v16, %v3136_v46  ;;  %v3141_v18 = vshll.u32 %v3140_v49, 23  ;;  %v7814_v12 = vmul.u32.u64.low %v3319_v14, %v3318_v42  ;;  %v7815_v36 = vmul.u32.u64.high %v3319_v14, %v3318_v42, %v7814_v12 }
 0x4b5   :  { %v5726_v59 = vadd.s32 4294967294, %v3235_v32  ;;  %v7818_v55 = vmul.u32.u64.low %v3319_v14, %v3314_v52  ;;  %v7819_v2 = vmul.u32.u64.high %v3319_v14, %v3314_v52, %v7818_v55  ;;  %v3378_v47 = vand.u32 2139095040, %v7795_v19 }
 0x4b6   :  { %v3142_v51 = vor.u32 4788187, %v3141_v18  ;;  %v3145_v21 = vcvt.s32.f32 %v3138_v45  ;;  %v3150_v43 = vsel %vm3065_vm12, %v3149_v23, %v7750_v3  ;;  %v3310_v10 = vsel %vm3304_vm11, %v3307_v6, %v3309_v62 }
 0x4b7   :  { %vm5727_vm14 = vcmp.lt.s32.totalorder %v5726_v59, 0  ;;  %vm3328_vm15 = vc.u32 %v7815_v36, %v7818_v55  ;;  %v3379_v40 = vshrl.u32 %v3378_v47, 23  ;;  %v3329_v57 = vadd.s32 1, %v7819_v2 }
 0x4b8   :  { %v3143_v0 = vand.u32 2147483647, %v3142_v51  ;;  %v3238_v46 = vsel %vm5727_vm14, 0, %v5726_v59  ;;  %v3152_v16 = vsel %vm3064_vm13, 0, %v3150_v43  ;;  %v3326_v49 = vmul.u32 %v3319_v14, %v3310_v10  ;;  %v4088_v59 = vld [vmem:[#allocation7 + $0x8] sm:$0xff] }
 0x4b9   :  { %v5732_v7 = vadd.s32 4294967169, %v3379_v40  ;;  %v3330_v35 = vsel %vm3328_vm15, %v3329_v57, %v7819_v2  ;;  %v3243_v3 = vsub.s32 4294967266, %v3238_v46  ;;  %v3156_v44 = vadd.s32 3, %v3152_v16  ;;  %4259 = vmatprep.mubr.f32.mxu1 %v4088_v59 }
 0x4ba   :  { %v3146_v48 = vmul.f32 %v3145_v21, %v3143_v0  ;;  %v3331_v5 = vadd.s32 %v3330_v35, %v3326_v49  ;;  %v3572_v38 = vand.u32 3, %v3152_v16  ;;  %v3239_v51 = vsub.s32 32, %v3238_v46 }
 0x4bb   :  { %v3385_v26 = vadd.s32 1, %v5732_v7  ;;  %v3244_v45 = vadd.s32 127, %v3243_v3  ;;  %v3157_v34 = vand.u32 3, %v3156_v44  ;;  %v3223_v14 = vadd.s32 %v7752_v37, %v7757_v29 }
 0x4bc   :  { %v3147_v27 = vxor.u32 2147483648, %v3146_v48  ;;  %v3332_v1 = vadd.s32 536870912, %v3331_v5  ;;  %vm3574_vm3 = vcmp.eq.s32.totalorder %v3572_v38, 0  ;;  %vm3577_vm4 = vcmp.eq.s32.totalorder %v3572_v38, 2 }
 0x4bd   :  { %vm3386_vm1 = vcmp.gt.s32.totalorder %v3385_v26, 0  ;;  %v3245_v53 = vshll.u32 %v3244_v45, 23  ;;  %vm3159_vm0 = vcmp.eq.s32.totalorder %v3157_v34, 0  ;;  %vm3162_vm5 = vcmp.eq.s32.totalorder %v3157_v34, 2 }
 0x4be   :  { %v3148_v13 = vsel %vm3065_vm12, %v3147_v27, %v3146_v48  ;;  %v7833_v18 = vshrl.u32 %v3332_v1, 30  ;;  %v3387_v28 = vsel %vm3386_vm1, %v3385_v26, 0  ;;  %v3241_v15 = vshrl.u32 %v3223_v14, %v3239_v51 }
 0x4bf   :  { %v3151_v4 = vsel %vm3064_vm13, %v7680_v25, %v3148_v13  ;;  %v3389_v11 = vand.u32 31, %v3387_v28  ;;  %v3240_v48 = vshll.u32 %v7776_v17, %v3238_v46  ;;  %v3375_v37 = vand.u32 2147483647, %v7795_v19 }
 0x4c0   :  { %6091 = vcosq.f32 %v3151_v4  ;;  %v3334_v32 = vshll.u32 %v7833_v18, 30  ;;  %v3246_v23 = vor.u32 4788187, %v3245_v53  ;;  %vm3158_vm7 = vcmp.lt.s32.totalorder %v3157_v34, 2 }
 0x4c1   :  { %6093 = vsinq.f32 %v3151_v4  ;;  %v3390_v29 = vsub.s32 32, %v3389_v11  ;;  %vm3573_vm8 = vcmp.lt.s32.totalorder %v3572_v38, 2  ;;  %v3242_v2 = vor.u32 %v3241_v15, %v3240_v48 }
 0x4c2   :  { %v7838_v0 = vsub.s32 %v3331_v5, %v3334_v32  ;;  %v3382_v43 = vand.u32 8388607, %v3375_v37  ;;  %v3247_v10 = vand.u32 2147483647, %v3246_v23  ;;  %v3327_v40 = vadd.s32 %v7818_v55, %v7815_v36 }
 0x4c3   :  { %v3393_v4 = vshrl.u32 %v9018_v24, %v3390_v29  ;;  %v3396_v57 = vshrl.u32 %v9040_v31, %v3390_v29  ;;  %v3392_v16 = vshll.u32 %v9020_v22, %v3389_v11  ;;  %v3399_v25 = vshrl.u32 %v9041_v58, %v3390_v29 }
 0x4c4   :  { %v3337_v20 = vsub.s32 0, %v7838_v0  ;;  %v3401_v49 = vshll.u32 %v9041_v58, %v3389_v11  ;;  %v3402_v7 = vshrl.u32 %v9034_v33, %v3390_v29  ;;  %v3249_v35 = vcvt.s32.f32 %v3242_v2 }
 0x4c5   :  { %v3388_v3 = vshrl.u32 %v3387_v28, 5  ;;  %v3395_v5 = vshll.u32 %v9018_v24, %v3389_v11  ;;  %v3394_v44 = vor.u32 %v3393_v4, %v3392_v16  ;;  %v3398_v36 = vshll.u32 %v9040_v31, %v3389_v11 }
 0x4c6   :  { %v5729_v6 = vmin.u32 %v3337_v20, %v7838_v0  ;;  %v3403_v55 = vor.u32 %v3402_v7, %v3401_v49  ;;  %v3405_v38 = vshrl.u32 %v9035_v61, %v3390_v29  ;;  %v3250_v51 = vmul.f32 %v3249_v35, %v3247_v10 }
 0x4c7   :  { %v3397_v34 = vor.u32 %v3396_v57, %v3395_v5  ;;  %v3383_v32 = vor.u32 8388608, %v3382_v43  ;;  %v3400_v14 = vor.u32 %v3399_v25, %v3398_v36  ;;  %v3404_v53 = vshll.u32 %v9034_v33, %v3389_v11 }
 0x4c8   :  { %v3339_v17 = vclz %v5729_v6  ;;  %vm3410_vm10 = vcmp.lt.s32.totalorder %v3388_v3, 4  ;;  %vm3407_vm11 = vcmp.lt.s32.totalorder %v3388_v3, 1  ;;  %vm3409_vm12 = vcmp.lt.s32.totalorder %v3388_v3, 3 }
 0x4c9   :  { %v3415_v48 = vsel %vm3407_vm11, %v3394_v44, %v3397_v34  ;;  %vm3408_vm13 = vcmp.lt.s32.totalorder %v3388_v3, 2  ;;  %v3412_v11 = vsel %vm3410_vm10, %v3400_v14, 2102212464  ;;  %v3391_v6 = vshrl.u32 %v9020_v22, %v3390_v29 }
 0x4ca   :  { %v5730_v46 = vadd.s32 4294967294, %v3339_v17  ;;  %vm3169_vm14 = vcmp.lt.s32.totalorder %v7684_v63, 0  ;;  %v3413_v4 = vsel %vm3409_vm12, %v3397_v34, %v3412_v11  ;;  %vm7895_vm15 = vcmp.le.f32.partialorder %v3167_v60, 0.7853982 }
 0x4cb   :  { %v3411_v43 = vsel %vm3407_vm11, %v3391_v6, %v3394_v44  ;;  %vm3273_vm1 = vcmp.lt.s32.totalorder %v7692_v39, 0  ;;  %v3253_v3 = vsub.s32 4, %v7767_v8 }
 0x4cc   :  { %vm5731_vm9 = vcmp.lt.s32.totalorder %v5730_v46, 0  ;;  %v3414_v7 = vsel %vm3408_vm13, %v3411_v43, %v3413_v4 }
 0x4cd   :  { %v6092_v21 = vpop.eup %6091  ;;  %v3342_v26 = vsel %vm5731_vm9, 0, %v5730_v46 }
 0x4ce   :  { %v6094_v41 = vpop.eup %6093  ;;  %v3163_v9 = vxor.u32 2147483648, %v6092_v21  ;;  %v3343_v1 = vsub.s32 32, %v3342_v26  ;;  %v3347_v45 = vsub.s32 4294967266, %v3342_v26 }
 0x4cf   :  { %v3160_v54 = vxor.u32 2147483648, %v6094_v41 }
 0x4d0   :  { %v3164_v52 = vsel %vm3162_vm5, %v3163_v9, %v6094_v41  ;;  %v3579_v56 = vsel %vm3577_vm4, %v3163_v9, %v6094_v41  ;;  %v3345_v28 = vshrl.u32 %v3327_v40, %v3343_v1  ;;  %v3348_v41 = vadd.s32 127, %v3347_v45 }
 0x4d1   :  { %v3161_v42 = vsel %vm3159_vm0, %v6092_v21, %v3160_v54  ;;  %v3576_v27 = vsel %vm3574_vm3, %v6092_v21, %v3160_v54  ;;  %v3344_v21 = vshll.u32 %v7838_v0, %v3342_v26  ;;  %v3416_v9 = vsel %vm3410_vm10, %v3403_v55, 920167782 }
 0x4d2   :  { %v3165_v62 = vsel %vm3158_vm7, %v3161_v42, %v3164_v52  ;;  %v3580_v12 = vsel %vm3573_vm8, %v3576_v27, %v3579_v56  ;;  %v3349_v20 = vshll.u32 %v3348_v41, 23  ;;  %v3406_v54 = vor.u32 %v3405_v38, %v3404_v53 }
 0x4d3   :  { %v7849_v13 = vsel %vm3155_vm2, nan, %v3165_v62  ;;  %v7853_v47 = vsel %vm3155_vm2, nan, %v3580_v12  ;;  %v3346_v15 = vor.u32 %v3345_v28, %v3344_v21  ;;  %v3417_v59 = vsel %vm3409_vm12, %v3400_v14, %v3416_v9 }
 0x4d4   :  { %3891 = vst [vmem:[#allocation2] sm:$0xff] %v7849_v13  ;;  %v3423_v52 = vshll.u32 %v3383_v32, 8  ;;  %v3251_v56 = vxor.u32 2147483648, %v3250_v51  ;;  %v3350_v23 = vor.u32 4788187, %v3349_v20  ;;  %v3418_v42 = vsel %vm3408_vm13, %v3415_v48, %v3417_v59 }
 0x4d5   :  { %v3353_v0 = vcvt.s32.f32 %v3346_v15  ;;  %v3419_v27 = vsel %vm3407_vm11, %v3397_v34, %v3400_v14  ;;  %v3420_v12 = vsel %vm3410_vm10, %v3406_v54, 1326507024  ;;  %vm7913_vm0 = vcmp.le.f32.partialorder %v3271_v50, 0.7853982 }
 0x4d6   :  { %v3351_v62 = vand.u32 2147483647, %v3350_v23  ;;  %v7879_v2 = vmul.u32.u64.low %v3423_v52, %v3418_v42  ;;  %v7880_v17 = vmul.u32.u64.high %v3423_v52, %v3418_v42, %v7879_v2  ;;  %v3421_v10 = vsel %vm3409_vm12, %v3403_v55, %v3420_v12 }
 0x4d7   :  { %v3252_v29 = vsel %vm3169_vm14, %v3251_v56, %v3250_v51  ;;  %v3422_v46 = vsel %vm3408_vm13, %v3419_v27, %v3421_v10  ;;  %v3430_v44 = vmul.u32 %v3423_v52, %v3414_v7  ;;  %v3254_v34 = vsel %vm3169_vm14, %v3253_v3, %v7767_v8 }
 0x4d8   :  { %v3354_v40 = vmul.f32 %v3353_v0, %v3351_v62  ;;  %v7890_v57 = vmul.u32.u64.low %v3423_v52, %v3422_v46  ;;  %v7891_v16 = vmul.u32.u64.high %v3423_v52, %v3422_v46, %v7890_v57  ;;  %v3433_v35 = vadd.s32 1, %v7880_v17 }
 0x4d9   :  { %v3255_v5 = vsel %vm7895_vm15, %v7684_v63, %v3252_v29  ;;  %v3357_v51 = vsub.s32 4, %v7833_v18  ;;  %v3256_v32 = vsel %vm7895_vm15, 0, %v3254_v34  ;;  %vm3259_vm15 = vweird.f32 %v7684_v63 }
 0x4da   :  { %v3355_v49 = vxor.u32 2147483648, %v3354_v40  ;;  %vm3432_vm2 = vc.u32 %v7891_v16, %v7879_v2  ;;  %6095 = vcosq.f32 %v3255_v5  ;;  %v3260_v21 = vadd.s32 3, %v3256_v32 }
 0x4db   :  { %v3434_v60 = vsel %vm3432_vm2, %v3433_v35, %v7880_v17  ;;  %6097 = vsinq.f32 %v3255_v5  ;;  %v3358_v53 = vsel %vm3273_vm1, %v3357_v51, %v7833_v18  ;;  %v3675_v15 = vand.u32 3, %v3256_v32 }
 0x4dc   :  { %v3356_v26 = vsel %vm3273_vm1, %v3355_v49, %v3354_v40  ;;  %v3435_v55 = vadd.s32 %v3434_v60, %v3430_v44  ;;  %v3360_v8 = vsel %vm7913_vm0, 0, %v3358_v53  ;;  %v3261_v54 = vand.u32 3, %v3260_v21 }
 0x4dd   :  { %v3359_v1 = vsel %vm7913_vm0, %v7692_v39, %v3356_v26  ;;  %v3364_v52 = vadd.s32 3, %v3360_v8  ;;  %vm3676_vm3 = vcmp.lt.s32.totalorder %v3675_v15, 2  ;;  %vm3677_vm4 = vcmp.eq.s32.totalorder %v3675_v15, 0 }
 0x4de   :  { %v3436_v45 = vadd.s32 536870912, %v3435_v55  ;;  %6099 = vcosq.f32 %v3359_v1  ;;  %vm3263_vm5 = vcmp.eq.s32.totalorder %v3261_v54, 0  ;;  %vm3266_vm7 = vcmp.eq.s32.totalorder %v3261_v54, 2 }
 0x4df   :  { %6101 = vsinq.f32 %v3359_v1  ;;  %vm3680_vm8 = vcmp.eq.s32.totalorder %v3675_v15, 2  ;;  %v3365_v6 = vand.u32 3, %v3364_v52  ;;  %v3778_v42 = vand.u32 3, %v3360_v8 }
 0x4e0   :  { %v7923_v38 = vshrl.u32 %v3436_v45, 30  ;;  %v3431_v12 = vadd.s32 %v7879_v2, %v7891_v16  ;;  %vm3262_vm10 = vcmp.lt.s32.totalorder %v3261_v54, 2  ;;  %vm3363_vm0 = vweird.f32 %v7692_v39 }
 0x4e1   :  { %vm3367_vm11 = vcmp.eq.s32.totalorder %v3365_v6, 0  ;;  %vm3370_vm12 = vcmp.eq.s32.totalorder %v3365_v6, 2  ;;  %vm3780_vm13 = vcmp.eq.s32.totalorder %v3778_v42, 0  ;;  %vm3783_vm14 = vcmp.eq.s32.totalorder %v3778_v42, 2 }
 0x4e2   :  { %v3438_v50 = vshll.u32 %v7923_v38, 30  ;;  %vm3366_vm1 = vcmp.lt.s32.totalorder %v3365_v6, 2  ;;  %vm3779_vm2 = vcmp.lt.s32.totalorder %v3778_v42, 2  ;;  %v3907_v8 = vmul.f32 %v7853_v47, %v7853_v47 }
 0x4e4   :  { %v3439_v14 = vsub.s32 %v3435_v55, %v3438_v50 }
 0x4e6   :  { %v3441_v28 = vsub.s32 0, %v3439_v14 }
 0x4e7   :  { %v6096_v41 = vpop.eup %6095 }
 0x4e8   :  { %v5733_v9 = vmin.u32 %v3441_v28, %v3439_v14  ;;  %v6098_v20 = vpop.eup %6097  ;;  %v3267_v59 = vxor.u32 2147483648, %v6096_v41  ;;  %v3461_v28 = vsub.s32 4, %v7923_v38 }
 0x4e9   :  { %v3264_v11 = vxor.u32 2147483648, %v6098_v20 }
 0x4ea   :  { %v3443_v48 = vclz %v5733_v9  ;;  %v3268_v18 = vsel %vm3266_vm7, %v3267_v59, %v6098_v20  ;;  %v3682_v62 = vsel %vm3680_vm8, %v3267_v59, %v6098_v20 }
 0x4eb   :  { %v6100_v23 = vpop.eup %6099  ;;  %v3265_v4 = vsel %vm3263_vm5, %v6096_v41, %v3264_v11  ;;  %v3679_v10 = vsel %vm3677_vm4, %v6096_v41, %v3264_v11  ;;  %v3899_v41 = vmul.f32 %v7853_v47, %v7849_v13  ;;  %vm3377_vm4 = vcmp.lt.s32.totalorder %v7795_v19, 0 }
 0x4ec   :  { %v5734_v56 = vadd.s32 4294967294, %v3443_v48  ;;  %v6102_v0 = vpop.eup %6101  ;;  %v3371_v40 = vxor.u32 2147483648, %v6100_v23  ;;  %v3269_v49 = vsel %vm3262_vm10, %v3265_v4, %v3268_v18  ;;  %v3683_v7 = vsel %vm3676_vm3, %v3679_v10, %v3682_v62 }
 0x4ed   :  { %v3368_v29 = vxor.u32 2147483648, %v6102_v0  ;;  %v7938_v3 = vsel %vm3259_vm15, nan, %v3269_v49  ;;  %v7940_v36 = vsel %vm3259_vm15, nan, %v3683_v7  ;;  %vm7951_vm3 = vcmp.le.f32.partialorder %v3375_v37, 0.7853982 }
 0x4ee   :  { %vm5735_vm9 = vcmp.lt.s32.totalorder %v5734_v56, 0  ;;  %v3372_v16 = vsel %vm3370_vm12, %v3371_v40, %v6102_v0  ;;  %v3785_v44 = vsel %vm3783_vm14, %v3371_v40, %v6102_v0  ;;  %v3900_v50 = vmul.f32 %v7940_v36, %v7938_v3 }
 0x4ef   :  { %v3446_v27 = vsel %vm5735_vm9, 0, %v5734_v56  ;;  %v3369_v2 = vsel %vm3367_vm11, %v6100_v23, %v3368_v29  ;;  %v3782_v26 = vsel %vm3780_vm13, %v6100_v23, %v3368_v29  ;;  %v3908_v53 = vmul.f32 %v7940_v36, %v7940_v36 }
 0x4f0   :  { %v3447_v17 = vsub.s32 32, %v3446_v27  ;;  %v3451_v43 = vsub.s32 4294967266, %v3446_v27  ;;  %v3448_v46 = vshll.u32 %v3439_v14, %v3446_v27  ;;  %v3373_v55 = vsel %vm3366_vm1, %v3369_v2, %v3372_v16 }
 0x4f1   :  { %v3786_v1 = vsel %vm3779_vm2, %v3782_v26, %v3785_v44  ;;  %v7945_v32 = vsel %vm3363_vm0, nan, %v3373_v55  ;;  %v3912_v39 = vmul.f32 %v7938_v3, %v7938_v3  ;;  %v3911_v37 = vmul.f32 %v7849_v13, %v7849_v13 }
 0x4f2   :  { %v3449_v57 = vshrl.u32 %v3431_v12, %v3447_v17  ;;  %v3452_v25 = vadd.s32 127, %v3451_v43  ;;  %v7947_v63 = vsel %vm3363_vm0, nan, %v3786_v1  ;;  %v3913_v20 = vmul.f32 %v7945_v32, %v7945_v32 }
 0x4f3   :  { %v3901_v9 = vmul.f32 %v7947_v63, %v7945_v32  ;;  %v3909_v15 = vmul.f32 %v7947_v63, %v7947_v63  ;;  %v3462_v59 = vsel %vm3377_vm4, %v3461_v28, %v7923_v38  ;;  %v7977_v52 = vadd.f32 %v3900_v50, %v3900_v50 }
 0x4f4   :  { %v3450_v35 = vor.u32 %v3449_v57, %v3448_v46  ;;  %v3453_v5 = vshll.u32 %v3452_v25, 23  ;;  %v7979_v56 = vsub.f32 %v3908_v53, %v3912_v39  ;;  %v7981_v23 = vadd.f32 %v3899_v41, %v3899_v41 }
 0x4f5   :  { %v7983_v11 = vsub.f32 %v3907_v8, %v3911_v37  ;;  %v7985_v0 = vadd.f32 %v3901_v9, %v3901_v9  ;;  %v7987_v18 = vsub.f32 %v3909_v15, %v3913_v20  ;;  %v3464_v6 = vsel %vm7951_vm3, 0, %v3462_v59 }
 0x4f6   :  { %v3454_v60 = vor.u32 4788187, %v3453_v5  ;;  %v3457_v34 = vcvt.s32.f32 %v3450_v35  ;;  %v3928_v38 = vmul.f32 %v7977_v52, %v7940_v36  ;;  %v3932_v42 = vmul.f32 %v7979_v56, %v7938_v3 }
 0x4f7   :  { %v3940_v27 = vmul.f32 %v7979_v56, %v7940_v36  ;;  %v3944_v62 = vmul.f32 %v7977_v52, %v7938_v3  ;;  %v3927_v12 = vmul.f32 %v7981_v23, %v7853_v47  ;;  %v3931_v17 = vmul.f32 %v7983_v11, %v7849_v13 }
 0x4f8   :  { %v3455_v45 = vand.u32 2147483647, %v3454_v60  ;;  %v3939_v43 = vmul.f32 %v7983_v11, %v7853_v47  ;;  %v3943_v4 = vmul.f32 %v7981_v23, %v7849_v13  ;;  %v3468_v10 = vadd.s32 3, %v3464_v6 }
 0x4f9   :  { %v3929_v29 = vmul.f32 %v7985_v0, %v7947_v63  ;;  %v3933_v40 = vmul.f32 %v7987_v18, %v7945_v32  ;;  %v3941_v46 = vmul.f32 %v7987_v18, %v7947_v63  ;;  %v3945_v57 = vmul.f32 %v7985_v0, %v7945_v32 }
 0x4fa   :  { %v3458_v51 = vmul.f32 %v3457_v34, %v3455_v45  ;;  %v8015_v25 = vadd.f32 %v3932_v42, %v3928_v38  ;;  %v8017_v49 = vsub.f32 %v3940_v27, %v3944_v62  ;;  %v8019_v7 = vadd.f32 %v3931_v17, %v3927_v12 }
 0x4fb   :  { %v8021_v35 = vsub.f32 %v3939_v43, %v3943_v4  ;;  %v3469_v5 = vand.u32 3, %v3468_v10  ;;  %v3881_v2 = vand.u32 3, %v3464_v6  ;;  %v8023_v16 = vadd.f32 %v3933_v40, %v3929_v29 }
 0x4fc   :  { %v3459_v21 = vxor.u32 2147483648, %v3458_v51  ;;  %v8025_v26 = vsub.f32 %v3941_v46, %v3945_v57  ;;  %v3960_v44 = vmul.f32 %v8015_v25, %v7940_v36  ;;  %v3964_v60 = vmul.f32 %v8017_v49, %v7938_v3 }
 0x4fd   :  { %v3972_v55 = vmul.f32 %v8017_v49, %v7940_v36  ;;  %v3976_v1 = vmul.f32 %v8015_v25, %v7938_v3  ;;  %v3959_v34 = vmul.f32 %v8019_v7, %v7853_v47  ;;  %v3971_v50 = vmul.f32 %v8021_v35, %v7853_v47 }
 0x4fe   :  { %v3460_v54 = vsel %vm3377_vm4, %v3459_v21, %v3458_v51  ;;  %v3963_v51 = vmul.f32 %v8021_v35, %v7849_v13  ;;  %v3975_v14 = vmul.f32 %v8019_v7, %v7849_v13  ;;  %vm3474_vm5 = vcmp.eq.s32.totalorder %v3469_v5, 2 }
 0x4ff   :  { %v3463_v48 = vsel %vm7951_vm3, %v7795_v19, %v3460_v54  ;;  %vm3886_vm7 = vcmp.eq.s32.totalorder %v3881_v2, 2  ;;  %v3961_v21 = vmul.f32 %v8023_v16, %v7947_v63  ;;  %v3965_v41 = vmul.f32 %v8025_v26, %v7945_v32 }
 0x500   :  { %6103 = vcosq.f32 %v3463_v48  ;;  %v3973_v8 = vmul.f32 %v8025_v26, %v7947_v63  ;;  %v3977_v37 = vmul.f32 %v8023_v16, %v7945_v32  ;;  %vm3471_vm8 = vcmp.eq.s32.totalorder %v3469_v5, 0 }
 0x501   :  { %6105 = vsinq.f32 %v3463_v48  ;;  %vm3883_vm9 = vcmp.eq.s32.totalorder %v3881_v2, 0  ;;  %vm3470_vm10 = vcmp.lt.s32.totalorder %v3469_v5, 2  ;;  %vm3882_vm11 = vcmp.lt.s32.totalorder %v3881_v2, 2 }
 0x502   :  { %vm3467_vm12 = vweird.f32 %v7795_v19  ;;  %v8052_v6 = vadd.f32 %v3964_v60, %v3960_v44  ;;  %v3969_v27 = vadd.f32 %v3965_v41, %v3961_v21  ;;  %v8058_v62 = vsub.f32 %v3973_v8, %v3977_v37 }
 0x503   :  { %v8067_v43 = vsub.f32 %v3972_v55, %v3976_v1  ;;  %v8069_v4 = vadd.f32 %v3963_v51, %v3959_v34  ;;  %v8071_v10 = vsub.f32 %v3971_v50, %v3975_v14 }
 0x504   :  { %v3992_v46 = vmul.f32 %v8052_v6, %v7940_v36  ;;  %v4008_v57 = vmul.f32 %v8052_v6, %v7938_v3  ;;  %v3993_v5 = vmul.f32 %v3969_v27, %v7947_v63  ;;  %v3997_v2 = vmul.f32 %v8058_v62, %v7945_v32 }
 0x505   :  { %v4005_v44 = vmul.f32 %v8058_v62, %v7947_v63  ;;  %v4009_v60 = vmul.f32 %v3969_v27, %v7945_v32  ;;  %v3996_v51 = vmul.f32 %v8067_v43, %v7938_v3  ;;  %v4004_v50 = vmul.f32 %v8067_v43, %v7940_v36 }
 0x506   :  { %v3991_v14 = vmul.f32 %v8069_v4, %v7853_v47  ;;  %v4007_v41 = vmul.f32 %v8069_v4, %v7849_v13  ;;  %v8111_v8 = vadd.f32 %v3997_v2, %v3993_v5 }
 0x507   :  { %v8113_v37 = vsub.f32 %v4005_v44, %v4009_v60 }
 0x508   :  { %v4025_v2 = vmul.f32 %v8111_v8, %v7947_v63 }
 0x509   :  { %v4029_v44 = vmul.f32 %v8113_v37, %v7945_v32  ;;  %v4037_v60 = vmul.f32 %v8113_v37, %v7947_v63 }
 0x50d   :  { %v6104_v45 = vpop.eup %6103 }
 0x50e   :  { %v6106_v53 = vpop.eup %6105  ;;  %v3475_v39 = vxor.u32 2147483648, %v6104_v45 }
 0x50f   :  { %v3472_v28 = vxor.u32 2147483648, %v6106_v53 }
 0x510   :  { %v3476_v9 = vsel %vm3474_vm5, %v3475_v39, %v6106_v53  ;;  %v3888_v15 = vsel %vm3886_vm7, %v3475_v39, %v6106_v53  ;;  %v3995_v53 = vmul.f32 %v8071_v10, %v7849_v13 }
 0x511   :  { %v3473_v20 = vsel %vm3471_vm8, %v6104_v45, %v3472_v28  ;;  %v3885_v54 = vsel %vm3883_vm9, %v6104_v45, %v3472_v28  ;;  %v4003_v28 = vmul.f32 %v8071_v10, %v7853_v47 }
 0x512   :  { %v3477_v48 = vsel %vm3470_vm10, %v3473_v20, %v3476_v9  ;;  %v3889_v59 = vsel %vm3882_vm11, %v3885_v54, %v3888_v15 }
 0x513   :  { %v8054_v38 = vsel %vm3467_vm12, nan, %v3477_v48  ;;  %v8056_v42 = vsel %vm3467_vm12, nan, %v3889_v59  ;;  %v8123_v48 = vadd.f32 %v3996_v51, %v3992_v46  ;;  %v8125_v59 = vsub.f32 %v4004_v50, %v4008_v57 }
 0x514   :  { %v3902_v12 = vmul.f32 %v8056_v42, %v8054_v38  ;;  %v3910_v17 = vmul.f32 %v8056_v42, %v8056_v42  ;;  %v3914_v19 = vmul.f32 %v8054_v38, %v8054_v38  ;;  %5883 = vmatprep.subr.mxu1 %v8056_v42  ;;  %v8131_v5 = vsub.f32 %v4003_v28, %v4007_v41 }
 0x515   :  { %v4041_v46 = vmul.f32 %v8111_v8, %v7945_v32  ;;  %v4028_v51 = vmul.f32 %v8125_v59, %v7938_v3  ;;  %v4036_v50 = vmul.f32 %v8125_v59, %v7940_v36 }
 0x516   :  { %v8073_v29 = vadd.f32 %v3902_v12, %v3902_v12  ;;  %v8075_v40 = vsub.f32 %v3910_v17, %v3914_v19  ;;  %v8129_v19 = vadd.f32 %v3995_v53, %v3991_v14  ;;  %v4040_v14 = vmul.f32 %v8123_v48, %v7938_v3 }
 0x518   :  { %v3930_v55 = vmul.f32 %v8073_v29, %v8056_v42  ;;  %v3934_v1 = vmul.f32 %v8075_v40, %v8054_v38  ;;  %v3942_v45 = vmul.f32 %v8075_v40, %v8056_v42  ;;  %v3946_v34 = vmul.f32 %v8073_v29, %v8054_v38 }
 0x519   :  { %v4023_v41 = vmul.f32 %v8129_v19, %v7853_v47 }
 0x51a   :  { %v8103_v39 = vadd.f32 %v3934_v1, %v3930_v55  ;;  %v8105_v21 = vsub.f32 %v3942_v45, %v3946_v34  ;;  %v4024_v34 = vmul.f32 %v8123_v48, %v7940_v36 }
 0x51c   :  { %v3962_v9 = vmul.f32 %v8103_v39, %v8056_v42  ;;  %v3966_v15 = vmul.f32 %v8105_v21, %v8054_v38  ;;  %v3974_v20 = vmul.f32 %v8105_v21, %v8056_v42  ;;  %v3978_v54 = vmul.f32 %v8103_v39, %v8054_v38 }
 0x51e   :  { %v3970_v12 = vadd.f32 %v3966_v15, %v3962_v9  ;;  %v8127_v17 = vsub.f32 %v3974_v20, %v3978_v54  ;;  %v4027_v9 = vmul.f32 %v8131_v5, %v7849_v13  ;;  %v8163_v15 = vadd.f32 %v4029_v44, %v4025_v2 }
 0x51f   :  { %v8165_v20 = vsub.f32 %v4037_v60, %v4041_v46  ;;  %v4035_v54 = vmul.f32 %v8131_v5, %v7853_v47  ;;  %v8182_v46 = vadd.f32 %v4028_v51, %v4024_v34 }
 0x520   :  { %v3994_v57 = vmul.f32 %v3970_v12, %v8056_v42  ;;  %v3998_v55 = vmul.f32 %v8127_v17, %v8054_v38  ;;  %v4006_v1 = vmul.f32 %v8127_v17, %v8056_v42  ;;  %v4010_v45 = vmul.f32 %v3970_v12, %v8054_v38  ;;  %5884 = vmatpush3.msra.mxu1 %v3970_v12 }
 0x521   :  { %5885 = vmatprep.subr.mxu1 %v7947_v63  ;;  %v4039_v12 = vmul.f32 %v8129_v19, %v7849_v13  ;;  %v8190_v24 = vadd.f32 %v4027_v9, %v4023_v41 }
 0x522   :  { %v4002_v53 = vadd.f32 %v3998_v55, %v3994_v57  ;;  %v8156_v28 = vsub.f32 %v4006_v1, %v4010_v45  ;;  %5886 = vmatpush3.msra.mxu1 %v3969_v27  ;;  %v4057_v1 = vmul.f32 %v8163_v15, %v7947_v63  ;;  %v4061_v45 = vmul.f32 %v8165_v20, %v7945_v32 }
 0x523   :  { %5887 = vmatprep.subr.mxu1 %v7940_v36  ;;  %v8192_v22 = vsub.f32 %v4035_v54, %v4039_v12  ;;  %v4055_v12 = vmul.f32 %v8190_v24, %v7853_v47 }
 0x524   :  { %5888 = vmatpush3.msra.mxu1 %v8052_v6  ;;  %v4026_v27 = vmul.f32 %v4002_v53, %v8056_v42  ;;  %v4030_v57 = vmul.f32 %v8156_v28, %v8054_v38  ;;  %v4038_v55 = vmul.f32 %v8156_v28, %v8056_v42  ;;  %v4042_v2 = vmul.f32 %v4002_v53, %v8054_v38 }
 0x525   :  { %5889 = vmatprep.subr.mxu1 %v7853_v47  ;;  %v8184_v6 = vsub.f32 %v4036_v50, %v4040_v14  ;;  %v4056_v14 = vmul.f32 %v8182_v46, %v7940_v36  ;;  %v4065_v54 = vadd.f32 %v4061_v45, %v4057_v1 }
 0x526   :  { %5890 = vmatpush3.msra.mxu1 %v8069_v4  ;;  %v4034_v44 = vadd.f32 %v4030_v57, %v4026_v27  ;;  %v8180_v60 = vsub.f32 %v4038_v55, %v4042_v2 }
 0x527   :  { %v4060_v41 = vmul.f32 %v8184_v6, %v7938_v3 }
 0x528   :  { %v4058_v30 = vmul.f32 %v4034_v44, %v8056_v42  ;;  %v4062_v4 = vmul.f32 %v8180_v60, %v8054_v38  ;;  %v8199_v34 = vmul.f32 %v8180_v60, %v8056_v42  ;;  %v8202_v51 = vmul.f32 %v4034_v44, %v8054_v38 }
 0x529   :  { %v4059_v42 = vmul.f32 %v8192_v22, %v7849_v13 }
 0x52a   :  { %v4066_v50 = vadd.f32 %v4062_v4, %v4058_v30  ;;  %v4078_v9 = vsub.f32 %v8199_v34, %v8202_v51  ;;  %v4064_v30 = vadd.f32 %v4060_v41, %v4056_v14 }
 0x52b   :  { %v4063_v27 = vadd.f32 %v4059_v42, %v4055_v12 }
 0x52c   :  { %5891 = vmatprep.subr.mxu1 %v4066_v50 }
 0x52d   :  { %5892 = vmatpush3.msra.mxu1 %v8103_v39  ;;  %v4099_v39 = vld [vmem:[#allocation7 + $0x60] sm:$0xff] }
 0x52e   :  { %5893 = vmatprep.subr.mxu1 %v4065_v54 }
 0x52f   :  { %5894 = vmatpush3.msra.mxu1 %v8023_v16  ;;  %v4096_v16 = vld [vmem:[#allocation7 + $0x48] sm:$0xff] }
 0x530   :  { %5895 = vmatprep.subr.mxu1 %v4064_v30 }
 0x531   :  { %5896 = vmatpush3.msra.mxu1 %v8015_v25  ;;  %v4103_v25 = vld [vmem:[#allocation2] sm:$0xff] }
 0x532   :  { %5897 = vmatprep.subr.mxu1 %v4063_v27 }
 0x533   :  { %5898 = vmatpush3.msra.mxu1 %v8019_v7  ;;  %v9048_v7 = vmov 0.0  }
 0x534   :  { %5899 = vmatprep.subr.mxu1 %v4034_v44 }
 0x535   :  { %5900 = vmatpush3.msra.mxu1 %v8073_v29  ;;  %v4100_v29 = vld [vmem:[#allocation7 + $0x68] sm:$0xff] }
 0x536   :  { %5901 = vmatprep.subr.mxu1 %v8163_v15 }
 0x537   :  { %5902 = vmatpush3.msra.mxu1 %v7985_v0  ;;  %v4087_v0 = vld [vmem:[#allocation7] sm:$0xff] }
 0x538   :  { %5903 = vmatprep.subr.mxu1 %v8182_v46 }
 0x539   :  { %5904 = vmatpush3.msra.mxu1 %v7977_v52  ;;  %v4092_v52 = vld [vmem:[#allocation7 + $0x28] sm:$0xff] }
 0x53a   :  { %5905 = vmatprep.subr.mxu1 %v8190_v24 }
 0x53b   :  { %5906 = vmatpush3.msra.mxu1 %v7981_v23  ;;  %v4091_v23 = vld [vmem:[#allocation7 + $0x20] sm:$0xff] }
 0x53c   :  { %5907 = vmatprep.subr.mxu1 %v4002_v53  ;;  %v4176_v53 = vpop.permute.xlu1 %4175 }
 0x53d   :  { %5908 = vmatpush3.msra.mxu1 %v8054_v38  ;;  %v4095_v38 = vld [vmem:[#allocation7 + $0x40] sm:$0xff] }
 0x53e   :  { %5909 = vmatprep.subr.mxu1 %v8111_v8  ;;  %v4090_v8 = vld [vmem:[#allocation7 + $0x18] sm:$0xff] }
 0x53f   :  { %5910 = vmatpush3.msra.mxu1 %v7945_v32 }
 0x540   :  { %5911 = vmatprep.subr.mxu1 %v8123_v48 }
 0x541   :  { %5912 = vmatpush3.msra.mxu1 %v7938_v3 }
 0x542   :  { %5913 = vmatprep.subr.mxu1 %v8129_v19 }
 0x543   :  { %5914 = vmatpush3.msra.mxu1 %v4103_v25 }
 0x544   :  { %4260 = vmatmul.mubr.f32.vlgmr.msra.gmra.mxu1 %v4087_v0  ;;  %4280 = vmatprep.subr.mxu1 %v9048_v7 }
 0x545   :  { %4281 = vmatpush1.msra.mxu1 %v8156_v28  ;;  %4264 = vmatprep.mubr.f32.mxu1 %v4092_v52 }
 0x546   :  { %4282 = vmatprep.subr.mxu1 %v9048_v7 }
 0x547   :  { %4283 = vmatpush1.msra.mxu1 %v8113_v37 }
 0x548   :  { %4265 = vmatmul.mubr.f32.gmra.mxu1 %v4091_v23  ;;  %4284 = vmatprep.subr.mxu1 %v9048_v7 }
 0x549   :  { %4285 = vmatpush1.msra.mxu1 %v8125_v59  ;;  %4269 = vmatprep.mubr.f32.mxu1 %v4096_v16 }
 0x54a   :  { %4286 = vmatprep.subr.mxu1 %v9048_v7 }
 0x54b   :  { %4287 = vmatpush1.msra.mxu1 %v8131_v5 }
 0x54c   :  { %4270 = vmatmul.mubr.f32.gmra.mxu1 %v4095_v38  ;;  %4288 = vmatprep.subr.mxu1 %v9048_v7 }
 0x54d   :  { %4289 = vmatpush1.msra.mxu1 %v8127_v17  ;;  %4274 = vmatprep.mubr.f32.mxu1 %v4100_v29 }
 0x54e   :  { %4290 = vmatprep.subr.mxu1 %v9048_v7 }
 0x54f   :  { %4291 = vmatpush1.msra.mxu1 %v8058_v62  ;;  %v4097_v62 = vld [vmem:[#allocation7 + $0x50] sm:$0xff] }
 0x550   :  { %4275 = vmatmul.mubr.f32.gmra.mxu1 %v4099_v39  ;;  %4292 = vmatprep.subr.mxu1 %v9048_v7 }
 0x551   :  { %4293 = vmatpush1.msra.mxu1 %v8067_v43  ;;  %5752 = vmatprep.mubr.msk.f32.mxu1 %vm1578_vm6, %v4090_v8  ;;  %v4102_v43 = vld [vmem:[#allocation7 + $0x78] sm:$0xff] }
 0x552   :  { %4294 = vmatprep.subr.mxu1 %v9048_v7 }
 0x553   :  { %4295 = vmatpush1.msra.mxu1 %v8071_v10  ;;  %v4101_v10 = vld [vmem:[#allocation7 + $0x70] sm:$0xff] }
 0x554   :  { %4296 = vmatprep.subr.mxu1 %v9048_v7 }
 0x555   :  { %4297 = vmatpush1.msra.mxu1 %v8105_v21 }
 0x556   :  { %4298 = vmatprep.subr.mxu1 %v9048_v7 }
 0x557   :  { %4299 = vmatpush1.msra.mxu1 %v8025_v26  ;;  %v4069_v26 = vmul.f32 %v8165_v20, %v7947_v63 }
 0x558   :  { %4300 = vmatprep.subr.mxu1 %v9048_v7 }
 0x559   :  { %4301 = vmatpush1.msra.mxu1 %v8017_v49  ;;  %v4073_v49 = vmul.f32 %v8163_v15, %v7945_v32  ;;  %v4067_v32 = vmul.f32 %v8192_v22, %v7853_v47  ;;  %v4093_v47 = vld [vmem:[#allocation7 + $0x30] sm:$0xff]  ;;  %v8296_v15 = vpop.permute.xlu0 %4180 }
 0x55a   :  { %4302 = vmatprep.subr.mxu1 %v9048_v7 }
 0x55b   :  { %4303 = vmatpush1.msra.mxu1 %v8021_v35  ;;  %v4068_v35 = vmul.f32 %v8184_v6, %v7940_v36  ;;  %v4077_v63 = vsub.f32 %v4069_v26, %v4073_v49 }
 0x55c   :  { %4304 = vmatprep.subr.mxu1 %v9048_v7 }
 0x55d   :  { %4305 = vmatpush1.msra.mxu1 %v8075_v40 }
 0x55e   :  { %4306 = vmatprep.subr.mxu1 %v9048_v7 }
 0x55f   :  { %4307 = vmatpush1.msra.mxu1 %v7987_v18  ;;  %v4072_v18 = vmul.f32 %v8182_v46, %v7938_v3 }
 0x560   :  { %4308 = vmatprep.subr.mxu1 %v9048_v7 }
 0x561   :  { %4309 = vmatpush1.msra.mxu1 %v7979_v56  ;;  %v4071_v56 = vmul.f32 %v8190_v24, %v7849_v13  ;;  %v4076_v36 = vsub.f32 %v4068_v35, %v4072_v18  ;;  %v4089_v24 = vld [vmem:[#allocation7 + $0x10] sm:$0xff]  ;;  %v4094_v13 = vld [vmem:[#allocation7 + $0x38] sm:$0xff] }
 0x562   :  { %4310 = vmatprep.subr.mxu1 %v9048_v7 }
 0x563   :  { %4311 = vmatpush1.msra.mxu1 %v7983_v11  ;;  %v4075_v3 = vsub.f32 %v4067_v32, %v4071_v56  ;;  %v4098_v11 = vld [vmem:[#allocation7 + $0x58] sm:$0xff]  ;;  %v9049_v56 = vmov 683565275  }
 0x564   :  { %4328 = vmatprep.subr.mxu1 %v9048_v7 }
 0x565   :  { %4329 = vmatpush2.msra.mxu1 %v4078_v9 }
 0x566   :  { %4330 = vmatprep.subr.mxu1 %v9048_v7 }
 0x567   :  { %4331 = vmatpush2.msra.mxu1 %v4077_v63 }
 0x568   :  { %4332 = vmatprep.subr.mxu1 %v9048_v7 }
 0x569   :  { %4333 = vmatpush2.msra.mxu1 %v4076_v36 }
 0x56a   :  { %4334 = vmatprep.subr.mxu1 %v9048_v7 }
 0x56b   :  { %4335 = vmatpush2.msra.mxu1 %v4075_v3  ;;  %v9050_v3 = vmov 2475754826  }
 0x56c   :  { %4336 = vmatprep.subr.mxu1 %v9048_v7 }
 0x56d   :  { %4337 = vmatpush2.msra.mxu1 %v8180_v60  ;;  %v4171_v60 = vpop.permute.xlu0 %4170 }
 0x56e   :  { %4338 = vmatprep.subr.mxu1 %v9048_v7 }
 0x56f   :  { %4339 = vmatpush2.msra.mxu1 %v8165_v20  ;;  %v4166_v20 = vpop.permute.xlu1 %4165 }
 0x570   :  { %4340 = vmatprep.subr.mxu1 %v9048_v7 }
 0x571   :  { %4341 = vmatpush2.msra.mxu1 %v8184_v6 }
 0x572   :  { %4342 = vmatprep.subr.mxu1 %v9048_v7 }
 0x573   :  { %4343 = vmatpush2.msra.mxu1 %v8192_v22 }
 0x574   :  { %4345 = vmatmul.mubr.f32.vlgmr.msra.gmra.mxu1 %v4089_v24 }
 0x575   :  { %5753 = vmatprep.mubr.msk.f32.mxu1 %vm1578_vm6, %v4094_v13 }
 0x578   :  { %4350 = vmatmul.mubr.f32.gmra.mxu1 %v4093_v47 }
 0x579   :  { %5754 = vmatprep.mubr.msk.f32.mxu1 %vm1578_vm6, %v4098_v11 }
 0x57c   :  { %4355 = vmatmul.mubr.f32.gmra.mxu1 %v4097_v62 }
 0x57d   :  { %5755 = vmatprep.mubr.msk.f32.mxu1 %vm1578_vm6, %v4102_v43 }
 0x580   :  { %4360 = vmatmul.mubr.f32.gmra.mxu1 %v4101_v10 }
 0x604   :  { %v5915_v40 = vpop.f32.mrf.mxu1 }
 0x606   :  { %v5916_v21 = vpop.f32.mrf.mxu1 }
 0x607   :  { %v5917_v28 = vadd.f32 %v5916_v21, %v5915_v40 }
 0x608   :  { %v5918_v37 = vpop.f32.mrf.mxu1 }
 0x609   :  { %v4262_v55 = vadd.f32 %v5917_v28, %v4166_v20 }
 0x60a   :  { %v5919_v48 = vpop.f32.mrf.mxu1 }
 0x60b   :  { %v5920_v57 = vadd.f32 %v5919_v48, %v5918_v37 }
 0x60c   :  { %v5921_v22 = vpop.f32.mrf.mxu1 }
 0x60d   :  { %v4267_v45 = vadd.f32 %v5920_v57, %v4171_v60 }
 0x60e   :  { %v5922_v59 = vpop.f32.mrf.mxu1 }
 0x60f   :  { %v5923_v4 = vadd.f32 %v5922_v59, %v5921_v22 }
 0x610   :  { %v5924_v17 = vpop.f32.mrf.mxu1 }
 0x611   :  { %v4272_v42 = vadd.f32 %v5923_v4, %v4176_v53 }
 0x612   :  { %v5925_v19 = vpop.f32.mrf.mxu1 }
 0x613   :  { %v8294_v5 = vadd.f32 %v5925_v19, %v5924_v17 }
 0x634   :  { %v4346_v2 = vpop.f32.mrf.mxu1 }
 0x635   :  { %v8298_v44 = vadd.f32 %v4346_v2, %v4262_v55 }
 0x636   :  { %v4348_v46 = vpop.f32.mrf.mxu1 }
 0x637   :  { %v4365_v6 = vand.u32 2147483647, %v8298_v44  ;;  %v4368_v1 = vand.u32 2139095040, %v8298_v44  ;;  %vm4367_vm11 = vcmp.lt.s32.totalorder %v8298_v44, 0 }
 0x638   :  { %v4351_v34 = vpop.f32.mrf.mxu1 }
 0x639   :  { %v4369_v51 = vshrl.u32 %v4368_v1, 23  ;;  %v8302_v50 = vadd.f32 %v4351_v34, %v4267_v45  ;;  %v4372_v14 = vand.u32 8388607, %v4365_v6 }
 0x63a   :  { %v4353_v41 = vpop.f32.mrf.mxu1 }
 0x63b   :  { %v5756_v9 = vadd.s32 4294967169, %v4369_v51  ;;  %v4469_v54 = vand.u32 2147483647, %v8302_v50  ;;  %v4472_v12 = vand.u32 2139095040, %v8302_v50  ;;  %v4373_v0 = vor.u32 8388608, %v4372_v14 }
 0x63c   :  { %v4356_v30 = vpop.f32.mrf.mxu1 }
 0x63d   :  { %v4375_v27 = vadd.s32 1, %v5756_v9  ;;  %v4473_v25 = vshrl.u32 %v4472_v12, 23  ;;  %v4476_v52 = vand.u32 8388607, %v4469_v54  ;;  %v8310_v23 = vadd.f32 %v4356_v30, %v4272_v42 }
 0x63e   :  { %v4358_v16 = vpop.f32.mrf.mxu1  ;;  %v8314_v49 = vshll.u32 %v4373_v0, 8  ;;  %v4277_v12 = vadd.f32 %v8294_v5, %v8296_v15 }
 0x63f   :  { %vm4376_vm13 = vcmp.gt.s32.totalorder %v4375_v27, 0  ;;  %v5760_v29 = vadd.s32 4294967169, %v4473_v25  ;;  %v4477_v35 = vor.u32 8388608, %v4476_v52  ;;  %v4576_v18 = vand.u32 2139095040, %v8310_v23 }
 0x640   :  { %v4377_v38 = vsel %vm4376_vm13, %v4375_v27, 0  ;;  %v8312_v39 = vpop.f32.mrf.mxu1  ;;  %vm8413_vm13 = vcmp.le.f32.partialorder %v4365_v6, 0.7853982 }
 0x641   :  { %v4378_v8 = vshrl.u32 %v4377_v38, 5  ;;  %v4379_v26 = vand.u32 31, %v4377_v38  ;;  %v4479_v13 = vadd.s32 1, %v5760_v29  ;;  %v4517_v16 = vshll.u32 %v4477_v35, 8 }
 0x642   :  { %v4363_v63 = vpop.f32.mrf.mxu1  ;;  %v4577_v38 = vshrl.u32 %v4576_v18, 23 }
 0x643   :  { %v4380_v32 = vsub.s32 32, %v4379_v26  ;;  %v4382_v36 = vshll.u32 %v9049_v56, %v4379_v26  ;;  %v4385_v24 = vshll.u32 %v9050_v3, %v4379_v26  ;;  %v4388_v47 = vshll.u32 %v9040_v31, %v4379_v26 }
 0x644   :  { %v4391_v11 = vshll.u32 %v9041_v58, %v4379_v26  ;;  %v4394_v62 = vshll.u32 %v9034_v33, %v4379_v26  ;;  %vm4397_vm14 = vcmp.lt.s32.totalorder %v4378_v8, 1  ;;  %vm4398_vm15 = vcmp.lt.s32.totalorder %v4378_v8, 2 }
 0x645   :  { %v4383_v43 = vshrl.u32 %v9050_v3, %v4380_v32  ;;  %v4386_v10 = vshrl.u32 %v9040_v31, %v4380_v32  ;;  %v4389_v40 = vshrl.u32 %v9041_v58, %v4380_v32  ;;  %v4381_v21 = vshrl.u32 %v9049_v56, %v4380_v32 }
 0x646   :  { %v4392_v37 = vshrl.u32 %v9034_v33, %v4380_v32  ;;  %v4395_v48 = vshrl.u32 %v9035_v61, %v4380_v32  ;;  %vm4399_vm1 = vcmp.lt.s32.totalorder %v4378_v8, 3  ;;  %vm4480_vm2 = vcmp.gt.s32.totalorder %v4479_v13, 0 }
 0x647   :  { %v4384_v22 = vor.u32 %v4383_v43, %v4382_v36  ;;  %v4387_v59 = vor.u32 %v4386_v10, %v4385_v24  ;;  %v4390_v17 = vor.u32 %v4389_v40, %v4388_v47  ;;  %vm4400_vm0 = vcmp.lt.s32.totalorder %v4378_v8, 4 }
 0x648   :  { %v4393_v19 = vor.u32 %v4392_v37, %v4391_v11  ;;  %v4396_v53 = vor.u32 %v4395_v48, %v4394_v62  ;;  %v4481_v28 = vsel %vm4480_vm2, %v4479_v13, 0 }
 0x649   :  { %v4401_v20 = vsel %vm4397_vm14, %v4381_v21, %v4384_v22  ;;  %v4402_v57 = vsel %vm4400_vm0, %v4390_v17, 2102212464  ;;  %v4405_v55 = vsel %vm4397_vm14, %v4384_v22, %v4387_v59  ;;  %v4409_v2 = vsel %vm4397_vm14, %v4387_v59, %v4390_v17 }
 0x64a   :  { %v4403_v60 = vsel %vm4399_vm1, %v4387_v59, %v4402_v57  ;;  %v4406_v46 = vsel %vm4400_vm0, %v4393_v19, 920167782  ;;  %v4410_v1 = vsel %vm4400_vm0, %v4396_v53, 1326507024  ;;  %v4482_v45 = vshrl.u32 %v4481_v28, 5 }
 0x64b   :  { %v4404_v4 = vsel %vm4398_vm15, %v4401_v20, %v4403_v60  ;;  %v4407_v34 = vsel %vm4399_vm1, %v4390_v17, %v4406_v46  ;;  %v4411_v51 = vsel %vm4399_vm1, %v4393_v19, %v4410_v1  ;;  %v4483_v14 = vand.u32 31, %v4481_v28 }
 0x64c   :  { %v4408_v41 = vsel %vm4398_vm15, %v4405_v55, %v4407_v34  ;;  %v4412_v9 = vsel %vm4398_vm15, %v4409_v2, %v4411_v51  ;;  %v4420_v25 = vmul.u32 %v8314_v49, %v4404_v4  ;;  %vm4501_vm3 = vcmp.lt.s32.totalorder %v4482_v45, 1 }
 0x64d   :  { %v8340_v42 = vmul.u32.u64.low %v8314_v49, %v4412_v9  ;;  %v8341_v30 = vmul.u32.u64.high %v8314_v49, %v4412_v9, %v8340_v42  ;;  %v8344_v27 = vmul.u32.u64.low %v8314_v49, %v4408_v41  ;;  %v8345_v0 = vmul.u32.u64.high %v8314_v49, %v4408_v41, %v8344_v27 }
 0x64e   :  { %v4484_v52 = vsub.s32 32, %v4483_v14  ;;  %v4486_v29 = vshll.u32 %v9049_v56, %v4483_v14  ;;  %v4489_v8 = vshll.u32 %v9050_v3, %v4483_v14  ;;  %v4492_v5 = vshll.u32 %v9040_v31, %v4483_v14 }
 0x64f   :  { %v4495_v32 = vshll.u32 %v9041_v58, %v4483_v14  ;;  %vm4422_vm4 = vc.u32 %v8341_v30, %v8344_v27  ;;  %v4423_v49 = vadd.s32 1, %v8345_v0  ;;  %v4498_v18 = vshll.u32 %v9034_v33, %v4483_v14 }
 0x650   :  { %v4487_v15 = vshrl.u32 %v9050_v3, %v4484_v52  ;;  %v4490_v26 = vshrl.u32 %v9040_v31, %v4484_v52  ;;  %v4493_v63 = vshrl.u32 %v9041_v58, %v4484_v52  ;;  %v4496_v35 = vshrl.u32 %v9034_v33, %v4484_v52 }
 0x651   :  { %v4499_v47 = vshrl.u32 %v9035_v61, %v4484_v52  ;;  %v4424_v11 = vsel %vm4422_vm4, %v4423_v49, %v8345_v0  ;;  %vm4503_vm5 = vcmp.lt.s32.totalorder %v4482_v45, 3  ;;  %vm4504_vm7 = vcmp.lt.s32.totalorder %v4482_v45, 4 }
 0x652   :  { %v4488_v36 = vor.u32 %v4487_v15, %v4486_v29  ;;  %v4491_v24 = vor.u32 %v4490_v26, %v4489_v8  ;;  %v4494_v13 = vor.u32 %v4493_v63, %v4492_v5  ;;  %v4497_v62 = vor.u32 %v4496_v35, %v4495_v32 }
 0x653   :  { %v4425_v43 = vadd.s32 %v4424_v11, %v4420_v25  ;;  %v4485_v10 = vshrl.u32 %v9049_v56, %v4484_v52  ;;  %v4500_v40 = vor.u32 %v4499_v47, %v4498_v18  ;;  %v5764_v59 = vadd.s32 4294967169, %v4577_v38 }
 0x654   :  { %v4506_v21 = vsel %vm4504_vm7, %v4494_v13, 2102212464  ;;  %v4509_v37 = vsel %vm4501_vm3, %v4488_v36, %v4491_v24  ;;  %v4510_v48 = vsel %vm4504_vm7, %v4497_v62, 920167782  ;;  %v4513_v22 = vsel %vm4501_vm3, %v4491_v24, %v4494_v13 }
 0x655   :  { %v4426_v17 = vadd.s32 536870912, %v4425_v43  ;;  %vm4502_vm8 = vcmp.lt.s32.totalorder %v4482_v45, 2  ;;  %v4511_v19 = vsel %vm4503_vm5, %v4494_v13, %v4510_v48  ;;  %v4514_v53 = vsel %vm4504_vm7, %v4500_v40, 1326507024 }
 0x656   :  { %v4505_v28 = vsel %vm4501_vm3, %v4485_v10, %v4488_v36  ;;  %v4507_v20 = vsel %vm4503_vm5, %v4491_v24, %v4506_v21  ;;  %v4512_v57 = vsel %vm4502_vm8, %v4509_v37, %v4511_v19  ;;  %v4515_v55 = vsel %vm4503_vm5, %v4497_v62, %v4514_v53 }
 0x657   :  { %v4427_v2 = vshrl.u32 %v4426_v17, 30  ;;  %v4516_v60 = vsel %vm4502_vm8, %v4513_v22, %v4515_v55  ;;  %v8370_v46 = vmul.u32.u64.low %v4517_v16, %v4512_v57  ;;  %v8371_v1 = vmul.u32.u64.high %v4517_v16, %v4512_v57, %v8370_v46 }
 0x658   :  { %v8373_v4 = vmul.u32.u64.low %v4517_v16, %v4516_v60  ;;  %v8374_v34 = vmul.u32.u64.high %v4517_v16, %v4516_v60, %v8373_v4  ;;  %v4573_v51 = vand.u32 2147483647, %v8310_v23  ;;  %v4583_v14 = vadd.s32 1, %v5764_v59 }
 0x659   :  { %v4428_v41 = vshll.u32 %v4427_v2, 30  ;;  %v4508_v9 = vsel %vm4502_vm8, %v4505_v28, %v4507_v20  ;;  %v8378_v42 = vadd.f32 %v8312_v39, %v4277_v12  ;;  %v4527_v45 = vadd.s32 1, %v8371_v1 }
 0x65a   :  { %vm4584_vm9 = vcmp.gt.s32.totalorder %v4583_v14, 0  ;;  %v4524_v52 = vmul.u32 %v4517_v16, %v4508_v9  ;;  %vm4526_vm10 = vc.u32 %v8374_v34, %v8370_v46  ;;  %v4580_v38 = vand.u32 8388607, %v4573_v51 }
 0x65b   :  { %v4429_v0 = vsub.s32 %v4425_v43, %v4428_v41  ;;  %v4585_v25 = vsel %vm4584_vm9, %v4583_v14, 0  ;;  %v4528_v8 = vsel %vm4526_vm10, %v4527_v45, %v8371_v1  ;;  %v4421_v35 = vadd.s32 %v8344_v27, %v8341_v30 }
 0x65c   :  { %v4529_v5 = vadd.s32 %v4528_v8, %v4524_v52  ;;  %v4587_v15 = vand.u32 31, %v4585_v25  ;;  %v4581_v39 = vor.u32 8388608, %v4580_v38  ;;  %v4451_v13 = vsub.s32 4, %v4427_v2 }
 0x65d   :  { %v4431_v29 = vsub.s32 0, %v4429_v0  ;;  %v8394_v47 = vshrl.u32 %v4585_v25, 5  ;;  %v4525_v45 = vadd.s32 %v8370_v46, %v8374_v34  ;;  %vm4471_vm4 = vcmp.lt.s32.totalorder %v8302_v50, 0 }
 0x65e   :  { %v4530_v63 = vadd.s32 536870912, %v4529_v5  ;;  %v4588_v12 = vsub.s32 32, %v4587_v15  ;;  %v8392_v24 = vshll.u32 %v4581_v39, 8  ;;  %v4590_v11 = vshll.u32 %v9049_v56, %v4587_v15 }
 0x65f   :  { %v5757_v26 = vmin.u32 %v4431_v29, %v4429_v0  ;;  %v4593_v21 = vshll.u32 %v9050_v3, %v4587_v15  ;;  %v4596_v59 = vshll.u32 %v9040_v31, %v4587_v15  ;;  %v4599_v17 = vshll.u32 %v9041_v58, %v4587_v15 }
 0x660   :  { %v8385_v49 = vshrl.u32 %v4530_v63, 30  ;;  %v4591_v36 = vshrl.u32 %v9050_v3, %v4588_v12  ;;  %v4594_v10 = vshrl.u32 %v9040_v31, %v4588_v12  ;;  %v4600_v40 = vshrl.u32 %v9034_v33, %v4588_v12 }
 0x661   :  { %v4433_v32 = vclz %v5757_v26  ;;  %v4597_v37 = vshrl.u32 %v9041_v58, %v4588_v12  ;;  %v4603_v20 = vshrl.u32 %v9035_v61, %v4588_v12  ;;  %v4602_v1 = vshll.u32 %v9034_v33, %v4587_v15 }
 0x662   :  { %v4532_v18 = vshll.u32 %v8385_v49, 30  ;;  %v4592_v22 = vor.u32 %v4591_v36, %v4590_v11  ;;  %v4595_v55 = vor.u32 %v4594_v10, %v4593_v21  ;;  %v4601_v60 = vor.u32 %v4600_v40, %v4599_v17 }
 0x663   :  { %v5758_v16 = vadd.s32 4294967294, %v4433_v32  ;;  %v4452_v41 = vsel %vm4367_vm11, %v4451_v13, %v4427_v2  ;;  %v4598_v9 = vor.u32 %v4597_v37, %v4596_v59  ;;  %v4604_v52 = vor.u32 %v4603_v20, %v4602_v1 }
 0x664   :  { %v8397_v43 = vsub.s32 %v4529_v5, %v4532_v18  ;;  %vm4605_vm14 = vcmp.lt.s32.totalorder %v8394_v47, 1  ;;  %v4589_v29 = vshrl.u32 %v9049_v56, %v4588_v12  ;;  %vm4607_vm15 = vcmp.lt.s32.totalorder %v8394_v47, 3 }
 0x665   :  { %vm5759_vm12 = vcmp.lt.s32.totalorder %v5758_v16, 0  ;;  %vm4608_vm1 = vcmp.lt.s32.totalorder %v8394_v47, 4  ;;  %v4613_v5 = vsel %vm4605_vm14, %v4592_v22, %v4595_v55  ;;  %v4617_v34 = vsel %vm4605_vm14, %v4595_v55, %v4598_v9 }
 0x666   :  { %v4436_v62 = vsel %vm5759_vm12, 0, %v5758_v16  ;;  %v4535_v48 = vsub.s32 0, %v8397_v43  ;;  %v4614_v6 = vsel %vm4608_vm1, %v4601_v60, 920167782  ;;  %v4610_v26 = vsel %vm4608_vm1, %v4598_v9, 2102212464 }
 0x667   :  { %v4437_v30 = vsub.s32 32, %v4436_v62  ;;  %v4441_v27 = vsub.s32 4294967266, %v4436_v62  ;;  %v4438_v19 = vshll.u32 %v4429_v0, %v4436_v62  ;;  %v4615_v46 = vsel %vm4607_vm15, %v4598_v9, %v4614_v6 }
 0x668   :  { %v5761_v57 = vmin.u32 %v4535_v48, %v8397_v43  ;;  %vm4606_vm0 = vcmp.lt.s32.totalorder %v8394_v47, 2  ;;  %v4609_v63 = vsel %vm4605_vm14, %v4589_v29, %v4592_v22  ;;  %v4618_v39 = vsel %vm4608_vm1, %v4604_v52, 1326507024 }
 0x669   :  { %v4439_v53 = vshrl.u32 %v4421_v35, %v4437_v30  ;;  %v4442_v28 = vadd.s32 127, %v4441_v27  ;;  %v4616_v16 = vsel %vm4606_vm0, %v4613_v5, %v4615_v46  ;;  %v4619_v35 = vsel %vm4607_vm15, %v4601_v60, %v4618_v39 }
 0x66a   :  { %v4537_v25 = vclz %v5761_v57  ;;  %v4611_v13 = vsel %vm4607_vm15, %v4595_v55, %v4610_v26  ;;  %v4620_v11 = vsel %vm4606_vm0, %v4617_v34, %v4619_v35  ;;  %v4454_v59 = vsel %vm8413_vm13, 0, %v4452_v41 }
 0x66b   :  { %v4440_v4 = vor.u32 %v4439_v53, %v4438_v19  ;;  %v4443_v14 = vshll.u32 %v4442_v28, 23  ;;  %v8435_v40 = vmul.u32.u64.low %v8392_v24, %v4620_v11  ;;  %v8436_v30 = vmul.u32.u64.high %v8392_v24, %v4620_v11, %v8435_v40 }
 0x66c   :  { %v5762_v8 = vadd.s32 4294967294, %v4537_v25  ;;  %v8439_v37 = vmul.u32.u64.low %v8392_v24, %v4616_v16  ;;  %v8440_v48 = vmul.u32.u64.high %v8392_v24, %v4616_v16, %v8439_v37  ;;  %v4555_v17 = vsub.s32 4, %v8385_v49 }
 0x66d   :  { %v4444_v38 = vor.u32 4788187, %v4443_v14  ;;  %v4447_v2 = vcvt.s32.f32 %v4440_v4  ;;  %v4612_v20 = vsel %vm4606_vm0, %v4609_v63, %v4611_v13  ;;  %v4677_v1 = vand.u32 2147483647, %v8378_v42 }
 0x66e   :  { %vm5763_vm2 = vcmp.lt.s32.totalorder %v5762_v8, 0  ;;  %vm4630_vm3 = vc.u32 %v8436_v30, %v8439_v37  ;;  %v4631_v60 = vadd.s32 1, %v8440_v48  ;;  %v4458_v4 = vadd.s32 3, %v4454_v59 }
 0x66f   :  { %v4445_v15 = vand.u32 2147483647, %v4444_v38  ;;  %v4540_v32 = vsel %vm5763_vm2, 0, %v5762_v8  ;;  %v4628_v14 = vmul.u32 %v8392_v24, %v4612_v20  ;;  %v4556_v0 = vsel %vm4471_vm4, %v4555_v17, %v8385_v49 }
 0x670   :  { %v4541_v18 = vsub.s32 32, %v4540_v32  ;;  %v4545_v36 = vsub.s32 4294967266, %v4540_v32  ;;  %v4542_v10 = vshll.u32 %v8397_v43, %v4540_v32  ;;  %v4680_v43 = vand.u32 2139095040, %v8378_v42 }
 0x671   :  { %v4448_v12 = vmul.f32 %v4447_v2, %v4445_v15  ;;  %v5452_v25 = vlaneseq  ;;  %v4874_v29 = vand.u32 3, %v4454_v59  ;;  %vm8466_vm5 = vcmp.le.f32.partialorder %v4469_v54, 0.7853982 }
 0x672   :  { %v4543_v27 = vshrl.u32 %v4525_v45, %v4541_v18  ;;  %v4546_v21 = vadd.s32 127, %v4545_v36  ;;  %v4681_v57 = vshrl.u32 %v4680_v43, 23  ;;  %v4632_v45 = vsel %vm4630_vm3, %v4631_v60, %v8440_v48 }
 0x673   :  { %v4449_v62 = vxor.u32 2147483648, %v4448_v12  ;;  %v4633_v52 = vadd.s32 %v4632_v45, %v4628_v14  ;;  %v4684_v8 = vand.u32 8388607, %v4677_v1  ;;  %v4558_v5 = vsel %vm8466_vm5, 0, %v4556_v0 }
 0x674   :  { %v4544_v53 = vor.u32 %v4543_v27, %v4542_v10  ;;  %v4547_v28 = vshll.u32 %v4546_v21, 23  ;;  %v5768_v41 = vadd.s32 4294967169, %v4681_v57  ;;  %v4459_v6 = vand.u32 3, %v4458_v4 }
 0x675   :  { %v4450_v22 = vsel %vm4367_vm11, %v4449_v62, %v4448_v12  ;;  %v4634_v49 = vadd.s32 536870912, %v4633_v52  ;;  %v8474_v46 = vshrl.u32 %v5452_v25, 7  ;;  %vm4575_vm8 = vcmp.lt.s32.totalorder %v8310_v23, 0 }
 0x676   :  { %v4453_v19 = vsel %vm8413_vm13, %v8298_v44, %v4450_v22  ;;  %v4548_v55 = vor.u32 4788187, %v4547_v28  ;;  %v4551_v47 = vcvt.s32.f32 %v4544_v53  ;;  %v4687_v38 = vadd.s32 1, %v5768_v41 }
 0x677   :  { %6107 = vcosq.f32 %v4453_v19  ;;  %v4635_v54 = vshrl.u32 %v4634_v49, 30  ;;  %vm4875_vm9 = vcmp.lt.s32.totalorder %v4874_v29, 2  ;;  %v4562_v39 = vadd.s32 3, %v4558_v5 }
 0x678   :  { %6109 = vsinq.f32 %v4453_v19  ;;  %v4549_v9 = vand.u32 2147483647, %v4548_v55  ;;  %vm4688_vm7 = vcmp.gt.s32.totalorder %v4687_v38, 0  ;;  %v4685_v12 = vor.u32 8388608, %v4684_v8 }
 0x679   :  { %v4689_v26 = vsel %vm4688_vm7, %v4687_v38, 0  ;;  %vm4457_vm10 = vweird.f32 %v8298_v44  ;;  %vm4876_vm11 = vcmp.eq.s32.totalorder %v4874_v29, 0  ;;  %vm4879_vm12 = vcmp.eq.s32.totalorder %v4874_v29, 2 }
 0x67a   :  { %v4552_v24 = vmul.f32 %v4551_v47, %v4549_v9  ;;  %v8477_v34 = vand.u32 31, %v4689_v26  ;;  %vm8487_vm13 = vcmp.le.f32.partialorder %v4573_v51, 0.7853982  ;;  %v4636_v35 = vshll.u32 %v4635_v54, 30 }
 0x67b   :  { %vm4460_vm14 = vcmp.lt.s32.totalorder %v4459_v6, 2  ;;  %v4659_v18 = vsub.s32 4, %v4635_v54  ;;  %vm4461_vm15 = vcmp.eq.s32.totalorder %v4459_v6, 0  ;;  %vm4464_vm1 = vcmp.eq.s32.totalorder %v4459_v6, 2 }
 0x67c   :  { %v4553_v15 = vxor.u32 2147483648, %v4552_v24  ;;  %v4692_v36 = vsub.s32 32, %v8477_v34  ;;  %v8492_v13 = vsub.s32 %v4633_v52, %v4636_v35  ;;  %v8494_v62 = vand.u32 3, %v4562_v39 }
 0x67d   :  { %v8496_v10 = vand.u32 3, %v4558_v5  ;;  %v4629_v51 = vadd.s32 %v8439_v37, %v8436_v30  ;;  %v8500_v40 = vshll.u32 %v4685_v12, 8  ;;  %v8503_v22 = vshrl.u32 %v4689_v26, 5 }
 0x67e   :  { %v4554_v63 = vsel %vm4471_vm4, %v4553_v15, %v4552_v24  ;;  %v4639_v48 = vsub.s32 0, %v8492_v13  ;;  %v4694_v59 = vshll.u32 %v9049_v56, %v8477_v34  ;;  %v4660_v43 = vsel %vm4575_vm8, %v4659_v18, %v4635_v54 }
 0x67f   :  { %v4557_v32 = vsel %vm8466_vm5, %v8302_v50, %v4554_v63  ;;  %v4695_v19 = vshrl.u32 %v9050_v3, %v4692_v36  ;;  %v4698_v53 = vshrl.u32 %v9040_v31, %v4692_v36  ;;  %v4701_v20 = vshrl.u32 %v9041_v58, %v4692_v36 }
 0x680   :  { %6111 = vcosq.f32 %v4557_v32  ;;  %v5765_v28 = vmin.u32 %v4639_v48, %v8492_v13  ;;  %v4697_v60 = vshll.u32 %v9050_v3, %v8477_v34  ;;  %v4700_v4 = vshll.u32 %v9040_v31, %v8477_v34 }
 0x681   :  { %6113 = vsinq.f32 %v4557_v32  ;;  %vm4568_vm2 = vcmp.eq.s32.totalorder %v8494_v62, 2  ;;  %vm4982_vm0 = vcmp.eq.s32.totalorder %v8496_v10, 2  ;;  %v4693_v47 = vshrl.u32 %v9049_v56, %v4692_v36 }
 0x682   :  { %v4641_v9 = vclz %v5765_v28  ;;  %vm4565_vm3 = vcmp.eq.s32.totalorder %v8494_v62, 0  ;;  %vm4979_vm4 = vcmp.eq.s32.totalorder %v8496_v10, 0  ;;  %v8538_v31 = vsel %vm8487_vm13, 0, %v4660_v43 }
 0x683   :  { %v4696_v45 = vor.u32 %v4695_v19, %v4694_v59  ;;  %vm4564_vm5 = vcmp.lt.s32.totalorder %v8494_v62, 2  ;;  %vm4978_vm7 = vcmp.lt.s32.totalorder %v8496_v10, 2  ;;  %v4699_v25 = vor.u32 %v4698_v53, %v4697_v60 }
 0x684   :  { %v6108_v11 = vpop.eup %6107  ;;  %v5766_v44 = vadd.s32 4294967294, %v4641_v9  ;;  %v4702_v52 = vor.u32 %v4701_v20, %v4700_v4  ;;  %v4703_v2 = vshll.u32 %v9041_v58, %v8477_v34  ;;  %v4704_v24 = vshrl.u32 %v9034_v33, %v4692_v36 }
 0x685   :  { %v6110_v27 = vpop.eup %6109  ;;  %v4465_v21 = vxor.u32 2147483648, %v6108_v11  ;;  %v4706_v8 = vshll.u32 %v9034_v33, %v8477_v34  ;;  %v4707_v5 = vshrl.u32 %v9035_v61, %v4692_v36 }
 0x686   :  { %v4462_v17 = vxor.u32 2147483648, %v6110_v27  ;;  %v4705_v6 = vor.u32 %v4704_v24, %v4703_v2 }
 0x687   :  { %v4466_v30 = vsel %vm4464_vm1, %v4465_v21, %v6110_v27  ;;  %v4881_v37 = vsel %vm4879_vm12, %v4465_v21, %v6110_v27  ;;  %vm4710_vm12 = vcmp.lt.s32.totalorder %v8503_v22, 2  ;;  %v4708_v33 = vor.u32 %v4707_v5, %v4706_v8 }
 0x688   :  { %v4463_v57 = vsel %vm4461_vm15, %v6108_v11, %v4462_v17  ;;  %v4878_v55 = vsel %vm4876_vm11, %v6108_v11, %v4462_v17  ;;  %vm4709_vm11 = vcmp.lt.s32.totalorder %v8503_v22, 1  ;;  %vm4712_vm15 = vcmp.lt.s32.totalorder %v8503_v22, 4 }
 0x689   :  { %v4467_v14 = vsel %vm4460_vm14, %v4463_v57, %v4466_v30  ;;  %v4882_v41 = vsel %vm4875_vm9, %v4878_v55, %v4881_v37  ;;  %vm4561_vm9 = vweird.f32 %v8302_v50  ;;  %vm4711_vm14 = vcmp.lt.s32.totalorder %v8503_v22, 3 }
 0x68a   :  { %v8528_v0 = vsel %vm4457_vm10, nan, %v4467_v14  ;;  %v8532_v3 = vsel %vm4457_vm10, nan, %v4882_v41  ;;  %vm5767_vm10 = vcmp.lt.s32.totalorder %v5766_v44, 0  ;;  %v4713_v61 = vsel %vm4709_vm11, %v4693_v47, %v4696_v45 }
 0x68b   :  { %v8542_v56 = vmul.f32 %v8532_v3, %v8528_v0  ;;  %5193 = vst [vmem:[#allocation2] sm:$0xff] %v8528_v0  ;;  %v5209_v38 = vmul.f32 %v8532_v3, %v8532_v3  ;;  %v5213_v29 = vmul.f32 %v8528_v0, %v8528_v0  ;;  %v4644_v49 = vsel %vm5767_vm10, 0, %v5766_v44 }
 0x68c   :  { %v4645_v26 = vsub.s32 32, %v4644_v49  ;;  %v4646_v58 = vshll.u32 %v8492_v13, %v4644_v49  ;;  %v4649_v54 = vsub.s32 4294967266, %v4644_v49  ;;  %v4714_v34 = vsel %vm4712_vm15, %v4702_v52, 2102212464 }
 0x68d   :  { %v6112_v15 = vpop.eup %6111  ;;  %v4717_v18 = vsel %vm4709_vm11, %v4696_v45, %v4699_v25  ;;  %v4715_v11 = vsel %vm4711_vm14, %v4699_v25, %v4714_v34  ;;  %v4718_v27 = vsel %vm4712_vm15, %v4705_v6, 920167782  ;;  %v4721_v53 = vsel %vm4709_vm11, %v4699_v25, %v4702_v52 }
 0x68e   :  { %v6114_v63 = vpop.eup %6113  ;;  %v4569_v39 = vxor.u32 2147483648, %v6112_v15  ;;  %v4647_v32 = vshrl.u32 %v4629_v51, %v4645_v26  ;;  %v4650_v35 = vadd.s32 127, %v4649_v54  ;;  %v4719_v19 = vsel %vm4711_vm14, %v4702_v52, %v4718_v27 }
 0x68f   :  { %v4566_v12 = vxor.u32 2147483648, %v6114_v63  ;;  %v4720_v55 = vsel %vm4710_vm12, %v4717_v18, %v4719_v19  ;;  %v4722_v50 = vsel %vm4712_vm15, %v4708_v33, 1326507024  ;;  %v4716_v41 = vsel %vm4710_vm12, %v4713_v61, %v4715_v11  ;;  %v8660_v61 = vld [vmem:[%s9007_s9] sm:$0xf]  ;;  %s6201_s9 = smov [#allocation9]  }
 0x690   :  { %v4570_v36 = vsel %vm4568_vm2, %v4569_v39, %v6114_v63  ;;  %v4984_v13 = vsel %vm4982_vm0, %v4569_v39, %v6114_v63  ;;  %v4648_v48 = vor.u32 %v4647_v32, %v4646_v58  ;;  %v4651_v59 = vshll.u32 %v4650_v35, 23  ;;  %s5625_s10 = sshll.u32 %s6201_s9, 4  ;;  %s5626_s10 = int_to_ptr.vmem [resolvable:$true] %s5625_s10 }
 0x691   :  { %v4567_v21 = vsel %vm4565_vm3, %v6112_v15, %v4566_v12  ;;  %v4981_v51 = vsel %vm4979_vm4, %v6112_v15, %v4566_v12  ;;  %v8609_v4 = vmul.u32.u64.low %v8500_v40, %v4720_v55  ;;  %v8610_v14 = vmul.u32.u64.high %v8500_v40, %v4720_v55, %v8609_v4  ;;  %s6163_s4 = scalar_lea.vmem %s5626_s10, 16  ;;  %s6167_s26 = scalar_lea.vmem %s5626_s10, 32 }
 0x692   :  { %v4571_v17 = vsel %vm4564_vm5, %v4567_v21, %v4570_v36  ;;  %v4985_v43 = vsel %vm4978_vm7, %v4981_v51, %v4984_v13  ;;  %v4652_v28 = vor.u32 4788187, %v4651_v59  ;;  %v4655_v62 = vcvt.s32.f32 %v4648_v48  ;;  %p6164_p10 = scmp.ne.s32.totalorder %s5626_s10, %s6163_s4  ;;  %p6168_p11 = scmp.lt.s32.totalorder %s5626_s10, %s5626_s10 }
 0x693   :  { %v8591_v30 = vsel %vm4561_vm9, nan, %v4571_v17  ;;  %v8595_v37 = vsel %vm4561_vm9, nan, %v4985_v43  ;;  %v4723_v9 = vsel %vm4711_vm14, %v4705_v6, %v4722_v50  ;;  %v8625_v52 = vadd.f32 %v8542_v56, %v8542_v56  ;;  %p6169_p12 = scmp.lt.s32.totalorder %s6167_s26, %s6163_s4 }
 0x694   :  { %v5202_v10 = vmul.f32 %v8595_v37, %v8591_v30  ;;  %v5210_v20 = vmul.f32 %v8595_v37, %v8595_v37  ;;  %v5214_v57 = vmul.f32 %v8591_v30, %v8591_v30  ;;  %5194 = vst [vmem:[#allocation2 + $0x8] sm:$0xff] %v8591_v30  ;;  %v4653_v60 = vand.u32 2147483647, %v4652_v28 }
 0x695   :  { %v4724_v25 = vsel %vm4710_vm12, %v4721_v53, %v4723_v9  ;;  %v8627_v2 = vsub.f32 %v5209_v38, %v5213_v29  ;;  %v4735_v22 = vadd.s32 1, %v8610_v14  ;;  %v5229_v29 = vmul.f32 %v8625_v52, %v8532_v3  ;;  %p6170_p13 = por %p6169_p12, %p6168_p11 }
 0x696   :  { %v8617_v47 = vadd.f32 %v5202_v10, %v5202_v10  ;;  %v8619_v45 = vsub.f32 %v5210_v20, %v5214_v57  ;;  %v4656_v44 = vmul.f32 %v4655_v62, %v4653_v60  ;;  %v5245_v39 = vmul.f32 %v8625_v52, %v8528_v0 }
 0x697   :  { %v8630_v24 = vmul.u32.u64.low %v8500_v40, %v4724_v25  ;;  %v8631_v8 = vmul.u32.u64.high %v8500_v40, %v4724_v25, %v8630_v24  ;;  %v5233_v26 = vmul.f32 %v8627_v2, %v8528_v0  ;;  %v5241_v58 = vmul.f32 %v8627_v2, %v8532_v3  ;;  %p6171_p0 = pnand %p6170_p13, %p6164_p10 }
 0x698   :  { %v5230_v5 = vmul.f32 %v8617_v47, %v8595_v37  ;;  %v5234_v49 = vmul.f32 %v8619_v45, %v8591_v30  ;;  %v4657_v6 = vxor.u32 2147483648, %v4656_v44  ;;  %v5242_v15 = vmul.f32 %v8619_v45, %v8595_v37 }
 0x699   :  { %v5246_v56 = vmul.f32 %v8617_v47, %v8591_v30  ;;  %v5463_v33 = vsub.s32 1, %v8474_v46  ;;  %v4732_v12 = vmul.u32 %v8500_v40, %v4716_v41  ;;  %v8677_v13 = vadd.f32 %v5233_v26, %v5229_v29 }
 0x69a   :  { %v8642_v38 = vadd.f32 %v5234_v49, %v5230_v5  ;;  %v4658_v54 = vsel %vm4575_vm8, %v4657_v6, %v4656_v44  ;;  %vm4734_vm8 = vc.u32 %v8631_v8, %v8609_v4  ;;  %v4666_v11 = vadd.s32 3, %v8538_v31 }
 0x69b   :  { %v8652_v63 = vsub.f32 %v5242_v15, %v5246_v56  ;;  %v4661_v34 = vsel %vm8487_vm13, %v8310_v23, %v4658_v54  ;;  %v4736_v35 = vsel %vm4734_vm8, %v4735_v22, %v8610_v14  ;;  %v8682_v21 = vsub.f32 %v5241_v58, %v5245_v39 }
 0x69c   :  { %v5262_v32 = vmul.f32 %v8642_v38, %v8595_v37  ;;  %6115 = vcosq.f32 %v4661_v34  ;;  %v4737_v16 = vadd.s32 %v4736_v35, %v4732_v12  ;;  %v5278_v40 = vmul.f32 %v8642_v38, %v8591_v30 }
 0x69d   :  { %v5266_v18 = vmul.f32 %v8652_v63, %v8591_v30  ;;  %v5274_v36 = vmul.f32 %v8652_v63, %v8595_v37  ;;  %6117 = vsinq.f32 %v4661_v34  ;;  %v5464_v51 = vrot.slane %v8660_v61, %v5463_v33 }
 0x69e   :  { %v4738_v48 = vadd.s32 536870912, %v4737_v16  ;;  %v5261_v17 = vmul.f32 %v8677_v13, %v8532_v3  ;;  %v5277_v43 = vmul.f32 %v8677_v13, %v8528_v0  ;;  %v5265_v28 = vmul.f32 %v8682_v21, %v8528_v0 }
 0x69f   :  { %v8680_v27 = vadd.f32 %v5266_v18, %v5262_v32  ;;  %v8685_v59 = vsub.f32 %v5274_v36, %v5278_v40  ;;  %v5273_v62 = vmul.f32 %v8682_v21, %v8532_v3  ;;  %5542 = vmatprep.mubr.f32.mxu0 %v5464_v51  ;;  %v5080_v55 = vand.u32 3, %v8538_v31 }
 0x6a0   :  { %v8699_v10 = vshrl.u32 %v4738_v48, 30  ;;  %v8706_v60 = vadd.f32 %v5265_v28, %v5261_v17  ;;  %v4667_v14 = vand.u32 3, %v4666_v11  ;;  %vm4665_vm13 = vweird.f32 %v8310_v23 }
 0x6a1   :  { %v5294_v19 = vmul.f32 %v8680_v27, %v8595_v37  ;;  %v5310_v53 = vmul.f32 %v8680_v27, %v8591_v30  ;;  %v5298_v20 = vmul.f32 %v8685_v59, %v8591_v30  ;;  %v5306_v57 = vmul.f32 %v8685_v59, %v8595_v37 }
 0x6a2   :  { %v8708_v50 = vsub.f32 %v5273_v62, %v5277_v43  ;;  %v4740_v41 = vshll.u32 %v8699_v10, 30  ;;  %v5293_v25 = vmul.f32 %v8706_v60, %v8532_v3  ;;  %v5309_v5 = vmul.f32 %v8706_v60, %v8528_v0 }
 0x6a3   :  { %v8711_v9 = vadd.f32 %v5298_v20, %v5294_v19  ;;  %v8713_v44 = vsub.f32 %v5306_v57, %v5310_v53  ;;  %vm4668_vm1 = vcmp.lt.s32.totalorder %v4667_v14, 2  ;;  %vm5081_vm2 = vcmp.lt.s32.totalorder %v5080_v55, 2 }
 0x6a4   :  { %v5297_v24 = vmul.f32 %v8708_v50, %v8528_v0  ;;  %v5305_v31 = vmul.f32 %v8708_v50, %v8532_v3  ;;  %v8723_v49 = vsub.s32 %v4737_v16, %v4740_v41  ;;  %vm5082_vm0 = vcmp.eq.s32.totalorder %v5080_v55, 0 }
 0x6a5   :  { %v5326_v6 = vmul.f32 %v8711_v9, %v8595_v37  ;;  %v5330_v22 = vmul.f32 %v8713_v44, %v8591_v30  ;;  %v5338_v29 = vmul.f32 %v8713_v44, %v8595_v37  ;;  %v5342_v54 = vmul.f32 %v8711_v9, %v8591_v30 }
 0x6a6   :  { %v8729_v15 = vadd.f32 %v5297_v24, %v5293_v25  ;;  %v8731_v56 = vsub.f32 %v5305_v31, %v5309_v5  ;;  %v4743_v26 = vsub.s32 0, %v8723_v49  ;;  %vm4669_vm3 = vcmp.eq.s32.totalorder %v4667_v14, 0 }
 0x6a7   :  { %v8737_v58 = vadd.f32 %v5330_v22, %v5326_v6  ;;  %vm4672_vm4 = vcmp.eq.s32.totalorder %v4667_v14, 2  ;;  %v8746_v18 = vsub.f32 %v5338_v29, %v5342_v54  ;;  %vm5085_vm5 = vcmp.eq.s32.totalorder %v5080_v55, 2 }
 0x6a8   :  { %v5769_v33 = vmin.u32 %v4743_v26, %v8723_v49  ;;  %v5325_v34 = vmul.f32 %v8729_v15, %v8532_v3  ;;  %v5329_v12 = vmul.f32 %v8731_v56, %v8528_v0  ;;  %v4733_v40 = vadd.s32 %v8609_v4, %v8631_v8 }
 0x6a9   :  { %v6116_v39 = vpop.eup %6115  ;;  %9057 = vst [vmem:[#allocation13_spill] sm:$0xff] %v8746_v18  ;;  %v5358_v36 = vmul.f32 %v8737_v58, %v8595_v37  ;;  %v5362_v17 = vmul.f32 %v8746_v18, %v8591_v30  ;;  %v5337_v43 = vmul.f32 %v8731_v56, %v8532_v3  ;;  %v5341_v57 = vmul.f32 %v8729_v15, %v8528_v0 }
 0x6aa   :  { %v6118_v32 = vpop.eup %6117  ;;  %v4673_v35 = vxor.u32 2147483648, %v6116_v39  ;;  %v4745_v11 = vclz %v5769_v33  ;;  %v8758_v62 = vadd.f32 %v5329_v12, %v5325_v34  ;;  %v8795_v33 = vmul.f32 %v8737_v58, %v8591_v30 }
 0x6ab   :  { %v4670_v16 = vxor.u32 2147483648, %v6118_v32  ;;  %v8762_v8 = vadd.f32 %v5362_v17, %v5358_v36  ;;  %v8783_v29 = vsub.f32 %v5337_v43, %v5341_v57  ;;  %vm4679_vm9 = vcmp.lt.s32.totalorder %v8378_v42, 0 }
 0x6ac   :  { %v4674_v51 = vsel %vm4672_vm4, %v4673_v35, %v6118_v32  ;;  %v5087_v48 = vsel %vm5085_vm5, %v4673_v35, %v6118_v32  ;;  %v5770_v28 = vadd.s32 4294967294, %v4745_v11  ;;  %v5357_v14 = vmul.f32 %v8758_v62, %v8532_v3 }
 0x6ad   :  { %v4671_v19 = vsel %vm4669_vm3, %v6116_v39, %v4670_v16  ;;  %v5084_v53 = vsel %vm5082_vm0, %v6116_v39, %v4670_v16  ;;  %9058 = vst [vmem:[#allocation14_spill] sm:$0xff] %v8783_v29  ;;  %v8791_v39 = vmul.f32 %v8746_v18, %v8595_v37  ;;  %v8801_v32 = vmul.f32 %v8783_v29, %v8532_v3 }
 0x6ae   :  { %v4675_v20 = vsel %vm4668_vm1, %v4671_v19, %v4674_v51  ;;  %v5088_v4 = vsel %vm5081_vm2, %v5084_v53, %v5087_v48  ;;  %vm5771_vm7 = vcmp.lt.s32.totalorder %v5770_v28, 0  ;;  %v8821_v53 = vmul.f32 %v8758_v62, %v8528_v0 }
 0x6af   :  { %v8768_v41 = vsel %vm4665_vm13, nan, %v4675_v20  ;;  %v8772_v25 = vsel %vm4665_vm13, nan, %v5088_v4  ;;  %v4748_v5 = vsel %vm5771_vm7, 0, %v5770_v28  ;;  %vm4678_vm10 = vcmp.le.f32.partialorder %v4677_v1, 0.7853982 }
 0x6b0   :  { %v5203_v55 = vmul.f32 %v8772_v25, %v8768_v41  ;;  %v5211_v24 = vmul.f32 %v8772_v25, %v8772_v25  ;;  %v5215_v31 = vmul.f32 %v8768_v41, %v8768_v41  ;;  %v4749_v6 = vsub.s32 32, %v4748_v5  ;;  %9059 = vst [vmem:[#allocation15_spill] sm:$0xff] %v8821_v53 }
 0x6b1   :  { %v4750_v22 = vshll.u32 %v8723_v49, %v4748_v5  ;;  %v4753_v23 = vsub.s32 4294967266, %v4748_v5  ;;  %v5361_v49 = vmul.f32 %v8783_v29, %v8528_v0  ;;  %vm4769_vm1 = vweird.f32 %v8378_v42 }
 0x6b2   :  { %v8785_v26 = vadd.f32 %v5203_v55, %v5203_v55  ;;  %v8787_v54 = vsub.f32 %v5211_v24, %v5215_v31  ;;  %v4751_v34 = vshrl.u32 %v4733_v40, %v4749_v6 }
 0x6b3   :  { %v4754_v12 = vadd.s32 127, %v4753_v23  ;;  %v8811_v48 = vadd.f32 %v5361_v49, %v5357_v14 }
 0x6b4   :  { %v5231_v35 = vmul.f32 %v8785_v26, %v8772_v25  ;;  %v5235_v36 = vmul.f32 %v8787_v54, %v8768_v41  ;;  %v5243_v16 = vmul.f32 %v8787_v54, %v8772_v25  ;;  %v5247_v40 = vmul.f32 %v8785_v26, %v8768_v41 }
 0x6b5   :  { %v4752_v11 = vor.u32 %v4751_v34, %v4750_v22  ;;  %v4755_v51 = vshll.u32 %v4754_v12, 23 }
 0x6b6   :  { %v8815_v43 = vadd.f32 %v5235_v36, %v5231_v35  ;;  %v8817_v19 = vsub.f32 %v5243_v16, %v5247_v40  ;;  %v4763_v35 = vsub.s32 4, %v8699_v10 }
 0x6b7   :  { %v4756_v28 = vor.u32 4788187, %v4755_v51  ;;  %v4759_v24 = vcvt.s32.f32 %v4752_v11 }
 0x6b8   :  { %v5263_v20 = vmul.f32 %v8815_v43, %v8772_v25  ;;  %v5267_v4 = vmul.f32 %v8817_v19, %v8768_v41  ;;  %v5275_v57 = vmul.f32 %v8817_v19, %v8772_v25  ;;  %v5279_v14 = vmul.f32 %v8815_v43, %v8768_v41 }
 0x6b9   :  { %v4757_v55 = vand.u32 2147483647, %v4756_v28 }
 0x6ba   :  { %v8833_v0 = vadd.f32 %v5267_v4, %v5263_v20  ;;  %v8835_v5 = vsub.f32 %v5275_v57, %v5279_v14  ;;  %v4764_v57 = vsel %vm4679_vm9, %v4763_v35, %v8699_v10 }
 0x6bb   :  { %v4760_v6 = vmul.f32 %v4759_v24, %v4757_v55 }
 0x6bc   :  { %v5295_v22 = vmul.f32 %v8833_v0, %v8772_v25  ;;  %v5299_v23 = vmul.f32 %v8835_v5, %v8768_v41  ;;  %v5307_v34 = vmul.f32 %v8835_v5, %v8772_v25  ;;  %v5311_v12 = vmul.f32 %v8833_v0, %v8768_v41 }
 0x6bd   :  { %v4761_v49 = vxor.u32 2147483648, %v4760_v6 }
 0x6be   :  { %v8847_v36 = vadd.f32 %v5299_v23, %v5295_v22  ;;  %v8849_v16 = vsub.f32 %v5307_v34, %v5311_v12 }
 0x6bf   :  { %v4762_v40 = vsel %vm4679_vm9, %v4761_v49, %v4760_v6  ;;  %v4766_v6 = vsel %vm4678_vm10, 0, %v4764_v57 }
 0x6c0   :  { %v4765_v11 = vsel %vm4678_vm10, %v8378_v42, %v4762_v40  ;;  %v5327_v51 = vmul.f32 %v8847_v36, %v8772_v25  ;;  %v5331_v28 = vmul.f32 %v8849_v16, %v8768_v41  ;;  %v5339_v20 = vmul.f32 %v8849_v16, %v8772_v25 }
 0x6c1   :  { %6119 = vcosq.f32 %v4765_v11  ;;  %v5343_v4 = vmul.f32 %v8847_v36, %v8768_v41  ;;  %v4770_v12 = vadd.s32 3, %v4766_v6  ;;  %v5183_v35 = vand.u32 3, %v4766_v6 }
 0x6c2   :  { %6121 = vsinq.f32 %v4765_v11  ;;  %v8863_v1 = vadd.f32 %v5331_v28, %v5327_v51 }
 0x6c3   :  { %v8865_v14 = vsub.f32 %v5339_v20, %v5343_v4  ;;  %v4771_v49 = vand.u32 3, %v4770_v12  ;;  %vm5188_vm12 = vcmp.eq.s32.totalorder %v5183_v35, 2  ;;  %vm5185_vm15 = vcmp.eq.s32.totalorder %v5183_v35, 0 }
 0x6c4   :  { %v5359_v55 = vmul.f32 %v8863_v1, %v8772_v25  ;;  %v8871_v24 = vmul.f32 %v8863_v1, %v8768_v41  ;;  %vm5184_vm13 = vcmp.lt.s32.totalorder %v5183_v35, 2 }
 0x6c5   :  { %9060 = vst [vmem:[#allocation16_spill] sm:$0xff] %v8865_v14  ;;  %v5363_v22 = vmul.f32 %v8865_v14, %v8768_v41  ;;  %v8877_v23 = vmul.f32 %v8865_v14, %v8772_v25  ;;  %vm4776_vm11 = vcmp.eq.s32.totalorder %v4771_v49, 2  ;;  %vm4773_vm14 = vcmp.eq.s32.totalorder %v4771_v49, 0 }
 0x6c6   :  { %vm4772_vm8 = vcmp.lt.s32.totalorder %v4771_v49, 2 }
 0x6c7   :  { %v8879_v10 = vadd.f32 %v5363_v22, %v5359_v55 }
 0x6ce   :  { %v6120_v40 = vpop.eup %6119 }
 0x6cf   :  { %v6122_v11 = vpop.eup %6121  ;;  %v4777_v51 = vxor.u32 2147483648, %v6120_v40 }
 0x6d0   :  { %v4774_v28 = vxor.u32 2147483648, %v6122_v11 }
 0x6d1   :  { %v4778_v20 = vsel %vm4776_vm11, %v4777_v51, %v6122_v11  ;;  %v5190_v4 = vsel %vm5188_vm12, %v4777_v51, %v6122_v11 }
 0x6d2   :  { %v4775_v57 = vsel %vm4773_vm14, %v6120_v40, %v4774_v28  ;;  %v5187_v55 = vsel %vm5185_vm15, %v6120_v40, %v4774_v28 }
 0x6d3   :  { %v4779_v22 = vsel %vm4772_vm8, %v4775_v57, %v4778_v20  ;;  %v5191_v31 = vsel %vm5184_vm13, %v5187_v55, %v5190_v4 }
 0x6d4   :  { %v4780_v12 = vsel %vm4769_vm1, nan, %v4779_v22  ;;  %v5192_v6 = vsel %vm4769_vm1, nan, %v5191_v31 }
 0x6d5   :  { %v5204_v17 = vmul.f32 %v5192_v6, %v4780_v12  ;;  %v5212_v34 = vmul.f32 %v5192_v6, %v5192_v6  ;;  %v5216_v29 = vmul.f32 %v4780_v12, %v4780_v12  ;;  %5927 = vmatprep.subr.mxu0 %v5192_v6 }
 0x6d7   :  { %v5208_v18 = vadd.f32 %v5204_v17, %v5204_v17  ;;  %v8884_v14 = vsub.f32 %v5212_v34, %v5216_v29 }
 0x6d9   :  { %v5232_v53 = vmul.f32 %v5208_v18, %v5192_v6  ;;  %v5236_v11 = vmul.f32 %v8884_v14, %v4780_v12  ;;  %v5244_v49 = vmul.f32 %v8884_v14, %v5192_v6  ;;  %v5248_v35 = vmul.f32 %v5208_v18, %v4780_v12 }
 0x6db   :  { %v5240_v40 = vadd.f32 %v5236_v11, %v5232_v53  ;;  %v8888_v51 = vsub.f32 %v5244_v49, %v5248_v35 }
 0x6dd   :  { %v5264_v42 = vmul.f32 %v5240_v40, %v5192_v6  ;;  %v5268_v28 = vmul.f32 %v8888_v51, %v4780_v12  ;;  %v5276_v31 = vmul.f32 %v8888_v51, %v5192_v6  ;;  %v5280_v20 = vmul.f32 %v5240_v40, %v4780_v12 }
 0x6df   :  { %v5272_v4 = vadd.f32 %v5268_v28, %v5264_v42  ;;  %v8892_v57 = vsub.f32 %v5276_v31, %v5280_v20 }
 0x6e1   :  { %v5296_v29 = vmul.f32 %v5272_v4, %v5192_v6  ;;  %v5300_v17 = vmul.f32 %v8892_v57, %v4780_v12  ;;  %v5308_v34 = vmul.f32 %v8892_v57, %v5192_v6  ;;  %v5312_v55 = vmul.f32 %v5272_v4, %v4780_v12  ;;  %5928 = vmatpush3.msra.mxu0 %v5272_v4 }
 0x6e2   :  { %5929 = vmatprep.subr.mxu0 %v8772_v25 }
 0x6e3   :  { %v5304_v53 = vadd.f32 %v5300_v17, %v5296_v29  ;;  %v5316_v22 = vsub.f32 %v5308_v34, %v5312_v55  ;;  %5930 = vmatpush3.msra.mxu0 %v8833_v0 }
 0x6e4   :  { %5931 = vmatprep.subr.mxu0 %v8595_v37 }
 0x6e5   :  { %5932 = vmatpush3.msra.mxu0 %v8680_v27  ;;  %v5328_v11 = vmul.f32 %v5304_v53, %v5192_v6  ;;  %v5332_v49 = vmul.f32 %v5316_v22, %v4780_v12  ;;  %v5340_v35 = vmul.f32 %v5316_v22, %v5192_v6  ;;  %v5344_v42 = vmul.f32 %v5304_v53, %v4780_v12 }
 0x6e6   :  { %5933 = vmatprep.subr.mxu0 %v8532_v3  ;;  %v5471_v3 = vsub.s32 3, %v8474_v46 }
 0x6e7   :  { %5934 = vmatpush3.msra.mxu0 %v8706_v60  ;;  %v5336_v28 = vadd.f32 %v5332_v49, %v5328_v11  ;;  %v8902_v31 = vsub.f32 %v5340_v35, %v5344_v42 }
 0x6e9   :  { %v5360_v25 = vmul.f32 %v5336_v28, %v5192_v6  ;;  %v5364_v20 = vmul.f32 %v8902_v31, %v4780_v12  ;;  %v8906_v0 = vmul.f32 %v8902_v31, %v5192_v6  ;;  %v8908_v37 = vmul.f32 %v5336_v28, %v4780_v12 }
 0x6eb   :  { %v5368_v27 = vadd.f32 %v5364_v20, %v5360_v25  ;;  %v5380_v4 = vsub.f32 %v8906_v0, %v8908_v37 }
 0x6ed   :  { %5935 = vmatprep.subr.mxu0 %v5368_v27 }
 0x6ee   :  { %5936 = vmatpush3.msra.mxu0 %v5240_v40 }
 0x6ef   :  { %5937 = vmatprep.subr.mxu0 %v8879_v10 }
 0x6f0   :  { %5938 = vmatpush3.msra.mxu0 %v8815_v43 }
 0x6f1   :  { %5939 = vmatprep.subr.mxu0 %v8762_v8 }
 0x6f2   :  { %5940 = vmatpush3.msra.mxu0 %v8642_v38  ;;  %v5454_v38 = vsub.s32 0, %v8474_v46 }
 0x6f3   :  { %5941 = vmatprep.subr.mxu0 %v8811_v48 }
 0x6f4   :  { %5942 = vmatpush3.msra.mxu0 %v8677_v13  ;;  %v5460_v13 = vrot.slane %v8660_v61, %v5454_v38 }
 0x6f5   :  { %5943 = vmatprep.subr.mxu0 %v5336_v28 }
 0x6f6   :  { %5944 = vmatpush3.msra.mxu0 %v5208_v18 }
 0x6f7   :  { %5945 = vmatprep.subr.mxu0 %v8863_v1 }
 0x6f8   :  { %5946 = vmatpush3.msra.mxu0 %v8785_v26 }
 0x6f9   :  { %5947 = vmatprep.subr.mxu0 %v8737_v58 }
 0x6fa   :  { %5948 = vmatpush3.msra.mxu0 %v8617_v47  ;;  %v5472_v47 = vrot.slane %v8660_v61, %v5471_v3 }
 0x6fb   :  { %5949 = vmatprep.subr.mxu0 %v8758_v62 }
 0x6fc   :  { %5950 = vmatpush3.msra.mxu0 %v8625_v52  ;;  %v5390_v52 = vld [vmem:[#allocation2] sm:$0xff] }
 0x6fd   :  { %5951 = vmatprep.subr.mxu0 %v5304_v53 }
 0x6fe   :  { %5952 = vmatpush3.msra.mxu0 %v4780_v12 }
 0x6ff   :  { %5953 = vmatprep.subr.mxu0 %v8847_v36 }
 0x700   :  { %5954 = vmatpush3.msra.mxu0 %v8768_v41 }
 0x701   :  { %5955 = vmatprep.subr.mxu0 %v8711_v9  ;;  %v9067_v9 = vld [vmem:[#allocation14_spill] sm:$0xff] }
 0x702   :  { %5956 = vmatpush3.msra.mxu0 %v8591_v30  ;;  %v9061_v30 = vsub.f32 %v8877_v23, %v8871_v24 }
 0x703   :  { %5957 = vmatprep.subr.mxu0 %v8729_v15 }
 0x704   :  { %5958 = vmatpush3.msra.mxu0 %v5390_v52 }
 0x705   :  { %5543 = vmatmul.mubr.f32.vlgmr.msra.gmra.mxu0 %v5460_v13  ;;  %5548 = vmatprep.subr.mxu0 %v9048_v7 }
 0x706   :  { %5549 = vmatpush1.msra.mxu0 %v5316_v22  ;;  %5788 = vmatprep.mubr.msk.f32.mxu0 %vm1578_vm6, %v5472_v47 }
 0x707   :  { %5550 = vmatprep.subr.mxu0 %v9048_v7 }
 0x708   :  { %5551 = vmatpush1.msra.mxu0 %v8849_v16 }
 0x709   :  { %5552 = vmatprep.subr.mxu0 %v9048_v7 }
 0x70a   :  { %5553 = vmatpush1.msra.mxu0 %v8713_v44 }
 0x70b   :  { %5554 = vmatprep.subr.mxu0 %v9048_v7 }
 0x70c   :  { %5555 = vmatpush1.msra.mxu0 %v8731_v56  ;;  %v5450_v56 = vpop.permute.xlu0 %5449 }
 0x70d   :  { %5556 = vmatprep.subr.mxu0 %v9048_v7  ;;  %v5455_v18 = vrot.slane %v5450_v56, %v5454_v38 }
 0x70e   :  { %5557 = vmatpush1.msra.mxu0 %v8892_v57 }
 0x70f   :  { %5558 = vmatprep.subr.mxu0 %v9048_v7 }
 0x710   :  { %5559 = vmatpush1.msra.mxu0 %v8835_v5 }
 0x711   :  { %5560 = vmatprep.subr.mxu0 %v9048_v7 }
 0x712   :  { %5561 = vmatpush1.msra.mxu0 %v8685_v59  ;;  %v9065_v59 = vld [vmem:[#allocation16_spill] sm:$0xff] }
 0x713   :  { %5562 = vmatprep.subr.mxu0 %v9048_v7 }
 0x714   :  { %5563 = vmatpush1.msra.mxu0 %v8708_v50  ;;  %v9066_v50 = vld [vmem:[#allocation13_spill] sm:$0xff] }
 0x715   :  { %5564 = vmatprep.subr.mxu0 %v9048_v7 }
 0x716   :  { %5565 = vmatpush1.msra.mxu0 %v8888_v51 }
 0x717   :  { %5566 = vmatprep.subr.mxu0 %v9048_v7 }
 0x718   :  { %5567 = vmatpush1.msra.mxu0 %v8817_v19 }
 0x719   :  { %5568 = vmatprep.subr.mxu0 %v9048_v7 }
 0x71a   :  { %5569 = vmatpush1.msra.mxu0 %v8652_v63 }
 0x71b   :  { %5570 = vmatprep.subr.mxu0 %v9048_v7 }
 0x71c   :  { %5571 = vmatpush1.msra.mxu0 %v8682_v21  ;;  %v5467_v21 = vsub.s32 2, %v8474_v46 }
 0x71d   :  { %5572 = vmatprep.subr.mxu0 %v9048_v7 }
 0x71e   :  { %5573 = vmatpush1.msra.mxu0 %v8884_v14  ;;  %v5468_v60 = vrot.slane %v8660_v61, %v5467_v21 }
 0x71f   :  { %5574 = vmatprep.subr.mxu0 %v9048_v7 }
 0x720   :  { %5575 = vmatpush1.msra.mxu0 %v8787_v54 }
 0x721   :  { %5576 = vmatprep.subr.mxu0 %v9048_v7 }
 0x722   :  { %5577 = vmatpush1.msra.mxu0 %v8619_v45  ;;  %v9062_v45 = vsub.f32 %v8791_v39, %v8795_v33 }
 0x723   :  { %5578 = vmatprep.subr.mxu0 %v9048_v7 }
 0x724   :  { %5579 = vmatpush1.msra.mxu0 %v8627_v2  ;;  %v9063_v2 = vld [vmem:[#allocation15_spill] sm:$0xff] }
 0x725   :  { %5596 = vmatprep.subr.mxu0 %v9048_v7  ;;  %v9064_v63 = vsub.f32 %v8801_v32, %v9063_v2 }
 0x726   :  { %5597 = vmatpush2.msra.mxu0 %v5380_v4 }
 0x727   :  { %5598 = vmatprep.subr.mxu0 %v9048_v7 }
 0x728   :  { %5599 = vmatpush2.msra.mxu0 %v9061_v30 }
 0x729   :  { %5600 = vmatprep.subr.mxu0 %v9048_v7 }
 0x72a   :  { %5601 = vmatpush2.msra.mxu0 %v9062_v45 }
 0x72b   :  { %5602 = vmatprep.subr.mxu0 %v9048_v7 }
 0x72c   :  { %5603 = vmatpush2.msra.mxu0 %v9064_v63 }
 0x72d   :  { %5604 = vmatprep.subr.mxu0 %v9048_v7 }
 0x72e   :  { %5605 = vmatpush2.msra.mxu0 %v8902_v31 }
 0x72f   :  { %5606 = vmatprep.subr.mxu0 %v9048_v7 }
 0x730   :  { %5607 = vmatpush2.msra.mxu0 %v9065_v59 }
 0x731   :  { %5608 = vmatprep.subr.mxu0 %v9048_v7 }
 0x732   :  { %5609 = vmatpush2.msra.mxu0 %v9066_v50 }
 0x733   :  { %5610 = vmatprep.subr.mxu0 %v9048_v7 }
 0x734   :  { %5611 = vmatpush2.msra.mxu0 %v9067_v9 }
 0x735   :  { %5613 = vmatmul.mubr.f32.vlgmr.msra.gmra.mxu0 %v5468_v60 }
 0x7c5   :  { %v5959_v44 = vpop.f32.mrf.mxu0 }
 0x7c7   :  { %v5960_v15 = vpop.f32.mrf.mxu0 }
 0x7c8   :  { %v5961_v58 = vadd.f32 %v5960_v15, %v5959_v44 }
 0x7ca   :  { %v5545_v62 = vadd.f32 %v5961_v58, %v5455_v18 }
 0x7f5   :  { %v5614_v8 = vpop.f32.mrf.mxu0 }
 0x7f6   :  { %v5615_v41 = vadd.f32 %v5614_v8, %v5545_v62 }
 0x7f7   :  { %v5616_v61 = vpop.f32.mrf.mxu0 }
 0x7f8   :  { %5618 = vst [vmem:[#allocation9] sm:$0x1] %v5615_v41 }
 0x7f9   :  { %6174 = shalt.err (!%p6171_p0)
}
 0x7fa   :  { %5628 = dma.vmem_to_hbm [thread:$0]  %s5626_s10, 16, %s9009_s11, [#allocation6]  }
 0x7fb   :  { %6187 = dma.done.wait [#allocation6], 16  }
 0x7fc   :  { %6188 = vsyncadd [#allocation6], 4294967280 }
 0x7fd   :  { %5632 = vsyncpa [#allocation5], 1 }
 0x7fe   :  { %5633 = vsyncpa [#allocation8], 1 }
 0x7ff   :  { %5634 = vsyncpa [#allocation6], 1 }

</bundles_post_ra>
